<compile_context>
chip_gen: v5e
topology: v5e:2x2
jax: 0.10.0
libtpu: 0.0.40
codegen_flags: <defaults>
</compile_context>

<pallas_src>
import functools

import jax
import jax.numpy as jnp
from jax import lax
from jax.experimental import pallas as pl
from jax.experimental.pallas import tpu as pltpu

# ---- scaled-down configuration (original: img 448, C=320, 14x14 / 7x7) ----
IMG = 64          # input image spatial size   (stands in for 448)
RESIZED = 32      # crop-resize output size    (stands in for 224)
PATCH = 8         # backbone "stride"          (stands in for 32)
CFEAT = 32        # backbone feature channels  (stands in for 320)
APN_HIDDEN = 64   # APN hidden width           (stands in for 1024)
NUM_CLASSES = 10
BATCH = 2

NPAD = 128        # classifier output padded to a full lane width
APAD = 128        # APN output padded to a full lane width


# ----------------------------- Pallas kernels ------------------------------

def _scale_head_kernel(pat_ref, wb_ref, bb_ref, wc_ref, bc_ref,
                       feat_ref, pred_ref, *, B, nn2):
    """Batch-fused scale head (single block, no grid):
       backbone patchify-conv + ReLU6 -> per-sample avg pool -> classifier.
       Operands bf16, accumulation / activations f32."""
    feat = jnp.dot(pat_ref[...], wb_ref[...],
                   preferred_element_type=jnp.float32)       # (B*nn2, CFEAT)
    feat = jnp.clip(feat + bb_ref[...], 0.0, 6.0)             # ReLU6, f32
    feat_ref[...] = feat

    # AdaptiveAvgPool2d(1): per-sample mean over the spatial rows (static
    # slices, B unrolled; avoids any lane-changing in-kernel reshape).
    pool = jnp.concatenate(
        [jnp.mean(feat[b * nn2:(b + 1) * nn2, :], axis=0, keepdims=True)
         for b in range(B)], axis=0)                          # (B, CFEAT)

    pred_ref[...] = jnp.dot(pool.astype(jnp.bfloat16), wc_ref[...],
                            preferred_element_type=jnp.float32) + bc_ref[...]


def _apn_kernel(flat_ref, w1_ref, b1_ref, w2_ref, b2_ref, att_ref):
    """Fused APN MLP: Linear -> Tanh -> Linear -> Sigmoid, whole batch."""
    h = jnp.dot(flat_ref[...], w1_ref[...],
                preferred_element_type=jnp.float32) + b1_ref[...]
    h = jnp.tanh(h)                                           # f32, EUP
    a = jnp.dot(h.astype(jnp.bfloat16), w2_ref[...],
                preferred_element_type=jnp.float32) + b2_ref[...]
    att_ref[...] = 1.0 / (1.0 + jnp.exp(-a))                  # exact sigmoid


def _crop_resize_kernel(offs_ref, img_ref, out_ref, *, C, S, So):
    """AttentionCropFunction.forward for one batch element.

    img_ref[0][i, c*S + j] == image[c, i, j] (channel-stacked lane layout).
    The separable soft mask factors are folded into the two align_corners=True
    bilinear hat matrices; the column resize is done per channel (C small
    matmuls) so no block-diagonal matrix is ever materialized."""
    b = pl.program_id(0)
    f32 = jnp.float32
    # scalar offsets first (int32 SMEM scalar prefetch, before any VMEM load)
    w_off = offs_ref[4 * b + 0].astype(f32)
    w_end = offs_ref[4 * b + 1].astype(f32)
    h_off = offs_ref[4 * b + 2].astype(f32)
    h_end = offs_ref[4 * b + 3].astype(f32)

    def sig(z):
        return 1.0 / (1.0 + jnp.exp(-10.0 * z))               # exact

    # separable soft-attention mask factors: only O(S) transcendentals
    i_row = lax.broadcasted_iota(jnp.int32, (1, S), 1).astype(f32)   # row i
    m_row = sig(i_row - w_off) - sig(i_row - w_end)                   # (1, S)
    j_col = lax.broadcasted_iota(jnp.int32, (S, 1), 0).astype(f32)   # col j
    m_col = sig(j_col - h_off) - sig(j_col - h_end)                   # (S, 1)

    inv = 1.0 / (So - 1.0)                                    # static python

    # row hat matrix (align_corners=True over the crop), mask folded in
    u = lax.broadcasted_iota(jnp.int32, (So, S), 0).astype(f32)
    ii = lax.broadcasted_iota(jnp.int32, (So, S), 1).astype(f32)
    scale_r = (w_end - w_off - 1.0) * inv
    wr = jnp.maximum(0.0, 1.0 - jnp.abs(w_off + u * scale_r - ii)) * m_row

    # column hat matrix (shared across channels), mask folded in
    jj = lax.broadcasted_iota(jnp.int32, (S, So), 0).astype(f32)
    vv = lax.broadcasted_iota(jnp.int32, (S, So), 1).astype(f32)
    scale_c = (h_end - h_off - 1.0) * inv
    wc = m_col * jnp.maximum(0.0, 1.0 - jnp.abs(h_off + vv * scale_c - jj))

    # row resize for all channels at once, then per-channel column resize
    t = jnp.dot(wr, img_ref[0], preferred_element_type=f32)   # (So, C*S)
    outs = [jnp.dot(t[:, c * S:(c + 1) * S], wc, preferred_element_type=f32)
            for c in range(C)]
    out_ref[0] = jnp.concatenate(outs, axis=1)                # (So, C*So)


# ------------------------------ wrappers ------------------------------------

def _to_scs(x):
    """NCHW (B,C,S,S) -> channel-stacked (B, S, C*S): [b,i,c*S+j]=x[b,c,i,j]."""
    B, C, S, _ = x.shape
    return x.transpose(0, 2, 1, 3).reshape(B, S, C * S)


def _scs_to_nchw(x_scs, C):
    B, S, _ = x_scs.shape
    return x_scs.reshape(B, S, C, S).transpose(0, 2, 1, 3)


def _patchify_scs(x_scs, C, p):
    """Patchify directly from the channel-stacked layout.
       Returns ((B*n*n, C*p*p) bf16, n) with patch-inner order (c, pi, pj)."""
    B, S, _ = x_scs.shape
    n = S // p
    x = x_scs.reshape(B, n, p, C, n, p)          # [b, gh, pi, c, gw, pj]
    x = x.transpose(0, 1, 4, 3, 2, 5)            # [b, gh, gw, c, pi, pj]
    return x.reshape(B * n * n, C * p * p).astype(jnp.bfloat16), n


def scale_head(x_scs, C, backbone_params, cls_params):
    """Stand-in backbone (patchify conv + ReLU6) fused with pool + classifier."""
    wb, bb = backbone_params
    wc, bc = cls_params
    B = x_scs.shape[0]
    patches, n = _patchify_scs(x_scs, C, PATCH)
    nn2 = n * n

    feat, pred = pl.pallas_call(
        functools.partial(_scale_head_kernel, B=B, nn2=nn2),
        out_shape=[
            jax.ShapeDtypeStruct((B * nn2, CFEAT), jnp.float32),
            jax.ShapeDtypeStruct((B, NPAD), jnp.float32),
        ],
    )(patches, wb, bb, wc, bc)
    return feat, pred[:, :NUM_CLASSES], n


def apn_head(flat_bf16, apn_params):
    """APN MLP: Linear -> Tanh -> Linear -> Sigmoid (single fused call)."""
    w1, b1, w2, b2 = apn_params
    B = flat_bf16.shape[0]
    att = pl.pallas_call(
        _apn_kernel,
        out_shape=jax.ShapeDtypeStruct((B, APAD), jnp.float32),
    )(flat_bf16, w1, b1, w2, b2)
    return att[:, :3]


def _crop_offsets(locs, in_size):
    """Per-sample scalar clamp glue (mirrors the PyTorch logic), int offsets."""
    tx, ty, tl = locs[:, 0], locs[:, 1], locs[:, 2]
    tl = jnp.maximum(tl, in_size / 3.0)
    tx = jnp.clip(tx, tl, in_size - tl)
    ty = jnp.clip(ty, tl, in_size - tl)
    w_off = jnp.where(tx - tl > 0, jnp.floor(tx - tl), 0.0)
    h_off = jnp.where(ty - tl > 0, jnp.floor(ty - tl), 0.0)
    w_end = jnp.where(tx + tl < in_size, jnp.floor(tx + tl), in_size)
    h_end = jnp.where(ty + tl < in_size, jnp.floor(ty + tl), in_size)
    offs = jnp.stack([w_off, w_end, h_off, h_end], axis=1)    # (B, 4)
    return offs.reshape(-1).astype(jnp.int32)                 # (4*B,) 1-D SMEM


def crop_resize_scs(img_scs, offs, C, out_size):
    """AttentionCropLayer on the channel-stacked layout -> (B, So, C*So)."""
    B, S, CS = img_scs.shape
    grid_spec = pltpu.PrefetchScalarGridSpec(
        num_scalar_prefetch=1,
        grid=(B,),
        in_specs=[pl.BlockSpec((1, S, CS), lambda b, offs: (b, 0, 0))],
        out_specs=pl.BlockSpec((1, out_size, C * out_size),
                               lambda b, offs: (b, 0, 0)),
    )
    return pl.pallas_call(
        functools.partial(_crop_resize_kernel, C=C, S=S, So=out_size),
        grid_spec=grid_spec,
        out_shape=jax.ShapeDtypeStruct((B, out_size, C * out_size),
                                       jnp.float32),
        compiler_params=pltpu.CompilerParams(
            dimension_semantics=("parallel",)),   # both TCs on v7x
    )(offs, img_scs)


# ------------------------------ model glue ----------------------------------

def racnn_forward(x, params):
    B, C, S, _ = x.shape
    rescale_tl = jnp.array([1.0, 1.0, 0.5], dtype=jnp.float32)

    x_scs = _to_scs(x)

    # ---- scale 1 ----
    feat1, pred1, n1 = scale_head(x_scs, C, params["b1"], params["cls1"])
    flat1 = feat1.reshape(B, n1 * n1 * CFEAT).astype(jnp.bfloat16)  # zero-copy
    attention_s1 = apn_head(flat1, params["apn1"]) * rescale_tl
    offs1 = _crop_offsets(attention_s1 * S, float(S))
    res1_scs = crop_resize_scs(x_scs, offs1, C, RESIZED)

    # ---- scale 2 ----
    feat2, pred2, n2 = scale_head(res1_scs, C, params["b2"], params["cls2"])
    flat2 = feat2.reshape(B, n2 * n2 * CFEAT).astype(jnp.bfloat16)
    attention_s2 = apn_head(flat2, params["apn2"]) * rescale_tl
    offs2 = _crop_offsets(attention_s2 * RESIZED, float(RESIZED))
    res2_scs = crop_resize_scs(res1_scs, offs2, C, RESIZED)

    # ---- scale 3 (no APN) ----
    _feat3, pred3, _ = scale_head(res2_scs, C, params["b3"], params["cls3"])

    # module outputs (NCHW produced only here, off the critical path)
    feature_s1 = feat1.reshape(B, n1, n1, CFEAT).transpose(0, 3, 1, 2)
    feature_s2 = feat2.reshape(B, n2, n2, CFEAT).transpose(0, 3, 1, 2)
    resized_s1 = _scs_to_nchw(res1_scs, C)
    resized_s2 = _scs_to_nchw(res2_scs, C)

    return ([pred1, pred2, pred3],
            [feature_s1, feature_s2],
            [attention_s1, attention_s2],
            [resized_s1, resized_s2])


def init_params(key):
    ks = jax.random.split(key, 10)

    def w(k, shape, scale=0.05):
        # bf16 weights (MXU-native); accumulation stays f32 in-kernel.
        return (scale * jax.random.normal(k, shape)).astype(jnp.bfloat16)

    def cls_params(k):
        wc = jnp.zeros((CFEAT, NPAD), jnp.bfloat16).at[:, :NUM_CLASSES].set(
            w(k, (CFEAT, NUM_CLASSES)))
        return wc, jnp.zeros((1, NPAD), jnp.float32)

    def apn_params(k1, k2, k_in):
        # NOTE: w1 rows are in the kernel's (H, W, C) feature-flatten order; a
        # PyTorch checkpoint ((C, H, W) order) would need a row permutation.
        w1 = w(k1, (k_in, APN_HIDDEN))
        w2 = jnp.zeros((APN_HIDDEN, APAD), jnp.bfloat16).at[:, :3].set(
            w(k2, (APN_HIDDEN, 3)))
        return (w1, jnp.zeros((1, APN_HIDDEN), jnp.float32),
                w2, jnp.zeros((1, APAD), jnp.float32))

    pdim = 3 * PATCH * PATCH
    apn1_in = CFEAT * (IMG // PATCH) ** 2
    apn2_in = CFEAT * (RESIZED // PATCH) ** 2
    return {
        "b1": (w(ks[0], (pdim, CFEAT)), jnp.zeros((1, CFEAT), jnp.float32)),
        "b2": (w(ks[1], (pdim, CFEAT)), jnp.zeros((1, CFEAT), jnp.float32)),
        "b3": (w(ks[2], (pdim, CFEAT)), jnp.zeros((1, CFEAT), jnp.float32)),
        "cls1": cls_params(ks[3]),
        "cls2": cls_params(ks[4]),
        "cls3": cls_params(ks[5]),
        "apn1": apn_params(ks[6], ks[7], apn1_in),
        "apn2": apn_params(ks[8], ks[9], apn2_in),
    }


if __name__ == "__main__":
    key = jax.random.PRNGKey(0)
    kx, kp = jax.random.split(key)
    x = jax.random.normal(kx, (BATCH, 3, IMG, IMG), dtype=jnp.float32)
    params = init_params(kp)

    outputs = jax.jit(racnn_forward)(x, params)
    outputs = jax.block_until_ready(outputs)

    preds, feats, attens, resized = outputs
    assert preds[0].shape == (BATCH, NUM_CLASSES)
    assert preds[1].shape == (BATCH, NUM_CLASSES)
    assert preds[2].shape == (BATCH, NUM_CLASSES)
    assert feats[0].shape == (BATCH, CFEAT, IMG // PATCH, IMG // PATCH)
    assert feats[1].shape == (BATCH, CFEAT, RESIZED // PATCH, RESIZED // PATCH)
    assert attens[0].shape == (BATCH, 3)
    assert attens[1].shape == (BATCH, 3)
    assert resized[0].shape == (BATCH, 3, RESIZED, RESIZED)
    assert resized[1].shape == (BATCH, 3, RESIZED, RESIZED)
    assert bool(jnp.all(jnp.isfinite(preds[0])))
    print("KERNEL_OK")
</pallas_src>

<mosaic_0001>
module attributes {stable_mosaic.version = 11 : i64} {
  func.func @_scale_head_kernel(%arg0: memref<128x192xbf16, #tpu.memory_space<vmem>>, %arg1: memref<192x32xbf16, #tpu.memory_space<vmem>>, %arg2: memref<1x32xf32, #tpu.memory_space<vmem>>, %arg3: memref<32x128xbf16, #tpu.memory_space<vmem>>, %arg4: memref<1x128xf32, #tpu.memory_space<vmem>>, %arg5: memref<128x32xf32, #tpu.memory_space<vmem>>, %arg6: memref<2x128xf32, #tpu.memory_space<vmem>>) attributes {dimension_semantics = [], scalar_prefetch = 0 : i64, scratch_operands = 0 : i64, tpu.core_type = #tpu.core_type<tc>} {
    %c0 = arith.constant 0 : index
    %c0_0 = arith.constant 0 : index
    %0 = vector.load %arg0[%c0, %c0_0] : memref<128x192xbf16, #tpu.memory_space<vmem>>, vector<128x192xbf16>
    %c0_1 = arith.constant 0 : index
    %c0_2 = arith.constant 0 : index
    %1 = vector.load %arg1[%c0_1, %c0_2] : memref<192x32xbf16, #tpu.memory_space<vmem>>, vector<192x32xbf16>
    %cst = arith.constant dense<0.000000e+00> : vector<128x32xf32>
    %2 = tpu.matmul %0, %1, %cst {dimension_numbers = #tpu.dot_dimension_numbers<[1], [0], [0], [1], [0, 0, 1, 1], [], []>} : vector<128x192xbf16>, vector<192x32xbf16>, vector<128x32xf32> -> vector<128x32xf32>
    %c0_3 = arith.constant 0 : index
    %c0_4 = arith.constant 0 : index
    %3 = vector.load %arg2[%c0_3, %c0_4] : memref<1x32xf32, #tpu.memory_space<vmem>>, vector<1x32xf32>
    %4 = vector.broadcast %3 : vector<1x32xf32> to vector<128x32xf32>
    %5 = arith.addf %2, %4 : vector<128x32xf32>
    %cst_5 = arith.constant 0.000000e+00 : f32
    %cst_6 = arith.constant 6.000000e+00 : f32
    %6 = vector.broadcast %cst_5 : f32 to vector<128x32xf32>
    %7 = arith.maximumf %6, %5 : vector<128x32xf32>
    %8 = vector.broadcast %cst_6 : f32 to vector<128x32xf32>
    %9 = arith.minimumf %8, %7 : vector<128x32xf32>
    %c0_7 = arith.constant 0 : index
    %c0_8 = arith.constant 0 : index
    %10 = vector.load %arg5[%c0_7, %c0_8] : memref<128x32xf32, #tpu.memory_space<vmem>>, vector<128x32xf32>
    tpu.vector_store %arg5[%c0_7, %c0_8], %9 {strides = array<i32>} : memref<128x32xf32, #tpu.memory_space<vmem>>, vector<128x32xf32>,
    %11 = vector.extract_strided_slice %9 {offsets = [0, 0], sizes = [64, 32], strides = [1, 1]} : vector<128x32xf32> to vector<64x32xf32>
    %cst_9 = arith.constant dense<0.000000e+00> : vector<32xf32>
    %12 = vector.multi_reduction <add>, %11, %cst_9 [0] : vector<64x32xf32> to vector<32xf32>
    %13 = vector.shape_cast %12 : vector<32xf32> to vector<1x32xf32>
    %cst_10 = arith.constant 6.400000e+01 : f32
    %14 = vector.broadcast %cst_10 : f32 to vector<1x32xf32>
    %15 = arith.divf %13, %14 : vector<1x32xf32>
    %16 = vector.extract_strided_slice %9 {offsets = [64, 0], sizes = [64, 32], strides = [1, 1]} : vector<128x32xf32> to vector<64x32xf32>
    %cst_11 = arith.constant dense<0.000000e+00> : vector<32xf32>
    %17 = vector.multi_reduction <add>, %16, %cst_11 [0] : vector<64x32xf32> to vector<32xf32>
    %18 = vector.shape_cast %17 : vector<32xf32> to vector<1x32xf32>
    %cst_12 = arith.constant 6.400000e+01 : f32
    %19 = vector.broadcast %cst_12 : f32 to vector<1x32xf32>
    %20 = arith.divf %18, %19 : vector<1x32xf32>
    %21 = tpu.concatenate %15, %20 in 0 : vector<1x32xf32>, vector<1x32xf32> -> vector<2x32xf32>
    %22 = arith.truncf %21 : vector<2x32xf32> to vector<2x32xbf16>
    %c0_13 = arith.constant 0 : index
    %c0_14 = arith.constant 0 : index
    %23 = vector.load %arg3[%c0_13, %c0_14] : memref<32x128xbf16, #tpu.memory_space<vmem>>, vector<32x128xbf16>
    %cst_15 = arith.constant dense<0.000000e+00> : vector<2x128xf32>
    %24 = tpu.matmul %22, %23, %cst_15 {dimension_numbers = #tpu.dot_dimension_numbers<[1], [0], [0], [1], [0, 0, 1, 1], [], []>} : vector<2x32xbf16>, vector<32x128xbf16>, vector<2x128xf32> -> vector<2x128xf32>
    %c0_16 = arith.constant 0 : index
    %c0_17 = arith.constant 0 : index
    %25 = vector.load %arg4[%c0_16, %c0_17] : memref<1x128xf32, #tpu.memory_space<vmem>>, vector<1x128xf32>
    %26 = vector.broadcast %25 : vector<1x128xf32> to vector<2x128xf32>
    %27 = arith.addf %24, %26 : vector<2x128xf32>
    %c0_18 = arith.constant 0 : index
    %c0_19 = arith.constant 0 : index
    %28 = vector.load %arg6[%c0_18, %c0_19] : memref<2x128xf32, #tpu.memory_space<vmem>>, vector<2x128xf32>
    tpu.vector_store %arg6[%c0_18, %c0_19], %27 {strides = array<i32>} : memref<2x128xf32, #tpu.memory_space<vmem>>, vector<2x128xf32>,
    return
  }
}

module attributes {stable_mosaic.version = 11 : i64} {
  func.func @_apn_kernel(%arg0: memref<2x2048xbf16, #tpu.memory_space<vmem>>, %arg1: memref<2048x64xbf16, #tpu.memory_space<vmem>>, %arg2: memref<1x64xf32, #tpu.memory_space<vmem>>, %arg3: memref<64x128xbf16, #tpu.memory_space<vmem>>, %arg4: memref<1x128xf32, #tpu.memory_space<vmem>>, %arg5: memref<2x128xf32, #tpu.memory_space<vmem>>) attributes {dimension_semantics = [], scalar_prefetch = 0 : i64, scratch_operands = 0 : i64, tpu.core_type = #tpu.core_type<tc>} {
    %c0 = arith.constant 0 : index
    %c0_0 = arith.constant 0 : index
    %0 = vector.load %arg0[%c0, %c0_0] : memref<2x2048xbf16, #tpu.memory_space<vmem>>, vector<2x2048xbf16>
    %c0_1 = arith.constant 0 : index
    %c0_2 = arith.constant 0 : index
    %1 = vector.load %arg1[%c0_1, %c0_2] : memref<2048x64xbf16, #tpu.memory_space<vmem>>, vector<2048x64xbf16>
    %cst = arith.constant dense<0.000000e+00> : vector<2x64xf32>
    %2 = tpu.matmul %0, %1, %cst {dimension_numbers = #tpu.dot_dimension_numbers<[1], [0], [0], [1], [0, 0, 1, 1], [], []>} : vector<2x2048xbf16>, vector<2048x64xbf16>, vector<2x64xf32> -> vector<2x64xf32>
    %c0_3 = arith.constant 0 : index
    %c0_4 = arith.constant 0 : index
    %3 = vector.load %arg2[%c0_3, %c0_4] : memref<1x64xf32, #tpu.memory_space<vmem>>, vector<1x64xf32>
    %4 = vector.broadcast %3 : vector<1x64xf32> to vector<2x64xf32>
    %5 = arith.addf %2, %4 : vector<2x64xf32>
    %6 = math.tanh %5 : vector<2x64xf32>
    %7 = arith.truncf %6 : vector<2x64xf32> to vector<2x64xbf16>
    %c0_5 = arith.constant 0 : index
    %c0_6 = arith.constant 0 : index
    %8 = vector.load %arg3[%c0_5, %c0_6] : memref<64x128xbf16, #tpu.memory_space<vmem>>, vector<64x128xbf16>
    %cst_7 = arith.constant dense<0.000000e+00> : vector<2x128xf32>
    %9 = tpu.matmul %7, %8, %cst_7 {dimension_numbers = #tpu.dot_dimension_numbers<[1], [0], [0], [1], [0, 0, 1, 1], [], []>} : vector<2x64xbf16>, vector<64x128xbf16>, vector<2x128xf32> -> vector<2x128xf32>
    %c0_8 = arith.constant 0 : index
    %c0_9 = arith.constant 0 : index
    %10 = vector.load %arg4[%c0_8, %c0_9] : memref<1x128xf32, #tpu.memory_space<vmem>>, vector<1x128xf32>
    %11 = vector.broadcast %10 : vector<1x128xf32> to vector<2x128xf32>
    %12 = arith.addf %9, %11 : vector<2x128xf32>
    %cst_10 = arith.constant 0.000000e+00 : f32
    %13 = vector.broadcast %cst_10 : f32 to vector<2x128xf32>
    %14 = arith.subf %13, %12 : vector<2x128xf32>
    %15 = math.exp %14 : vector<2x128xf32>
    %cst_11 = arith.constant 1.000000e+00 : f32
    %16 = vector.broadcast %cst_11 : f32 to vector<2x128xf32>
    %17 = arith.addf %16, %15 : vector<2x128xf32>
    %cst_12 = arith.constant 1.000000e+00 : f32
    %18 = vector.broadcast %cst_12 : f32 to vector<2x128xf32>
    %19 = arith.divf %18, %17 : vector<2x128xf32>
    %c0_13 = arith.constant 0 : index
    %c0_14 = arith.constant 0 : index
    %20 = vector.load %arg5[%c0_13, %c0_14] : memref<2x128xf32, #tpu.memory_space<vmem>>, vector<2x128xf32>
    tpu.vector_store %arg5[%c0_13, %c0_14], %19 {strides = array<i32>} : memref<2x128xf32, #tpu.memory_space<vmem>>, vector<2x128xf32>,
    return
  }
}

module attributes {stable_mosaic.version = 11 : i64} {
  func.func @_crop_resize_kernel(%arg0: i32, %arg1: memref<8xi32, #tpu.memory_space<smem>>, %arg2: memref<1x64x192xf32, #tpu.memory_space<vmem>>, %arg3: memref<1x32x96xf32, #tpu.memory_space<vmem>>) attributes {dimension_semantics = [#tpu.dimension_semantics<parallel>], iteration_bounds = array<i64: 2>, scalar_prefetch = 1 : i64, scratch_operands = 0 : i64, tpu.core_type = #tpu.core_type<tc>, window_params = [{transform_indices = @transform_0, window_bounds = array<i64: 1, 64, 192>}, {transform_indices = @transform_1, window_bounds = array<i64: 1, 32, 96>}]} {
    %c4_i32 = arith.constant 4 : i32
    %0 = arith.muli %c4_i32, %arg0 : i32
    %c0_i32 = arith.constant 0 : i32
    %1 = arith.addi %0, %c0_i32 : i32
    %2 = arith.index_cast %1 : i32 to index
    %3 = memref.load %arg1[%2] : memref<8xi32, #tpu.memory_space<smem>>
    %4 = arith.sitofp %3 : i32 to f32
    %c4_i32_0 = arith.constant 4 : i32
    %5 = arith.muli %c4_i32_0, %arg0 : i32
    %c1_i32 = arith.constant 1 : i32
    %6 = arith.addi %5, %c1_i32 : i32
    %7 = arith.index_cast %6 : i32 to index
    %8 = memref.load %arg1[%7] : memref<8xi32, #tpu.memory_space<smem>>
    %9 = arith.sitofp %8 : i32 to f32
    %c4_i32_1 = arith.constant 4 : i32
    %10 = arith.muli %c4_i32_1, %arg0 : i32
    %c2_i32 = arith.constant 2 : i32
    %11 = arith.addi %10, %c2_i32 : i32
    %12 = arith.index_cast %11 : i32 to index
    %13 = memref.load %arg1[%12] : memref<8xi32, #tpu.memory_space<smem>>
    %14 = arith.sitofp %13 : i32 to f32
    %c4_i32_2 = arith.constant 4 : i32
    %15 = arith.muli %c4_i32_2, %arg0 : i32
    %c3_i32 = arith.constant 3 : i32
    %16 = arith.addi %15, %c3_i32 : i32
    %17 = arith.index_cast %16 : i32 to index
    %18 = memref.load %arg1[%17] : memref<8xi32, #tpu.memory_space<smem>>
    %19 = arith.sitofp %18 : i32 to f32
    %20 = tpu.iota {dimensions = array<i32: 1>} : vector<1x64xi32>
    %21 = arith.sitofp %20 : vector<1x64xi32> to vector<1x64xf32>
    %22 = vector.broadcast %4 : f32 to vector<1x64xf32>
    %23 = arith.subf %21, %22 : vector<1x64xf32>
    %cst = arith.constant -1.000000e+01 : f32
    %24 = vector.broadcast %cst : f32 to vector<1x64xf32>
    %25 = arith.mulf %24, %23 : vector<1x64xf32>
    %26 = math.exp %25 : vector<1x64xf32>
    %cst_3 = arith.constant 1.000000e+00 : f32
    %27 = vector.broadcast %cst_3 : f32 to vector<1x64xf32>
    %28 = arith.addf %27, %26 : vector<1x64xf32>
    %cst_4 = arith.constant 1.000000e+00 : f32
    %29 = vector.broadcast %cst_4 : f32 to vector<1x64xf32>
    %30 = arith.divf %29, %28 : vector<1x64xf32>
    %31 = vector.broadcast %9 : f32 to vector<1x64xf32>
    %32 = arith.subf %21, %31 : vector<1x64xf32>
    %cst_5 = arith.constant -1.000000e+01 : f32
    %33 = vector.broadcast %cst_5 : f32 to vector<1x64xf32>
    %34 = arith.mulf %33, %32 : vector<1x64xf32>
    %35 = math.exp %34 : vector<1x64xf32>
    %cst_6 = arith.constant 1.000000e+00 : f32
    %36 = vector.broadcast %cst_6 : f32 to vector<1x64xf32>
    %37 = arith.addf %36, %35 : vector<1x64xf32>
    %cst_7 = arith.constant 1.000000e+00 : f32
    %38 = vector.broadcast %cst_7 : f32 to vector<1x64xf32>
    %39 = arith.divf %38, %37 : vector<1x64xf32>
    %40 = arith.subf %30, %39 : vector<1x64xf32>
    %41 = tpu.iota {dimensions = array<i32: 0>} : vector<64x1xi32>
    %42 = arith.sitofp %41 : vector<64x1xi32> to vector<64x1xf32>
    %43 = vector.broadcast %14 : f32 to vector<64x1xf32>
    %44 = arith.subf %42, %43 : vector<64x1xf32>
    %cst_8 = arith.constant -1.000000e+01 : f32
    %45 = vector.broadcast %cst_8 : f32 to vector<64x1xf32>
    %46 = arith.mulf %45, %44 : vector<64x1xf32>
    %47 = math.exp %46 : vector<64x1xf32>
    %cst_9 = arith.constant 1.000000e+00 : f32
    %48 = vector.broadcast %cst_9 : f32 to vector<64x1xf32>
    %49 = arith.addf %48, %47 : vector<64x1xf32>
    %cst_10 = arith.constant 1.000000e+00 : f32
    %50 = vector.broadcast %cst_10 : f32 to vector<64x1xf32>
    %51 = arith.divf %50, %49 : vector<64x1xf32>
    %52 = vector.broadcast %19 : f32 to vector<64x1xf32>
    %53 = arith.subf %42, %52 : vector<64x1xf32>
    %cst_11 = arith.constant -1.000000e+01 : f32
    %54 = vector.broadcast %cst_11 : f32 to vector<64x1xf32>
    %55 = arith.mulf %54, %53 : vector<64x1xf32>
    %56 = math.exp %55 : vector<64x1xf32>
    %cst_12 = arith.constant 1.000000e+00 : f32
    %57 = vector.broadcast %cst_12 : f32 to vector<64x1xf32>
    %58 = arith.addf %57, %56 : vector<64x1xf32>
    %cst_13 = arith.constant 1.000000e+00 : f32
    %59 = vector.broadcast %cst_13 : f32 to vector<64x1xf32>
    %60 = arith.divf %59, %58 : vector<64x1xf32>
    %61 = arith.subf %51, %60 : vector<64x1xf32>
    %62 = tpu.iota {dimensions = array<i32: 0>} : vector<32x64xi32>
    %63 = arith.sitofp %62 : vector<32x64xi32> to vector<32x64xf32>
    %64 = tpu.iota {dimensions = array<i32: 1>} : vector<32x64xi32>
    %65 = arith.sitofp %64 : vector<32x64xi32> to vector<32x64xf32>
    %66 = arith.subf %9, %4 : f32
    %cst_14 = arith.constant 1.000000e+00 : f32
    %67 = arith.subf %66, %cst_14 : f32
    %cst_15 = arith.constant 0.0322580636 : f32
    %68 = arith.mulf %67, %cst_15 : f32
    %69 = vector.broadcast %68 : f32 to vector<32x64xf32>
    %70 = arith.mulf %63, %69 : vector<32x64xf32>
    %71 = vector.broadcast %4 : f32 to vector<32x64xf32>
    %72 = arith.addf %71, %70 : vector<32x64xf32>
    %73 = arith.subf %72, %65 : vector<32x64xf32>
    %74 = math.absf %73 : vector<32x64xf32>
    %cst_16 = arith.constant 1.000000e+00 : f32
    %75 = vector.broadcast %cst_16 : f32 to vector<32x64xf32>
    %76 = arith.subf %75, %74 : vector<32x64xf32>
    %cst_17 = arith.constant 0.000000e+00 : f32
    %77 = vector.broadcast %cst_17 : f32 to vector<32x64xf32>
    %78 = arith.maximumf %77, %76 : vector<32x64xf32>
    %79 = vector.broadcast %40 : vector<1x64xf32> to vector<32x64xf32>
    %80 = arith.mulf %78, %79 : vector<32x64xf32>
    %81 = tpu.iota {dimensions = array<i32: 0>} : vector<64x32xi32>
    %82 = arith.sitofp %81 : vector<64x32xi32> to vector<64x32xf32>
    %83 = tpu.iota {dimensions = array<i32: 1>} : vector<64x32xi32>
    %84 = arith.sitofp %83 : vector<64x32xi32> to vector<64x32xf32>
    %85 = arith.subf %19, %14 : f32
    %cst_18 = arith.constant 1.000000e+00 : f32
    %86 = arith.subf %85, %cst_18 : f32
    %cst_19 = arith.constant 0.0322580636 : f32
    %87 = arith.mulf %86, %cst_19 : f32
    %88 = vector.broadcast %87 : f32 to vector<64x32xf32>
    %89 = arith.mulf %84, %88 : vector<64x32xf32>
    %90 = vector.broadcast %14 : f32 to vector<64x32xf32>
    %91 = arith.addf %90, %89 : vector<64x32xf32>
    %92 = arith.subf %91, %82 : vector<64x32xf32>
    %93 = math.absf %92 : vector<64x32xf32>
    %cst_20 = arith.constant 1.000000e+00 : f32
    %94 = vector.broadcast %cst_20 : f32 to vector<64x32xf32>
    %95 = arith.subf %94, %93 : vector<64x32xf32>
    %cst_21 = arith.constant 0.000000e+00 : f32
    %96 = vector.broadcast %cst_21 : f32 to vector<64x32xf32>
    %97 = arith.maximumf %96, %95 : vector<64x32xf32>
    %98 = vector.broadcast %61 : vector<64x1xf32> to vector<64x32xf32>
    %99 = arith.mulf %98, %97 : vector<64x32xf32>
    %c0 = arith.constant 0 : index
    %c0_22 = arith.constant 0 : index
    %c0_23 = arith.constant 0 : index
    %100 = vector.load %arg2[%c0, %c0_22, %c0_23] : memref<1x64x192xf32, #tpu.memory_space<vmem>>, vector<1x64x192xf32>
    %101 = vector.shape_cast %100 : vector<1x64x192xf32> to vector<64x192xf32>
    %cst_24 = arith.constant dense<0.000000e+00> : vector<32x192xf32>
    %102 = tpu.matmul %80, %101, %cst_24 {dimension_numbers = #tpu.dot_dimension_numbers<[1], [0], [0], [1], [0, 0, 1, 1], [], []>} : vector<32x64xf32>, vector<64x192xf32>, vector<32x192xf32> -> vector<32x192xf32>
    %103 = vector.extract_strided_slice %102 {offsets = [0, 0], sizes = [32, 64], strides = [1, 1]} : vector<32x192xf32> to vector<32x64xf32>
    %cst_25 = arith.constant dense<0.000000e+00> : vector<32x32xf32>
    %104 = tpu.matmul %103, %99, %cst_25 {dimension_numbers = #tpu.dot_dimension_numbers<[1], [0], [0], [1], [0, 0, 1, 1], [], []>} : vector<32x64xf32>, vector<64x32xf32>, vector<32x32xf32> -> vector<32x32xf32>
    %105 = vector.extract_strided_slice %102 {offsets = [0, 64], sizes = [32, 64], strides = [1, 1]} : vector<32x192xf32> to vector<32x64xf32>
    %cst_26 = arith.constant dense<0.000000e+00> : vector<32x32xf32>
    %106 = tpu.matmul %105, %99, %cst_26 {dimension_numbers = #tpu.dot_dimension_numbers<[1], [0], [0], [1], [0, 0, 1, 1], [], []>} : vector<32x64xf32>, vector<64x32xf32>, vector<32x32xf32> -> vector<32x32xf32>
    %107 = vector.extract_strided_slice %102 {offsets = [0, 128], sizes = [32, 64], strides = [1, 1]} : vector<32x192xf32> to vector<32x64xf32>
    %cst_27 = arith.constant dense<0.000000e+00> : vector<32x32xf32>
    %108 = tpu.matmul %107, %99, %cst_27 {dimension_numbers = #tpu.dot_dimension_numbers<[1], [0], [0], [1], [0, 0, 1, 1], [], []>} : vector<32x64xf32>, vector<64x32xf32>, vector<32x32xf32> -> vector<32x32xf32>
    %109 = tpu.concatenate %104, %106, %108 in 1 : vector<32x32xf32>, vector<32x32xf32>, vector<32x32xf32> -> vector<32x96xf32>
    %c0_28 = arith.constant 0 : index
    %c0_29 = arith.constant 0 : index
    %c0_30 = arith.constant 0 : index
    %110 = vector.load %arg3[%c0_28, %c0_29, %c0_30] : memref<1x32x96xf32, #tpu.memory_space<vmem>>, vector<1x32x96xf32>
    %111 = vector.shape_cast %110 : vector<1x32x96xf32> to vector<32x96xf32>
    %112 = vector.shape_cast %109 : vector<32x96xf32> to vector<1x32x96xf32>
    tpu.vector_store %arg3[%c0_28, %c0_29, %c0_30], %112 {strides = array<i32>} : memref<1x32x96xf32, #tpu.memory_space<vmem>>, vector<1x32x96xf32>,
    return
  }
  func.func @transform_0(%arg0: i32, %arg1: memref<8xi32, #tpu.memory_space<smem>>) -> (i32, i32, i32) {
    %c0_i32 = arith.constant 0 : i32
    %c0_i32_0 = arith.constant 0 : i32
    %c0_i32_1 = arith.constant 0 : i32
    return %arg0, %c0_i32, %c0_i32_0 : i32, i32, i32
  }
  func.func @transform_1(%arg0: i32, %arg1: memref<8xi32, #tpu.memory_space<smem>>) -> (i32, i32, i32) {
    %c0_i32 = arith.constant 0 : i32
    %c0_i32_0 = arith.constant 0 : i32
    %c0_i32_1 = arith.constant 0 : i32
    return %arg0, %c0_i32, %c0_i32_0 : i32, i32, i32
  }
}

module attributes {stable_mosaic.version = 11 : i64} {
  func.func @_scale_head_kernel(%arg0: memref<32x192xbf16, #tpu.memory_space<vmem>>, %arg1: memref<192x32xbf16, #tpu.memory_space<vmem>>, %arg2: memref<1x32xf32, #tpu.memory_space<vmem>>, %arg3: memref<32x128xbf16, #tpu.memory_space<vmem>>, %arg4: memref<1x128xf32, #tpu.memory_space<vmem>>, %arg5: memref<32x32xf32, #tpu.memory_space<vmem>>, %arg6: memref<2x128xf32, #tpu.memory_space<vmem>>) attributes {dimension_semantics = [], scalar_prefetch = 0 : i64, scratch_operands = 0 : i64, tpu.core_type = #tpu.core_type<tc>} {
    %c0 = arith.constant 0 : index
    %c0_0 = arith.constant 0 : index
    %0 = vector.load %arg0[%c0, %c0_0] : memref<32x192xbf16, #tpu.memory_space<vmem>>, vector<32x192xbf16>
    %c0_1 = arith.constant 0 : index
    %c0_2 = arith.constant 0 : index
    %1 = vector.load %arg1[%c0_1, %c0_2] : memref<192x32xbf16, #tpu.memory_space<vmem>>, vector<192x32xbf16>
    %cst = arith.constant dense<0.000000e+00> : vector<32x32xf32>
    %2 = tpu.matmul %0, %1, %cst {dimension_numbers = #tpu.dot_dimension_numbers<[1], [0], [0], [1], [0, 0, 1, 1], [], []>} : vector<32x192xbf16>, vector<192x32xbf16>, vector<32x32xf32> -> vector<32x32xf32>
    %c0_3 = arith.constant 0 : index
    %c0_4 = arith.constant 0 : index
    %3 = vector.load %arg2[%c0_3, %c0_4] : memref<1x32xf32, #tpu.memory_space<vmem>>, vector<1x32xf32>
    %4 = vector.broadcast %3 : vector<1x32xf32> to vector<32x32xf32>
    %5 = arith.addf %2, %4 : vector<32x32xf32>
    %cst_5 = arith.constant 0.000000e+00 : f32
    %cst_6 = arith.constant 6.000000e+00 : f32
    %6 = vector.broadcast %cst_5 : f32 to vector<32x32xf32>
    %7 = arith.maximumf %6, %5 : vector<32x32xf32>
    %8 = vector.broadcast %cst_6 : f32 to vector<32x32xf32>
    %9 = arith.minimumf %8, %7 : vector<32x32xf32>
    %c0_7 = arith.constant 0 : index
    %c0_8 = arith.constant 0 : index
    %10 = vector.load %arg5[%c0_7, %c0_8] : memref<32x32xf32, #tpu.memory_space<vmem>>, vector<32x32xf32>
    tpu.vector_store %arg5[%c0_7, %c0_8], %9 {strides = array<i32>} : memref<32x32xf32, #tpu.memory_space<vmem>>, vector<32x32xf32>,
    %11 = vector.extract_strided_slice %9 {offsets = [0, 0], sizes = [16, 32], strides = [1, 1]} : vector<32x32xf32> to vector<16x32xf32>
    %cst_9 = arith.constant dense<0.000000e+00> : vector<32xf32>
    %12 = vector.multi_reduction <add>, %11, %cst_9 [0] : vector<16x32xf32> to vector<32xf32>
    %13 = vector.shape_cast %12 : vector<32xf32> to vector<1x32xf32>
    %cst_10 = arith.constant 1.600000e+01 : f32
    %14 = vector.broadcast %cst_10 : f32 to vector<1x32xf32>
    %15 = arith.divf %13, %14 : vector<1x32xf32>
    %16 = vector.extract_strided_slice %9 {offsets = [16, 0], sizes = [16, 32], strides = [1, 1]} : vector<32x32xf32> to vector<16x32xf32>
    %cst_11 = arith.constant dense<0.000000e+00> : vector<32xf32>
    %17 = vector.multi_reduction <add>, %16, %cst_11 [0] : vector<16x32xf32> to vector<32xf32>
    %18 = vector.shape_cast %17 : vector<32xf32> to vector<1x32xf32>
    %cst_12 = arith.constant 1.600000e+01 : f32
    %19 = vector.broadcast %cst_12 : f32 to vector<1x32xf32>
    %20 = arith.divf %18, %19 : vector<1x32xf32>
    %21 = tpu.concatenate %15, %20 in 0 : vector<1x32xf32>, vector<1x32xf32> -> vector<2x32xf32>
    %22 = arith.truncf %21 : vector<2x32xf32> to vector<2x32xbf16>
    %c0_13 = arith.constant 0 : index
    %c0_14 = arith.constant 0 : index
    %23 = vector.load %arg3[%c0_13, %c0_14] : memref<32x128xbf16, #tpu.memory_space<vmem>>, vector<32x128xbf16>
    %cst_15 = arith.constant dense<0.000000e+00> : vector<2x128xf32>
    %24 = tpu.matmul %22, %23, %cst_15 {dimension_numbers = #tpu.dot_dimension_numbers<[1], [0], [0], [1], [0, 0, 1, 1], [], []>} : vector<2x32xbf16>, vector<32x128xbf16>, vector<2x128xf32> -> vector<2x128xf32>
    %c0_16 = arith.constant 0 : index
    %c0_17 = arith.constant 0 : index
    %25 = vector.load %arg4[%c0_16, %c0_17] : memref<1x128xf32, #tpu.memory_space<vmem>>, vector<1x128xf32>
    %26 = vector.broadcast %25 : vector<1x128xf32> to vector<2x128xf32>
    %27 = arith.addf %24, %26 : vector<2x128xf32>
    %c0_18 = arith.constant 0 : index
    %c0_19 = arith.constant 0 : index
    %28 = vector.load %arg6[%c0_18, %c0_19] : memref<2x128xf32, #tpu.memory_space<vmem>>, vector<2x128xf32>
    tpu.vector_store %arg6[%c0_18, %c0_19], %27 {strides = array<i32>} : memref<2x128xf32, #tpu.memory_space<vmem>>, vector<2x128xf32>,
    return
  }
}

module attributes {stable_mosaic.version = 11 : i64} {
  func.func @_apn_kernel(%arg0: memref<2x512xbf16, #tpu.memory_space<vmem>>, %arg1: memref<512x64xbf16, #tpu.memory_space<vmem>>, %arg2: memref<1x64xf32, #tpu.memory_space<vmem>>, %arg3: memref<64x128xbf16, #tpu.memory_space<vmem>>, %arg4: memref<1x128xf32, #tpu.memory_space<vmem>>, %arg5: memref<2x128xf32, #tpu.memory_space<vmem>>) attributes {dimension_semantics = [], scalar_prefetch = 0 : i64, scratch_operands = 0 : i64, tpu.core_type = #tpu.core_type<tc>} {
    %c0 = arith.constant 0 : index
    %c0_0 = arith.constant 0 : index
    %0 = vector.load %arg0[%c0, %c0_0] : memref<2x512xbf16, #tpu.memory_space<vmem>>, vector<2x512xbf16>
    %c0_1 = arith.constant 0 : index
    %c0_2 = arith.constant 0 : index
    %1 = vector.load %arg1[%c0_1, %c0_2] : memref<512x64xbf16, #tpu.memory_space<vmem>>, vector<512x64xbf16>
    %cst = arith.constant dense<0.000000e+00> : vector<2x64xf32>
    %2 = tpu.matmul %0, %1, %cst {dimension_numbers = #tpu.dot_dimension_numbers<[1], [0], [0], [1], [0, 0, 1, 1], [], []>} : vector<2x512xbf16>, vector<512x64xbf16>, vector<2x64xf32> -> vector<2x64xf32>
    %c0_3 = arith.constant 0 : index
    %c0_4 = arith.constant 0 : index
    %3 = vector.load %arg2[%c0_3, %c0_4] : memref<1x64xf32, #tpu.memory_space<vmem>>, vector<1x64xf32>
    %4 = vector.broadcast %3 : vector<1x64xf32> to vector<2x64xf32>
    %5 = arith.addf %2, %4 : vector<2x64xf32>
    %6 = math.tanh %5 : vector<2x64xf32>
    %7 = arith.truncf %6 : vector<2x64xf32> to vector<2x64xbf16>
    %c0_5 = arith.constant 0 : index
    %c0_6 = arith.constant 0 : index
    %8 = vector.load %arg3[%c0_5, %c0_6] : memref<64x128xbf16, #tpu.memory_space<vmem>>, vector<64x128xbf16>
    %cst_7 = arith.constant dense<0.000000e+00> : vector<2x128xf32>
    %9 = tpu.matmul %7, %8, %cst_7 {dimension_numbers = #tpu.dot_dimension_numbers<[1], [0], [0], [1], [0, 0, 1, 1], [], []>} : vector<2x64xbf16>, vector<64x128xbf16>, vector<2x128xf32> -> vector<2x128xf32>
    %c0_8 = arith.constant 0 : index
    %c0_9 = arith.constant 0 : index
    %10 = vector.load %arg4[%c0_8, %c0_9] : memref<1x128xf32, #tpu.memory_space<vmem>>, vector<1x128xf32>
    %11 = vector.broadcast %10 : vector<1x128xf32> to vector<2x128xf32>
    %12 = arith.addf %9, %11 : vector<2x128xf32>
    %cst_10 = arith.constant 0.000000e+00 : f32
    %13 = vector.broadcast %cst_10 : f32 to vector<2x128xf32>
    %14 = arith.subf %13, %12 : vector<2x128xf32>
    %15 = math.exp %14 : vector<2x128xf32>
    %cst_11 = arith.constant 1.000000e+00 : f32
    %16 = vector.broadcast %cst_11 : f32 to vector<2x128xf32>
    %17 = arith.addf %16, %15 : vector<2x128xf32>
    %cst_12 = arith.constant 1.000000e+00 : f32
    %18 = vector.broadcast %cst_12 : f32 to vector<2x128xf32>
    %19 = arith.divf %18, %17 : vector<2x128xf32>
    %c0_13 = arith.constant 0 : index
    %c0_14 = arith.constant 0 : index
    %20 = vector.load %arg5[%c0_13, %c0_14] : memref<2x128xf32, #tpu.memory_space<vmem>>, vector<2x128xf32>
    tpu.vector_store %arg5[%c0_13, %c0_14], %19 {strides = array<i32>} : memref<2x128xf32, #tpu.memory_space<vmem>>, vector<2x128xf32>,
    return
  }
}

module attributes {stable_mosaic.version = 11 : i64} {
  func.func @_crop_resize_kernel(%arg0: i32, %arg1: memref<8xi32, #tpu.memory_space<smem>>, %arg2: memref<1x32x96xf32, #tpu.memory_space<vmem>>, %arg3: memref<1x32x96xf32, #tpu.memory_space<vmem>>) attributes {dimension_semantics = [#tpu.dimension_semantics<parallel>], iteration_bounds = array<i64: 2>, scalar_prefetch = 1 : i64, scratch_operands = 0 : i64, tpu.core_type = #tpu.core_type<tc>, window_params = [{transform_indices = @transform_0, window_bounds = array<i64: 1, 32, 96>}, {transform_indices = @transform_1, window_bounds = array<i64: 1, 32, 96>}]} {
    %c4_i32 = arith.constant 4 : i32
    %0 = arith.muli %c4_i32, %arg0 : i32
    %c0_i32 = arith.constant 0 : i32
    %1 = arith.addi %0, %c0_i32 : i32
    %2 = arith.index_cast %1 : i32 to index
    %3 = memref.load %arg1[%2] : memref<8xi32, #tpu.memory_space<smem>>
    %4 = arith.sitofp %3 : i32 to f32
    %c4_i32_0 = arith.constant 4 : i32
    %5 = arith.muli %c4_i32_0, %arg0 : i32
    %c1_i32 = arith.constant 1 : i32
    %6 = arith.addi %5, %c1_i32 : i32
    %7 = arith.index_cast %6 : i32 to index
    %8 = memref.load %arg1[%7] : memref<8xi32, #tpu.memory_space<smem>>
    %9 = arith.sitofp %8 : i32 to f32
    %c4_i32_1 = arith.constant 4 : i32
    %10 = arith.muli %c4_i32_1, %arg0 : i32
    %c2_i32 = arith.constant 2 : i32
    %11 = arith.addi %10, %c2_i32 : i32
    %12 = arith.index_cast %11 : i32 to index
    %13 = memref.load %arg1[%12] : memref<8xi32, #tpu.memory_space<smem>>
    %14 = arith.sitofp %13 : i32 to f32
    %c4_i32_2 = arith.constant 4 : i32
    %15 = arith.muli %c4_i32_2, %arg0 : i32
    %c3_i32 = arith.constant 3 : i32
    %16 = arith.addi %15, %c3_i32 : i32
    %17 = arith.index_cast %16 : i32 to index
    %18 = memref.load %arg1[%17] : memref<8xi32, #tpu.memory_space<smem>>
    %19 = arith.sitofp %18 : i32 to f32
    %20 = tpu.iota {dimensions = array<i32: 1>} : vector<1x32xi32>
    %21 = arith.sitofp %20 : vector<1x32xi32> to vector<1x32xf32>
    %22 = vector.broadcast %4 : f32 to vector<1x32xf32>
    %23 = arith.subf %21, %22 : vector<1x32xf32>
    %cst = arith.constant -1.000000e+01 : f32
    %24 = vector.broadcast %cst : f32 to vector<1x32xf32>
    %25 = arith.mulf %24, %23 : vector<1x32xf32>
    %26 = math.exp %25 : vector<1x32xf32>
    %cst_3 = arith.constant 1.000000e+00 : f32
    %27 = vector.broadcast %cst_3 : f32 to vector<1x32xf32>
    %28 = arith.addf %27, %26 : vector<1x32xf32>
    %cst_4 = arith.constant 1.000000e+00 : f32
    %29 = vector.broadcast %cst_4 : f32 to vector<1x32xf32>
    %30 = arith.divf %29, %28 : vector<1x32xf32>
    %31 = vector.broadcast %9 : f32 to vector<1x32xf32>
    %32 = arith.subf %21, %31 : vector<1x32xf32>
    %cst_5 = arith.constant -1.000000e+01 : f32
    %33 = vector.broadcast %cst_5 : f32 to vector<1x32xf32>
    %34 = arith.mulf %33, %32 : vector<1x32xf32>
    %35 = math.exp %34 : vector<1x32xf32>
    %cst_6 = arith.constant 1.000000e+00 : f32
    %36 = vector.broadcast %cst_6 : f32 to vector<1x32xf32>
    %37 = arith.addf %36, %35 : vector<1x32xf32>
    %cst_7 = arith.constant 1.000000e+00 : f32
    %38 = vector.broadcast %cst_7 : f32 to vector<1x32xf32>
    %39 = arith.divf %38, %37 : vector<1x32xf32>
    %40 = arith.subf %30, %39 : vector<1x32xf32>
    %41 = tpu.iota {dimensions = array<i32: 0>} : vector<32x1xi32>
    %42 = arith.sitofp %41 : vector<32x1xi32> to vector<32x1xf32>
    %43 = vector.broadcast %14 : f32 to vector<32x1xf32>
    %44 = arith.subf %42, %43 : vector<32x1xf32>
    %cst_8 = arith.constant -1.000000e+01 : f32
    %45 = vector.broadcast %cst_8 : f32 to vector<32x1xf32>
    %46 = arith.mulf %45, %44 : vector<32x1xf32>
    %47 = math.exp %46 : vector<32x1xf32>
    %cst_9 = arith.constant 1.000000e+00 : f32
    %48 = vector.broadcast %cst_9 : f32 to vector<32x1xf32>
    %49 = arith.addf %48, %47 : vector<32x1xf32>
    %cst_10 = arith.constant 1.000000e+00 : f32
    %50 = vector.broadcast %cst_10 : f32 to vector<32x1xf32>
    %51 = arith.divf %50, %49 : vector<32x1xf32>
    %52 = vector.broadcast %19 : f32 to vector<32x1xf32>
    %53 = arith.subf %42, %52 : vector<32x1xf32>
    %cst_11 = arith.constant -1.000000e+01 : f32
    %54 = vector.broadcast %cst_11 : f32 to vector<32x1xf32>
    %55 = arith.mulf %54, %53 : vector<32x1xf32>
    %56 = math.exp %55 : vector<32x1xf32>
    %cst_12 = arith.constant 1.000000e+00 : f32
    %57 = vector.broadcast %cst_12 : f32 to vector<32x1xf32>
    %58 = arith.addf %57, %56 : vector<32x1xf32>
    %cst_13 = arith.constant 1.000000e+00 : f32
    %59 = vector.broadcast %cst_13 : f32 to vector<32x1xf32>
    %60 = arith.divf %59, %58 : vector<32x1xf32>
    %61 = arith.subf %51, %60 : vector<32x1xf32>
    %62 = tpu.iota {dimensions = array<i32: 0>} : vector<32x32xi32>
    %63 = arith.sitofp %62 : vector<32x32xi32> to vector<32x32xf32>
    %64 = tpu.iota {dimensions = array<i32: 1>} : vector<32x32xi32>
    %65 = arith.sitofp %64 : vector<32x32xi32> to vector<32x32xf32>
    %66 = arith.subf %9, %4 : f32
    %cst_14 = arith.constant 1.000000e+00 : f32
    %67 = arith.subf %66, %cst_14 : f32
    %cst_15 = arith.constant 0.0322580636 : f32
    %68 = arith.mulf %67, %cst_15 : f32
    %69 = vector.broadcast %68 : f32 to vector<32x32xf32>
    %70 = arith.mulf %63, %69 : vector<32x32xf32>
    %71 = vector.broadcast %4 : f32 to vector<32x32xf32>
    %72 = arith.addf %71, %70 : vector<32x32xf32>
    %73 = arith.subf %72, %65 : vector<32x32xf32>
    %74 = math.absf %73 : vector<32x32xf32>
    %cst_16 = arith.constant 1.000000e+00 : f32
    %75 = vector.broadcast %cst_16 : f32 to vector<32x32xf32>
    %76 = arith.subf %75, %74 : vector<32x32xf32>
    %cst_17 = arith.constant 0.000000e+00 : f32
    %77 = vector.broadcast %cst_17 : f32 to vector<32x32xf32>
    %78 = arith.maximumf %77, %76 : vector<32x32xf32>
    %79 = vector.broadcast %40 : vector<1x32xf32> to vector<32x32xf32>
    %80 = arith.mulf %78, %79 : vector<32x32xf32>
    %81 = tpu.iota {dimensions = array<i32: 0>} : vector<32x32xi32>
    %82 = arith.sitofp %81 : vector<32x32xi32> to vector<32x32xf32>
    %83 = tpu.iota {dimensions = array<i32: 1>} : vector<32x32xi32>
    %84 = arith.sitofp %83 : vector<32x32xi32> to vector<32x32xf32>
    %85 = arith.subf %19, %14 : f32
    %cst_18 = arith.constant 1.000000e+00 : f32
    %86 = arith.subf %85, %cst_18 : f32
    %cst_19 = arith.constant 0.0322580636 : f32
    %87 = arith.mulf %86, %cst_19 : f32
    %88 = vector.broadcast %87 : f32 to vector<32x32xf32>
    %89 = arith.mulf %84, %88 : vector<32x32xf32>
    %90 = vector.broadcast %14 : f32 to vector<32x32xf32>
    %91 = arith.addf %90, %89 : vector<32x32xf32>
    %92 = arith.subf %91, %82 : vector<32x32xf32>
    %93 = math.absf %92 : vector<32x32xf32>
    %cst_20 = arith.constant 1.000000e+00 : f32
    %94 = vector.broadcast %cst_20 : f32 to vector<32x32xf32>
    %95 = arith.subf %94, %93 : vector<32x32xf32>
    %cst_21 = arith.constant 0.000000e+00 : f32
    %96 = vector.broadcast %cst_21 : f32 to vector<32x32xf32>
    %97 = arith.maximumf %96, %95 : vector<32x32xf32>
    %98 = vector.broadcast %61 : vector<32x1xf32> to vector<32x32xf32>
    %99 = arith.mulf %98, %97 : vector<32x32xf32>
    %c0 = arith.constant 0 : index
    %c0_22 = arith.constant 0 : index
    %c0_23 = arith.constant 0 : index
    %100 = vector.load %arg2[%c0, %c0_22, %c0_23] : memref<1x32x96xf32, #tpu.memory_space<vmem>>, vector<1x32x96xf32>
    %101 = vector.shape_cast %100 : vector<1x32x96xf32> to vector<32x96xf32>
    %cst_24 = arith.constant dense<0.000000e+00> : vector<32x96xf32>
    %102 = tpu.matmul %80, %101, %cst_24 {dimension_numbers = #tpu.dot_dimension_numbers<[1], [0], [0], [1], [0, 0, 1, 1], [], []>} : vector<32x32xf32>, vector<32x96xf32>, vector<32x96xf32> -> vector<32x96xf32>
    %103 = vector.extract_strided_slice %102 {offsets = [0, 0], sizes = [32, 32], strides = [1, 1]} : vector<32x96xf32> to vector<32x32xf32>
    %cst_25 = arith.constant dense<0.000000e+00> : vector<32x32xf32>
    %104 = tpu.matmul %103, %99, %cst_25 {dimension_numbers = #tpu.dot_dimension_numbers<[1], [0], [0], [1], [0, 0, 1, 1], [], []>} : vector<32x32xf32>, vector<32x32xf32>, vector<32x32xf32> -> vector<32x32xf32>
    %105 = vector.extract_strided_slice %102 {offsets = [0, 32], sizes = [32, 32], strides = [1, 1]} : vector<32x96xf32> to vector<32x32xf32>
    %cst_26 = arith.constant dense<0.000000e+00> : vector<32x32xf32>
    %106 = tpu.matmul %105, %99, %cst_26 {dimension_numbers = #tpu.dot_dimension_numbers<[1], [0], [0], [1], [0, 0, 1, 1], [], []>} : vector<32x32xf32>, vector<32x32xf32>, vector<32x32xf32> -> vector<32x32xf32>
    %107 = vector.extract_strided_slice %102 {offsets = [0, 64], sizes = [32, 32], strides = [1, 1]} : vector<32x96xf32> to vector<32x32xf32>
    %cst_27 = arith.constant dense<0.000000e+00> : vector<32x32xf32>
    %108 = tpu.matmul %107, %99, %cst_27 {dimension_numbers = #tpu.dot_dimension_numbers<[1], [0], [0], [1], [0, 0, 1, 1], [], []>} : vector<32x32xf32>, vector<32x32xf32>, vector<32x32xf32> -> vector<32x32xf32>
    %109 = tpu.concatenate %104, %106, %108 in 1 : vector<32x32xf32>, vector<32x32xf32>, vector<32x32xf32> -> vector<32x96xf32>
    %c0_28 = arith.constant 0 : index
    %c0_29 = arith.constant 0 : index
    %c0_30 = arith.constant 0 : index
    %110 = vector.load %arg3[%c0_28, %c0_29, %c0_30] : memref<1x32x96xf32, #tpu.memory_space<vmem>>, vector<1x32x96xf32>
    %111 = vector.shape_cast %110 : vector<1x32x96xf32> to vector<32x96xf32>
    %112 = vector.shape_cast %109 : vector<32x96xf32> to vector<1x32x96xf32>
    tpu.vector_store %arg3[%c0_28, %c0_29, %c0_30], %112 {strides = array<i32>} : memref<1x32x96xf32, #tpu.memory_space<vmem>>, vector<1x32x96xf32>,
    return
  }
  func.func @transform_0(%arg0: i32, %arg1: memref<8xi32, #tpu.memory_space<smem>>) -> (i32, i32, i32) {
    %c0_i32 = arith.constant 0 : i32
    %c0_i32_0 = arith.constant 0 : i32
    %c0_i32_1 = arith.constant 0 : i32
    return %arg0, %c0_i32, %c0_i32_0 : i32, i32, i32
  }
  func.func @transform_1(%arg0: i32, %arg1: memref<8xi32, #tpu.memory_space<smem>>) -> (i32, i32, i32) {
    %c0_i32 = arith.constant 0 : i32
    %c0_i32_0 = arith.constant 0 : i32
    %c0_i32_1 = arith.constant 0 : i32
    return %arg0, %c0_i32, %c0_i32_0 : i32, i32, i32
  }
}

module attributes {stable_mosaic.version = 11 : i64} {
  func.func @_scale_head_kernel(%arg0: memref<32x192xbf16, #tpu.memory_space<vmem>>, %arg1: memref<192x32xbf16, #tpu.memory_space<vmem>>, %arg2: memref<1x32xf32, #tpu.memory_space<vmem>>, %arg3: memref<32x128xbf16, #tpu.memory_space<vmem>>, %arg4: memref<1x128xf32, #tpu.memory_space<vmem>>, %arg5: memref<32x32xf32, #tpu.memory_space<vmem>>, %arg6: memref<2x128xf32, #tpu.memory_space<vmem>>) attributes {dimension_semantics = [], scalar_prefetch = 0 : i64, scratch_operands = 0 : i64, tpu.core_type = #tpu.core_type<tc>} {
    %c0 = arith.constant 0 : index
    %c0_0 = arith.constant 0 : index
    %0 = vector.load %arg0[%c0, %c0_0] : memref<32x192xbf16, #tpu.memory_space<vmem>>, vector<32x192xbf16>
    %c0_1 = arith.constant 0 : index
    %c0_2 = arith.constant 0 : index
    %1 = vector.load %arg1[%c0_1, %c0_2] : memref<192x32xbf16, #tpu.memory_space<vmem>>, vector<192x32xbf16>
    %cst = arith.constant dense<0.000000e+00> : vector<32x32xf32>
    %2 = tpu.matmul %0, %1, %cst {dimension_numbers = #tpu.dot_dimension_numbers<[1], [0], [0], [1], [0, 0, 1, 1], [], []>} : vector<32x192xbf16>, vector<192x32xbf16>, vector<32x32xf32> -> vector<32x32xf32>
    %c0_3 = arith.constant 0 : index
    %c0_4 = arith.constant 0 : index
    %3 = vector.load %arg2[%c0_3, %c0_4] : memref<1x32xf32, #tpu.memory_space<vmem>>, vector<1x32xf32>
    %4 = vector.broadcast %3 : vector<1x32xf32> to vector<32x32xf32>
    %5 = arith.addf %2, %4 : vector<32x32xf32>
    %cst_5 = arith.constant 0.000000e+00 : f32
    %cst_6 = arith.constant 6.000000e+00 : f32
    %6 = vector.broadcast %cst_5 : f32 to vector<32x32xf32>
    %7 = arith.maximumf %6, %5 : vector<32x32xf32>
    %8 = vector.broadcast %cst_6 : f32 to vector<32x32xf32>
    %9 = arith.minimumf %8, %7 : vector<32x32xf32>
    %c0_7 = arith.constant 0 : index
    %c0_8 = arith.constant 0 : index
    %10 = vector.load %arg5[%c0_7, %c0_8] : memref<32x32xf32, #tpu.memory_space<vmem>>, vector<32x32xf32>
    tpu.vector_store %arg5[%c0_7, %c0_8], %9 {strides = array<i32>} : memref<32x32xf32, #tpu.memory_space<vmem>>, vector<32x32xf32>,
    %11 = vector.extract_strided_slice %9 {offsets = [0, 0], sizes = [16, 32], strides = [1, 1]} : vector<32x32xf32> to vector<16x32xf32>
    %cst_9 = arith.constant dense<0.000000e+00> : vector<32xf32>
    %12 = vector.multi_reduction <add>, %11, %cst_9 [0] : vector<16x32xf32> to vector<32xf32>
    %13 = vector.shape_cast %12 : vector<32xf32> to vector<1x32xf32>
    %cst_10 = arith.constant 1.600000e+01 : f32
    %14 = vector.broadcast %cst_10 : f32 to vector<1x32xf32>
    %15 = arith.divf %13, %14 : vector<1x32xf32>
    %16 = vector.extract_strided_slice %9 {offsets = [16, 0], sizes = [16, 32], strides = [1, 1]} : vector<32x32xf32> to vector<16x32xf32>
    %cst_11 = arith.constant dense<0.000000e+00> : vector<32xf32>
    %17 = vector.multi_reduction <add>, %16, %cst_11 [0] : vector<16x32xf32> to vector<32xf32>
    %18 = vector.shape_cast %17 : vector<32xf32> to vector<1x32xf32>
    %cst_12 = arith.constant 1.600000e+01 : f32
    %19 = vector.broadcast %cst_12 : f32 to vector<1x32xf32>
    %20 = arith.divf %18, %19 : vector<1x32xf32>
    %21 = tpu.concatenate %15, %20 in 0 : vector<1x32xf32>, vector<1x32xf32> -> vector<2x32xf32>
    %22 = arith.truncf %21 : vector<2x32xf32> to vector<2x32xbf16>
    %c0_13 = arith.constant 0 : index
    %c0_14 = arith.constant 0 : index
    %23 = vector.load %arg3[%c0_13, %c0_14] : memref<32x128xbf16, #tpu.memory_space<vmem>>, vector<32x128xbf16>
    %cst_15 = arith.constant dense<0.000000e+00> : vector<2x128xf32>
    %24 = tpu.matmul %22, %23, %cst_15 {dimension_numbers = #tpu.dot_dimension_numbers<[1], [0], [0], [1], [0, 0, 1, 1], [], []>} : vector<2x32xbf16>, vector<32x128xbf16>, vector<2x128xf32> -> vector<2x128xf32>
    %c0_16 = arith.constant 0 : index
    %c0_17 = arith.constant 0 : index
    %25 = vector.load %arg4[%c0_16, %c0_17] : memref<1x128xf32, #tpu.memory_space<vmem>>, vector<1x128xf32>
    %26 = vector.broadcast %25 : vector<1x128xf32> to vector<2x128xf32>
    %27 = arith.addf %24, %26 : vector<2x128xf32>
    %c0_18 = arith.constant 0 : index
    %c0_19 = arith.constant 0 : index
    %28 = vector.load %arg6[%c0_18, %c0_19] : memref<2x128xf32, #tpu.memory_space<vmem>>, vector<2x128xf32>
    tpu.vector_store %arg6[%c0_18, %c0_19], %27 {strides = array<i32>} : memref<2x128xf32, #tpu.memory_space<vmem>>, vector<2x128xf32>,
    return
  }
}

</mosaic_0001>

<bundles_post_ra>
// kernel: racnn_forward.7
= control target key start
LH: loop header
LB: loop body
LE: loop exit
PB: predicated region body
PF: predicated region fallthrough
CT: control target
= control target key end

     0   :  { %s1012_s0 = inlined_call_operand.vmem [shape: bf16[128,192], index: 0, kind: input, shape index: {}]   ;;  %s1013_s1 = inlined_call_operand.vmem [shape: bf16[192,32], index: 1, kind: input, shape index: {}]   ;;  %s1014_s2 = inlined_call_operand.vmem [shape: f32[1,32], index: 2, kind: input, shape index: {}]   ;;  %s1015_s3 = inlined_call_operand.vmem [shape: bf16[32,128], index: 3, kind: input, shape index: {}]   ;;  %s1016_s4 = inlined_call_operand.vmem [shape: f32[1,128], index: 4, kind: input, shape index: {}]   ;;  %s1017_s5 = inlined_call_operand.vmem [shape: f32[128,32], index: 5, kind: output, shape index: {0}]   ;;  %s1018_s6 = inlined_call_operand.hbm [shape: f32[2,128], index: 6, kind: output, shape index: {1}]  }
   0x1   :  { %v647_v0 = vld [vmem:[%s1013_s1 + $0x38] sm:$0xff]  ;;  %v646_v2 = vld [vmem:[%s1013_s1 + $0x30] sm:$0xff]  ;;  %v645_v4 = vld [vmem:[%s1013_s1 + $0x28] sm:$0xff] }
   0x2   :  { %v651_v1 = vld [vmem:[%s1013_s1 + $0x58] sm:$0xff]  ;;  %237 = vmatpush.bf16.msra.mxu0 %v647_v0  ;;  %654 = vmatpush.bf16.msra.mxu3 %v647_v0  ;;  %v650_v3 = vld [vmem:[%s1013_s1 + $0x50] sm:$0xff]  ;;  %v649_v5 = vld [vmem:[%s1013_s1 + $0x48] sm:$0xff] }
   0x3   :  { %290 = vmatpush.bf16.msra.mxu1 %v651_v1  ;;  %662 = vmatpush.bf16.msra.mxu2 %v651_v1 }
   0x6   :  { %238 = vmatpush.bf16.msra.mxu0 %v646_v2  ;;  %655 = vmatpush.bf16.msra.mxu3 %v646_v2 }
   0x7   :  { %291 = vmatpush.bf16.msra.mxu1 %v650_v3  ;;  %663 = vmatpush.bf16.msra.mxu2 %v650_v3 }
   0x8   :  { %12 = vsyncpa [#allocation3], 0  ;;  %v644_v6 = vld [vmem:[%s1013_s1 + $0x20] sm:$0xff]  ;;  %v499_v9 = vld [vmem:[%s1012_s0 + $0x8] sm:$0xf0]  ;;  %vm212_vm0 = vcmask 523264  }
   0x9   :  { %v648_v7 = vld [vmem:[%s1013_s1 + $0x40] sm:$0xff]  ;;  %v634_v10 = vld [vmem:[%s1012_s0 + $0x54] sm:$0xf]  ;;  %v539_v11 = vld [vmem:[%s1012_s0 + $0x58] sm:$0xf0]  ;;  %vm367_vm1 = vcmask 261120  }
   0xa   :  { %239 = vmatpush.bf16.msra.mxu0 %v645_v4  ;;  %656 = vmatpush.bf16.msra.mxu3 %v645_v4  ;;  %v624_v8 = vld [vmem:[%s1012_s0 + $0x4] sm:$0xf]  ;;  %v643_v13 = vld [vmem:[%s1013_s1 + $0x18] sm:$0xff]  ;;  %v542_v14 = vor.u32 %v634_v10, %v539_v11  ;;  %v642_v15 = vld [vmem:[%s1013_s1 + $0x10] sm:$0xff]  ;;  %vm435_vm3 = vcmask 1040384   ;;  %s699_s19 = smov [#allocation2]  }
   0xb   :  { %292 = vmatpush.bf16.msra.mxu1 %v649_v5  ;;  %664 = vmatpush.bf16.msra.mxu2 %v649_v5  ;;  %v502_v12 = vor.u32 %v624_v8, %v499_v9  ;;  %v641_v16 = vld [vmem:[%s1013_s1 + $0x8] sm:$0xff]  ;;  %v640_v17 = vld [vmem:[%s1013_s1] sm:$0xff]  ;;  %v626_v22 = vld [vmem:[%s1012_s0 + $0x14] sm:$0xf]  ;;  %s482_s20 = sshll.u32 %s699_s19, 4  ;;  %s484_s23 = sshll.u32 %s1018_s6, 4  ;;  %s483_s20 = int_to_ptr.vmem [resolvable:$true] %s482_s20  ;;  %s485_s23 = int_to_ptr.hbm [resolvable:$true] %s484_s23 }
   0xc   :  { %v497_v18 = vld [vmem:[%s1012_s0] sm:$0xf]  ;;  %v625_v19 = vld [vmem:[%s1012_s0 + $0x4] sm:$0xf0]  ;;  %v507_v23 = vld [vmem:[%s1012_s0 + $0x18] sm:$0xf0] }
   0xd   :  { %v529_v20 = vld [vmem:[%s1012_s0 + $0x40] sm:$0xf]  ;;  %v633_v21 = vld [vmem:[%s1012_s0 + $0x44] sm:$0xf0]  ;;  %v636_v24 = vld [vmem:[%s1012_s0 + $0x64] sm:$0xf]  ;;  %v498_v26 = vor.u32 %v625_v19, %v497_v18  ;;  %v510_v28 = vor.u32 %v626_v22, %v507_v23 }
   0xe   :  { %240 = vmatpush.bf16.msra.mxu0 %v644_v6  ;;  %657 = vmatpush.bf16.msra.mxu3 %v644_v6  ;;  %v547_v25 = vld [vmem:[%s1012_s0 + $0x68] sm:$0xf0]  ;;  %v530_v27 = vor.u32 %v633_v21, %v529_v20  ;;  %v505_v30 = vld [vmem:[%s1012_s0 + $0x10] sm:$0xf]  ;;  %v627_v31 = vld [vmem:[%s1012_s0 + $0x14] sm:$0xf0] }
   0xf   :  { %293 = vmatpush.bf16.msra.mxu1 %v648_v7  ;;  %665 = vmatpush.bf16.msra.mxu2 %v648_v7  ;;  %v550_v29 = vor.u32 %v636_v24, %v547_v25  ;;  %v537_v32 = vld [vmem:[%s1012_s0 + $0x50] sm:$0xf]  ;;  %v635_v33 = vld [vmem:[%s1012_s0 + $0x54] sm:$0xf0]  ;;  %v628_v34 = vld [vmem:[%s1012_s0 + $0x24] sm:$0xf]  ;;  %v506_v38 = vor.u32 %v627_v31, %v505_v30 }
  0x10   :  { %v515_v35 = vld [vmem:[%s1012_s0 + $0x28] sm:$0xf0]  ;;  %v638_v36 = vld [vmem:[%s1012_s0 + $0x74] sm:$0xf]  ;;  %v555_v37 = vld [vmem:[%s1012_s0 + $0x78] sm:$0xf0]  ;;  %v538_v39 = vor.u32 %v635_v33, %v537_v32 }
  0x11   :  { %v518_v40 = vor.u32 %v628_v34, %v515_v35  ;;  %v558_v41 = vor.u32 %v638_v36, %v555_v37  ;;  %v513_v42 = vld [vmem:[%s1012_s0 + $0x20] sm:$0xf]  ;;  %v629_v43 = vld [vmem:[%s1012_s0 + $0x24] sm:$0xf0]  ;;  %v630_v46 = vld [vmem:[%s1012_s0 + $0x34] sm:$0xf] }
  0x12   :  { %607 = vmatmul.msk.bf16.vlgmr.msra.gmra.mxu1 %vm212_vm0, %v502_v12  ;;  %241 = vmatpush.bf16.msra.mxu0 %v643_v13  ;;  %v545_v44 = vld [vmem:[%s1012_s0 + $0x60] sm:$0xf]  ;;  %v637_v45 = vld [vmem:[%s1012_s0 + $0x64] sm:$0xf0]  ;;  %v523_v47 = vld [vmem:[%s1012_s0 + $0x38] sm:$0xf0]  ;;  %v514_v48 = vor.u32 %v629_v43, %v513_v42 }
  0x13   :  { %658 = vmatpush.bf16.msra.mxu3 %v643_v13  ;;  %612 = vmatmul.msk.bf16.vlgmr.msra.gmra.mxu2 %vm212_vm0, %v542_v14  ;;  %v546_v49 = vor.u32 %v637_v45, %v545_v44  ;;  %v526_v50 = vor.u32 %v630_v46, %v523_v47  ;;  %v521_v51 = vld [vmem:[%s1012_s0 + $0x30] sm:$0xf]  ;;  %v631_v52 = vld [vmem:[%s1012_s0 + $0x34] sm:$0xf0]  ;;  %v632_v55 = vld [vmem:[%s1012_s0 + $0x44] sm:$0xf] }
  0x14   :  { %v553_v53 = vld [vmem:[%s1012_s0 + $0x70] sm:$0xf]  ;;  %v639_v54 = vld [vmem:[%s1012_s0 + $0x74] sm:$0xf0]  ;;  %v531_v56 = vld [vmem:[%s1012_s0 + $0x48] sm:$0xf0]  ;;  %v522_v57 = vor.u32 %v631_v52, %v521_v51 }
  0x15   :  { %v554_v58 = vor.u32 %v639_v54, %v553_v53  ;;  %v534_v59 = vor.u32 %v632_v55, %v531_v56  ;;  %v878_v62 = vld [vmem:[%s1014_s2] ss:$0 sm:$0xff]  ;;  %v653_v23 = vld [vmem:[%s1015_s3 + $0x8] sm:$0xff] }
  0x16   :  { %242 = vmatpush.bf16.msra.mxu0 %v642_v15  ;;  %467 = vmatpush.bf16.msrb.mxu2 %v653_v23 }
  0x17   :  { %659 = vmatpush.bf16.msra.mxu3 %v642_v15 }
  0x1a   :  { %243 = vmatpush.bf16.msra.mxu0 %v641_v16 }
  0x1b   :  { %660 = vmatpush.bf16.msra.mxu3 %v641_v16 }
  0x1e   :  { %244 = vmatpush.bf16.msra.mxu0 %v640_v17 }
  0x1f   :  { %661 = vmatpush.bf16.msra.mxu3 %v640_v17 }
  0x21   :  { %245 = vmatmul.bf16.vlgmr.msra.gmra.mxu0 %v498_v26 }
  0x22   :  { %265 = vmatmul.bf16.vlgmr.msra.gmra.mxu3 %v530_v27  ;;  %608 = vmatmul.msk.bf16.gmra.mxu1 %vm212_vm0, %v510_v28 }
  0x23   :  { %613 = vmatmul.msk.bf16.gmra.mxu2 %vm212_vm0, %v550_v29 }
  0x31   :  { %250 = vmatmul.bf16.gmra.mxu0 %v506_v38 }
  0x32   :  { %270 = vmatmul.bf16.gmra.mxu3 %v538_v39  ;;  %609 = vmatmul.msk.bf16.gmra.mxu1 %vm212_vm0, %v518_v40 }
  0x33   :  { %614 = vmatmul.msk.bf16.gmra.mxu2 %vm212_vm0, %v558_v41 }
  0x41   :  { %255 = vmatmul.bf16.gmra.mxu0 %v514_v48 }
  0x42   :  { %275 = vmatmul.bf16.gmra.mxu3 %v546_v49  ;;  %610 = vmatmul.msk.bf16.gmra.mxu1 %vm212_vm0, %v526_v50 }
  0x51   :  { %260 = vmatmul.bf16.gmra.mxu0 %v522_v57 }
  0x52   :  { %280 = vmatmul.bf16.gmra.mxu3 %v554_v58  ;;  %611 = vmatmul.msk.bf16.gmra.mxu1 %vm212_vm0, %v534_v59 }
  0x8f   :  { %v295_v60 = vpop.f32.mrf.mxu1 }
  0x96   :  { %v320_v13 = vpop.f32.mrf.mxu2 }
  0x97   :  { %v297_v61 = vpop.f32.mrf.mxu1 }
  0x9e   :  { %v246_v63 = vpop.f32.mrf.mxu0  ;;  %v322_v26 = vpop.f32.mrf.mxu2 }
  0x9f   :  { %v247_v0 = vadd.f32 %v878_v62, %v246_v63  ;;  %v300_v1 = vpop.f32.mrf.mxu1 }
  0xa1   :  { %v296_v2 = vadd.f32 %v295_v60, %v247_v0 }
  0xa3   :  { %v335_v3 = vmax.f32 %v296_v2, 0.0 }
  0xa5   :  { %v881_v4 = vmin.f32 %v335_v3, 6.0  ;;  %v266_v5 = vpop.f32.mrf.mxu3 }
  0xa6   :  { %v248_v6 = vpop.f32.mrf.mxu0  ;;  %v325_v40 = vpop.f32.mrf.mxu2  ;;  %v267_v58 = vadd.f32 %v878_v62, %v266_v5 }
  0xa7   :  { %368 = vst.msk [vmem:[%s1017_s5] sm:$0xff] %vm367_vm1, %v881_v4  ;;  %v249_v7 = vadd.f32 %v878_v62, %v248_v6  ;;  %v302_v8 = vpop.f32.mrf.mxu1 }
  0xa9   :  { %v298_v9 = vadd.f32 %v297_v61, %v249_v7  ;;  %v384_v7 = vsel %vm367_vm1, %v881_v4, 0.0 }
  0xab   :  { %v336_v10 = vmax.f32 %v298_v9, 0.0 }
  0xad   :  { %v889_v11 = vmin.f32 %v336_v10, 6.0  ;;  %v891_v12 = vpop.f32.mrf.mxu3 }
  0xae   :  { %v251_v14 = vpop.f32.mrf.mxu0  ;;  %v327_v54 = vpop.f32.mrf.mxu2 }
  0xaf   :  { %369 = vst.msk [vmem:[%s1017_s5 + $0x8] sm:$0xff] %vm367_vm1, %v889_v11  ;;  %v252_v15 = vadd.f32 %v878_v62, %v251_v14  ;;  %v305_v16 = vpop.f32.mrf.mxu1  ;;  %v385_v2 = vsel %vm367_vm1, %v889_v11, 0.0  ;;  %v269_v11 = vadd.f32 %v878_v62, %v891_v12  ;;  %v652_v12 = vld [vmem:[%s1015_s3] sm:$0xff] }
  0xb0   :  { %v386_v10 = vadd.f32 %v385_v2, %v384_v7  ;;  %468 = vmatpush.bf16.msrb.mxu2 %v652_v12 }
  0xb1   :  { %v301_v17 = vadd.f32 %v300_v1, %v252_v15 }
  0xb3   :  { %v337_v18 = vmax.f32 %v301_v17, 0.0 }
  0xb5   :  { %v353_v19 = vmin.f32 %v337_v18, 6.0  ;;  %v271_v20 = vpop.f32.mrf.mxu3 }
  0xb6   :  { %v272_v21 = vadd.f32 %v878_v62, %v271_v20  ;;  %v253_v22 = vpop.f32.mrf.mxu0  ;;  %v330_v17 = vpop.f32.mrf.mxu2 }
  0xb7   :  { %370 = vst.msk [vmem:[%s1017_s5 + $0x10] sm:$0xff] %vm367_vm1, %v353_v19  ;;  %v254_v24 = vadd.f32 %v878_v62, %v253_v22  ;;  %v307_v25 = vpop.f32.mrf.mxu1 }
  0xb8   :  { %v321_v27 = vadd.f32 %v320_v13, %v272_v21 }
  0xb9   :  { %v303_v28 = vadd.f32 %v302_v8, %v254_v24  ;;  %v387_v8 = vsel %vm367_vm1, %v353_v19, 0.0 }
  0xba   :  { %v345_v29 = vmax.f32 %v321_v27, 0.0  ;;  %v388_v20 = vadd.f32 %v387_v8, %v386_v10 }
  0xbb   :  { %v338_v30 = vmax.f32 %v303_v28, 0.0 }
  0xbc   :  { %v908_v31 = vmin.f32 %v345_v29, 6.0 }
  0xbd   :  { %v354_v32 = vmin.f32 %v338_v30, 6.0  ;;  %v273_v33 = vpop.f32.mrf.mxu3 }
  0xbe   :  { %378 = vst.msk [vmem:[%s1017_s5 + $0x50] sm:$0xff] %vm367_vm1, %v908_v31  ;;  %v274_v34 = vadd.f32 %v878_v62, %v273_v33  ;;  %v256_v35 = vpop.f32.mrf.mxu0 }
  0xbf   :  { %371 = vst.msk [vmem:[%s1017_s5 + $0x18] sm:$0xff] %vm367_vm1, %v354_v32  ;;  %v257_v36 = vadd.f32 %v878_v62, %v256_v35  ;;  %v310_v37 = vpop.f32.mrf.mxu1  ;;  %v389_v15 = vsel %vm367_vm1, %v354_v32, 0.0 }
  0xc0   :  { %v323_v38 = vadd.f32 %v322_v26, %v274_v34  ;;  %v390_v24 = vadd.f32 %v389_v15, %v388_v20 }
  0xc1   :  { %v306_v39 = vadd.f32 %v305_v16, %v257_v36 }
  0xc2   :  { %v346_v41 = vmax.f32 %v323_v38, 0.0 }
  0xc3   :  { %v339_v42 = vmax.f32 %v306_v39, 0.0 }
  0xc4   :  { %v921_v43 = vmin.f32 %v346_v41, 6.0 }
  0xc5   :  { %v355_v44 = vmin.f32 %v339_v42, 6.0  ;;  %v276_v45 = vpop.f32.mrf.mxu3 }
  0xc6   :  { %379 = vst.msk [vmem:[%s1017_s5 + $0x58] sm:$0xff] %vm367_vm1, %v921_v43  ;;  %v277_v46 = vadd.f32 %v878_v62, %v276_v45  ;;  %v258_v47 = vpop.f32.mrf.mxu0 }
  0xc7   :  { %372 = vst.msk [vmem:[%s1017_s5 + $0x20] sm:$0xff] %vm367_vm1, %v355_v44  ;;  %v259_v48 = vadd.f32 %v878_v62, %v258_v47  ;;  %v312_v49 = vpop.f32.mrf.mxu1  ;;  %v391_v21 = vsel %vm367_vm1, %v355_v44, 0.0 }
  0xc8   :  { %v326_v50 = vadd.f32 %v325_v40, %v277_v46  ;;  %v392_v29 = vadd.f32 %v391_v21, %v390_v24  ;;  %v698_v40 = vmov 64.0  }
  0xc9   :  { %v308_v51 = vadd.f32 %v307_v25, %v259_v48  ;;  %670 = vrcp.f32 %v698_v40  ;;  %v332_v48 = vpop.f32.mrf.mxu2 }
  0xca   :  { %v347_v52 = vmax.f32 %v326_v50, 0.0 }
  0xcb   :  { %v340_v53 = vmax.f32 %v308_v51, 0.0 }
  0xcc   :  { %v934_v55 = vmin.f32 %v347_v52, 6.0  ;;  %v418_v52 = vsel %vm367_vm1, %v921_v43, 0.0 }
  0xcd   :  { %v356_v56 = vmin.f32 %v340_v53, 6.0  ;;  %v278_v57 = vpop.f32.mrf.mxu3 }
  0xce   :  { %380 = vst.msk [vmem:[%s1017_s5 + $0x60] sm:$0xff] %vm367_vm1, %v934_v55  ;;  %v279_v59 = vadd.f32 %v878_v62, %v278_v57  ;;  %v261_v60 = vpop.f32.mrf.mxu0 }
  0xcf   :  { %373 = vst.msk [vmem:[%s1017_s5 + $0x28] sm:$0xff] %vm367_vm1, %v356_v56  ;;  %v262_v61 = vadd.f32 %v878_v62, %v261_v60  ;;  %v315_v63 = vpop.f32.mrf.mxu1  ;;  %v393_v27 = vsel %vm367_vm1, %v356_v56, 0.0  ;;  %v671_v56 = vpop.eup %670 }
  0xd0   :  { %v328_v0 = vadd.f32 %v327_v54, %v279_v59  ;;  %v316_v1 = vadd.f32 %v315_v63, %v267_v58  ;;  %v394_v35 = vadd.f32 %v393_v27, %v392_v29  ;;  %v420_v58 = vsel %vm367_vm1, %v934_v55, 0.0 }
  0xd1   :  { %v311_v3 = vadd.f32 %v310_v37, %v262_v61  ;;  %v406_v63 = vmul.f32 64.0, %v671_v56  ;;  %vm410_vm2 = vweird.f32 %v671_v56 }
  0xd2   :  { %v348_v5 = vmax.f32 %v328_v0, 0.0  ;;  %v343_v6 = vmax.f32 %v316_v1, 0.0 }
  0xd3   :  { %v341_v9 = vmax.f32 %v311_v3, 0.0 }
  0xd4   :  { %v364_v13 = vmin.f32 %v348_v5, 6.0  ;;  %v359_v14 = vmin.f32 %v343_v6, 6.0  ;;  %v407_v5 = vsub.f32 1.0, %v406_v63 }
  0xd5   :  { %v357_v16 = vmin.f32 %v341_v9, 6.0  ;;  %v281_v18 = vpop.f32.mrf.mxu3 }
  0xd6   :  { %381 = vst.msk [vmem:[%s1017_s5 + $0x68] sm:$0xff] %vm367_vm1, %v364_v13  ;;  %v282_v4 = vadd.f32 %v878_v62, %v281_v18  ;;  %v263_v19 = vpop.f32.mrf.mxu0  ;;  %v413_v42 = vsel %vm367_vm1, %v359_v14, 0.0  ;;  %v422_v61 = vsel %vm367_vm1, %v364_v13, 0.0  ;;  %v408_v8 = vmul.f32 %v671_v56, %v407_v5 }
  0xd7   :  { %374 = vst.msk [vmem:[%s1017_s5 + $0x30] sm:$0xff] %vm367_vm1, %v357_v16  ;;  %v264_v22 = vadd.f32 %v878_v62, %v263_v19  ;;  %v317_v23 = vpop.f32.mrf.mxu1  ;;  %v395_v33 = vsel %vm367_vm1, %v357_v16, 0.0 }
  0xd8   :  { %376 = vst.msk [vmem:[%s1017_s5 + $0x40] sm:$0xff] %vm367_vm1, %v359_v14  ;;  %v331_v25 = vadd.f32 %v330_v17, %v282_v4  ;;  %v318_v26 = vadd.f32 %v317_v23, %v269_v11  ;;  %v396_v41 = vadd.f32 %v395_v33, %v394_v35  ;;  %v409_v14 = vadd.f32 %v671_v56, %v408_v8 }
  0xd9   :  { %v313_v28 = vadd.f32 %v312_v49, %v264_v22  ;;  %v416_v49 = vsel %vm367_vm1, %v908_v31, 0.0  ;;  %v669_v22 = vld [vmem:[%s1016_s4] ss:$0 sm:$0xff] }
  0xda   :  { %v349_v30 = vmax.f32 %v331_v25, 0.0  ;;  %v344_v32 = vmax.f32 %v318_v26, 0.0  ;;  %v411_v18 = vsel %vm410_vm2, %v671_v56, %v409_v14 }
  0xdb   :  { %v342_v34 = vmax.f32 %v313_v28, 0.0 }
  0xdc   :  { %v365_v36 = vmin.f32 %v349_v30, 6.0  ;;  %v360_v37 = vmin.f32 %v344_v32, 6.0 }
  0xdd   :  { %v358_v38 = vmin.f32 %v342_v34, 6.0  ;;  %v283_v39 = vpop.f32.mrf.mxu3 }
  0xde   :  { %382 = vst.msk [vmem:[%s1017_s5 + $0x70] sm:$0xff] %vm367_vm1, %v365_v36  ;;  %v414_v44 = vsel %vm367_vm1, %v360_v37, 0.0  ;;  %v284_v45 = vadd.f32 %v878_v62, %v283_v39  ;;  %v424_v43 = vsel %vm367_vm1, %v365_v36, 0.0 }
  0xdf   :  { %375 = vst.msk [vmem:[%s1017_s5 + $0x38] sm:$0xff] %vm367_vm1, %v358_v38  ;;  %v397_v46 = vsel %vm367_vm1, %v358_v38, 0.0  ;;  %v415_v47 = vadd.f32 %v414_v44, %v413_v42 }
  0xe0   :  { %v398_v50 = vadd.f32 %v397_v46, %v396_v41  ;;  %377 = vst.msk [vmem:[%s1017_s5 + $0x48] sm:$0xff] %vm367_vm1, %v360_v37  ;;  %v333_v51 = vadd.f32 %v332_v48, %v284_v45 }
  0xe1   :  { %v417_v62 = vadd.f32 %v416_v49, %v415_v47 }
  0xe2   :  { %v399_v53 = vrot.slane %v398_v50, 4  ;;  %v350_v54 = vmax.f32 %v333_v51, 0.0 }
  0xe3   :  { %v419_v57 = vadd.f32 %v418_v52, %v417_v62 }
  0xe4   :  { %v366_v59 = vmin.f32 %v350_v54, 6.0  ;;  %v400_v31 = vadd.f32 %v399_v53, %v398_v50 }
  0xe5   :  { %v421_v60 = vadd.f32 %v420_v58, %v419_v57 }
  0xe6   :  { %383 = vst.msk [vmem:[%s1017_s5 + $0x78] sm:$0xff] %vm367_vm1, %v366_v59  ;;  %v401_v1 = vrot.slane %v400_v31, 2  ;;  %v426_v3 = vsel %vm367_vm1, %v366_v59, 0.0 }
  0xe7   :  { %v423_v0 = vadd.f32 %v422_v61, %v421_v60 }
  0xe8   :  { %v402_v6 = vadd.f32 %v401_v1, %v400_v31 }
  0xe9   :  { %v425_v2 = vadd.f32 %v424_v43, %v423_v0 }
  0xea   :  { %v403_v10 = vrot.slane %v402_v6, 1 }
  0xeb   :  { %v427_v55 = vadd.f32 %v426_v3, %v425_v2 }
  0xec   :  { %v404_v16 = vadd.f32 %v403_v10, %v402_v6 }
  0xed   :  { %v428_v7 = vrot.slane %v427_v55, 4 }
  0xee   :  { %v412_v20 = vmul.f32 %v411_v18, %v404_v16 }
  0xef   :  { %v429_v9 = vadd.f32 %v428_v7, %v427_v55 }
  0xf1   :  { %v430_v13 = vrot.slane %v429_v9, 2 }
  0xf3   :  { %v431_v15 = vadd.f32 %v430_v13, %v429_v9 }
  0xf5   :  { %v432_v17 = vrot.slane %v431_v15, 1 }
  0xf7   :  { %v433_v11 = vadd.f32 %v432_v17, %v431_v15 }
  0xf9   :  { %v434_v4 = vmul.f32 %v433_v11, %v411_v18 }
  0xfb   :  { %v436_v19 = vsel %vm435_vm3, %v412_v20, %v434_v4 }
  0xfc   :  { %v437_v21 = vpack.c.bf16 %v436_v19, %v436_v19 }
  0xfe   :  { %623 = vmatmul.msk.bf16.vlgmr.msrb.gmra.mxu2 %vm367_vm1, %v437_v21 }
 0x181   :  { %v470_v23 = vpop.f32.mrf.mxu2 }
 0x182   :  { %v471_v12 = vadd.f32 %v669_v22, %v470_v23 }
 0x184   :  { %474 = vst [vmem:[#allocation2] sm:$0x3] %v471_v12 }
 0x185   :  { %487 = dma.vmem_to_hbm [thread:$0]  %s483_s20, 32, %s485_s23, [#allocation3]  }
 0x189   :  { %v472_v24 = vpop.f32.mrf.mxu2 }
 0x18a   :  { %696 = dma.done.wait [#allocation3], 32  }
 0x18b   :  { %697 = vsyncadd [#allocation3], 4294967264 }
 0x18c   :  { %494 = vsyncpa [#allocation3], 1 }

// kernel: racnn_forward.8
= control target key start
LH: loop header
LB: loop body
LE: loop exit
PB: predicated region body
PF: predicated region fallthrough
CT: control target
= control target key end

     0   :  { %vm1333_vm0 = vcmask 523264   ;;  %s2484_s1 = inlined_call_operand.vmem [shape: bf16[2048,64], index: 1, kind: input, shape index: {}]   ;;  %s2485_s0 = inlined_call_operand.vmem [shape: bf16[2,2048], index: 0, kind: input, shape index: {}]   ;;  %s2486_s2 = inlined_call_operand.vmem [shape: f32[1,64], index: 2, kind: input, shape index: {}]   ;;  %s2487_s4 = inlined_call_operand.vmem [shape: f32[1,128], index: 4, kind: input, shape index: {}]   ;;  %s2488_s3 = inlined_call_operand.vmem [shape: bf16[64,128], index: 3, kind: input, shape index: {}]   ;;  %s2489_s5 = inlined_call_operand.vmem [shape: f32[2,128], index: 5, kind: output, shape index: {}]  }
   0x1   :  { %v1910_v0 = vld [vmem:[%s2484_s1 + $0x38] sm:$0xff]  ;;  %v1909_v4 = vld [vmem:[%s2484_s1 + $0x30] sm:$0xff]  ;;  %v1908_v8 = vld [vmem:[%s2484_s1 + $0x28] sm:$0xff] }
   0x2   :  { %v1918_v1 = vld [vmem:[%s2484_s1 + $0x78] sm:$0xff]  ;;  %1087 = vmatpush.bf16.msra.mxu0 %v1910_v0  ;;  %v1917_v5 = vld [vmem:[%s2484_s1 + $0x70] sm:$0xff]  ;;  %v1916_v9 = vld [vmem:[%s2484_s1 + $0x68] sm:$0xff] }
   0x3   :  { %v1926_v2 = vld [vmem:[%s2484_s1 + $0xb8] sm:$0xff]  ;;  %1100 = vmatpush.bf16.msra.mxu1 %v1918_v1  ;;  %v1925_v6 = vld [vmem:[%s2484_s1 + $0xb0] sm:$0xff]  ;;  %v1924_v10 = vld [vmem:[%s2484_s1 + $0xa8] sm:$0xff] }
   0x4   :  { %v1934_v3 = vld [vmem:[%s2484_s1 + $0xf8] sm:$0xff]  ;;  %1113 = vmatpush.bf16.msra.mxu2 %v1926_v2  ;;  %v1933_v7 = vld [vmem:[%s2484_s1 + $0xf0] sm:$0xff]  ;;  %v1932_v11 = vld [vmem:[%s2484_s1 + $0xe8] sm:$0xff] }
   0x5   :  { %1126 = vmatpush.bf16.msra.mxu3 %v1934_v3  ;;  %v1907_v12 = vld [vmem:[%s2484_s1 + $0x20] sm:$0xff]  ;;  %v1906_v16 = vld [vmem:[%s2484_s1 + $0x18] sm:$0xff]  ;;  %v1905_v21 = vld [vmem:[%s2484_s1 + $0x10] sm:$0xff] }
   0x6   :  { %1088 = vmatpush.bf16.msra.mxu0 %v1909_v4  ;;  %v1915_v13 = vld [vmem:[%s2484_s1 + $0x60] sm:$0xff]  ;;  %v1914_v17 = vld [vmem:[%s2484_s1 + $0x58] sm:$0xff]  ;;  %v1913_v22 = vld [vmem:[%s2484_s1 + $0x50] sm:$0xff] }
   0x7   :  { %1101 = vmatpush.bf16.msra.mxu1 %v1917_v5  ;;  %v1923_v14 = vld [vmem:[%s2484_s1 + $0xa0] sm:$0xff]  ;;  %v1922_v18 = vld [vmem:[%s2484_s1 + $0x98] sm:$0xff]  ;;  %v1921_v23 = vld [vmem:[%s2484_s1 + $0x90] sm:$0xff] }
   0x8   :  { %1114 = vmatpush.bf16.msra.mxu2 %v1925_v6  ;;  %v1931_v15 = vld [vmem:[%s2484_s1 + $0xe0] sm:$0xff]  ;;  %v1930_v19 = vld [vmem:[%s2484_s1 + $0xd8] sm:$0xff]  ;;  %v1929_v24 = vld [vmem:[%s2484_s1 + $0xd0] sm:$0xff] }
   0x9   :  { %1127 = vmatpush.bf16.msra.mxu3 %v1933_v7  ;;  %v21_v20 = vld [vmem:[%s2485_s0] sm:$0xff]  ;;  %v1904_v25 = vld [vmem:[%s2484_s1 + $0x8] sm:$0xff]  ;;  %v1942_v33 = vld [vmem:[%s2484_s1 + $0x138] sm:$0xff] }
   0xa   :  { %1089 = vmatpush.bf16.msra.mxu0 %v1908_v8  ;;  %284 = vst [vmem:[#allocation1] ss:$9 sm:$0xff] %v21_v20  ;;  %v1912_v26 = vld [vmem:[%s2484_s1 + $0x48] sm:$0xff]  ;;  %v1903_v29 = vld [vmem:[%s2484_s1] sm:$0xff]  ;;  %v1950_v34 = vld [vmem:[%s2484_s1 + $0x178] sm:$0xff] }
   0xb   :  { %1102 = vmatpush.bf16.msra.mxu1 %v1916_v9  ;;  %v1920_v27 = vld [vmem:[%s2484_s1 + $0x88] sm:$0xff]  ;;  %v1911_v30 = vld [vmem:[%s2484_s1 + $0x40] sm:$0xff]  ;;  %v1958_v35 = vld [vmem:[%s2484_s1 + $0x1b8] sm:$0xff] }
   0xc   :  { %1115 = vmatpush.bf16.msra.mxu2 %v1924_v10  ;;  %v1928_v28 = vld [vmem:[%s2484_s1 + $0xc8] sm:$0xff]  ;;  %v1919_v31 = vld [vmem:[%s2484_s1 + $0x80] sm:$0xff]  ;;  %v1966_v36 = vld [vmem:[%s2484_s1 + $0x1f8] sm:$0xff] }
   0xd   :  { %1128 = vmatpush.bf16.msra.mxu3 %v1932_v11  ;;  %v1927_v32 = vld [vmem:[%s2484_s1 + $0xc0] sm:$0xff]  ;;  %v1941_v37 = vld [vmem:[%s2484_s1 + $0x130] sm:$0xff]  ;;  %v1940_v45 = vld [vmem:[%s2484_s1 + $0x128] sm:$0xff] }
   0xe   :  { %1090 = vmatpush.bf16.msra.mxu0 %v1907_v12  ;;  %v1949_v40 = vld [vmem:[%s2484_s1 + $0x170] sm:$0xff]  ;;  %v1948_v46 = vld [vmem:[%s2484_s1 + $0x168] sm:$0xff]  ;;  %v1939_v54 = vld [vmem:[%s2484_s1 + $0x120] sm:$0xff] }
   0xf   :  { %1103 = vmatpush.bf16.msra.mxu1 %v1915_v13  ;;  %v1957_v43 = vld [vmem:[%s2484_s1 + $0x1b0] sm:$0xff]  ;;  %v1956_v47 = vld [vmem:[%s2484_s1 + $0x1a8] sm:$0xff]  ;;  %v1947_v55 = vld [vmem:[%s2484_s1 + $0x160] sm:$0xff] }
  0x10   :  { %1116 = vmatpush.bf16.msra.mxu2 %v1923_v14  ;;  %v1965_v44 = vld [vmem:[%s2484_s1 + $0x1f0] sm:$0xff]  ;;  %v1964_v48 = vld [vmem:[%s2484_s1 + $0x1e8] sm:$0xff]  ;;  %v1955_v56 = vld [vmem:[%s2484_s1 + $0x1a0] sm:$0xff] }
  0x11   :  { %1129 = vmatpush.bf16.msra.mxu3 %v1931_v15  ;;  %v287_v38 = vld [vmem:[#allocation1 + $0x12] sm:$0xff]  ;;  %v285_v39 = vld [vmem:[#allocation1] sm:$0xff]  ;;  %v286_v42 = vld [vmem:[#allocation1 + $0x9] sm:$0xff] }
  0x12   :  { %1091 = vmatpush.bf16.msra.mxu0 %v1906_v16  ;;  %v288_v41 = vld [vmem:[#allocation1 + $0x1b] sm:$0xff]  ;;  %v22_v49 = vld [vmem:[%s2485_s0 + $0x8] sm:$0xff]  ;;  %v1937_v62 = vld [vmem:[%s2484_s1 + $0x110] sm:$0xff] }
  0x13   :  { %1104 = vmatpush.bf16.msra.mxu1 %v1914_v17  ;;  %v291_v50 = vld [vmem:[#allocation1 + $0x36] sm:$0xff]  ;;  %v289_v51 = vld [vmem:[#allocation1 + $0x24] sm:$0xff]  ;;  %v290_v53 = vld [vmem:[#allocation1 + $0x2d] sm:$0xff] }
  0x14   :  { %1117 = vmatpush.bf16.msra.mxu2 %v1922_v18  ;;  %v292_v52 = vld [vmem:[#allocation1 + $0x3f] sm:$0xff]  ;;  %v1945_v63 = vld [vmem:[%s2484_s1 + $0x150] sm:$0xff]  ;;  %v1936_v2 = vld [vmem:[%s2484_s1 + $0x108] sm:$0xff] }
  0x15   :  { %1130 = vmatpush.bf16.msra.mxu3 %v1930_v19  ;;  %294 = vst [vmem:[#allocation1] ss:$9 sm:$0xff] %v22_v49  ;;  %v1963_v57 = vld [vmem:[%s2484_s1 + $0x1e0] sm:$0xff]  ;;  %v1938_v58 = vld [vmem:[%s2484_s1 + $0x118] sm:$0xff]  ;;  %v1953_v0 = vld [vmem:[%s2484_s1 + $0x190] sm:$0xff] }
  0x16   :  { %1092 = vmatpush.bf16.msra.mxu0 %v1905_v21  ;;  %v1946_v59 = vld [vmem:[%s2484_s1 + $0x158] sm:$0xff]  ;;  %v1961_v1 = vld [vmem:[%s2484_s1 + $0x1d0] sm:$0xff]  ;;  %v1944_v3 = vld [vmem:[%s2484_s1 + $0x148] sm:$0xff] }
  0x17   :  { %1105 = vmatpush.bf16.msra.mxu1 %v1913_v22  ;;  %v1954_v60 = vld [vmem:[%s2484_s1 + $0x198] sm:$0xff]  ;;  %v1952_v4 = vld [vmem:[%s2484_s1 + $0x188] sm:$0xff]  ;;  %v1935_v6 = vld [vmem:[%s2484_s1 + $0x100] sm:$0xff] }
  0x18   :  { %1118 = vmatpush.bf16.msra.mxu2 %v1921_v23  ;;  %v1962_v61 = vld [vmem:[%s2484_s1 + $0x1d8] sm:$0xff]  ;;  %v1960_v5 = vld [vmem:[%s2484_s1 + $0x1c8] sm:$0xff]  ;;  %v1943_v7 = vld [vmem:[%s2484_s1 + $0x140] sm:$0xff] }
  0x19   :  { %1131 = vmatpush.bf16.msra.mxu3 %v1929_v24  ;;  %v1951_v8 = vld [vmem:[%s2484_s1 + $0x180] sm:$0xff]  ;;  %v1974_v10 = vld [vmem:[%s2484_s1 + $0x238] sm:$0xff]  ;;  %v1973_v14 = vld [vmem:[%s2484_s1 + $0x230] sm:$0xff] }
  0x1a   :  { %1093 = vmatpush.bf16.msra.mxu0 %v1904_v25  ;;  %v1959_v9 = vld [vmem:[%s2484_s1 + $0x1c0] sm:$0xff]  ;;  %v1982_v11 = vld [vmem:[%s2484_s1 + $0x278] sm:$0xff]  ;;  %v1981_v15 = vld [vmem:[%s2484_s1 + $0x270] sm:$0xff] }
  0x1b   :  { %1106 = vmatpush.bf16.msra.mxu1 %v1912_v26  ;;  %v1990_v12 = vld [vmem:[%s2484_s1 + $0x2b8] sm:$0xff]  ;;  %v1989_v16 = vld [vmem:[%s2484_s1 + $0x2b0] sm:$0xff]  ;;  %v1972_v18 = vld [vmem:[%s2484_s1 + $0x228] sm:$0xff] }
  0x1c   :  { %1119 = vmatpush.bf16.msra.mxu2 %v1920_v27  ;;  %v1998_v13 = vld [vmem:[%s2484_s1 + $0x2f8] sm:$0xff]  ;;  %v1997_v17 = vld [vmem:[%s2484_s1 + $0x2f0] sm:$0xff]  ;;  %v1980_v19 = vld [vmem:[%s2484_s1 + $0x268] sm:$0xff] }
  0x1d   :  { %1132 = vmatpush.bf16.msra.mxu3 %v1928_v28  ;;  %v1988_v20 = vld [vmem:[%s2484_s1 + $0x2a8] sm:$0xff]  ;;  %v1971_v22 = vld [vmem:[%s2484_s1 + $0x220] sm:$0xff]  ;;  %v1970_v26 = vld [vmem:[%s2484_s1 + $0x218] sm:$0xff] }
  0x1e   :  { %1094 = vmatpush.bf16.msra.mxu0 %v1903_v29  ;;  %v1996_v21 = vld [vmem:[%s2484_s1 + $0x2e8] sm:$0xff]  ;;  %v1979_v23 = vld [vmem:[%s2484_s1 + $0x260] sm:$0xff]  ;;  %v1978_v27 = vld [vmem:[%s2484_s1 + $0x258] sm:$0xff] }
  0x1f   :  { %1107 = vmatpush.bf16.msra.mxu1 %v1911_v30  ;;  %v1987_v24 = vld [vmem:[%s2484_s1 + $0x2a0] sm:$0xff]  ;;  %v1986_v28 = vld [vmem:[%s2484_s1 + $0x298] sm:$0xff]  ;;  %v1969_v30 = vld [vmem:[%s2484_s1 + $0x210] sm:$0xff] }
  0x20   :  { %1120 = vmatpush.bf16.msra.mxu2 %v1919_v31  ;;  %v1995_v25 = vld [vmem:[%s2484_s1 + $0x2e0] sm:$0xff]  ;;  %v1994_v29 = vld [vmem:[%s2484_s1 + $0x2d8] sm:$0xff]  ;;  %v1977_v31 = vld [vmem:[%s2484_s1 + $0x250] sm:$0xff] }
  0x21   :  { %1133 = vmatpush.bf16.msra.mxu3 %v1927_v32  ;;  %1095 = vmatmul.bf16.vlgmr.msra.gmra.mxu0 %v285_v39  ;;  %v1985_v32 = vld [vmem:[%s2484_s1 + $0x290] sm:$0xff]  ;;  %v1975_v39 = vld [vmem:[%s2484_s1 + $0x240] sm:$0xff] }
  0x22   :  { %1139 = vmatpush.bf16.msrb.mxu0 %v1942_v33  ;;  %1108 = vmatmul.bf16.vlgmr.msra.gmra.mxu1 %v286_v42  ;;  %v1993_v33 = vld [vmem:[%s2484_s1 + $0x2d0] sm:$0xff]  ;;  %v2006_v42 = vld [vmem:[%s2484_s1 + $0x338] sm:$0xff] }
  0x23   :  { %1152 = vmatpush.bf16.msrb.mxu1 %v1950_v34  ;;  %1121 = vmatmul.bf16.vlgmr.msra.gmra.mxu2 %v287_v38  ;;  %v1968_v34 = vld [vmem:[%s2484_s1 + $0x208] sm:$0xff]  ;;  %v1967_v38 = vld [vmem:[%s2484_s1 + $0x200] sm:$0xff] }
  0x24   :  { %1165 = vmatpush.bf16.msrb.mxu2 %v1958_v35  ;;  %1134 = vmatmul.bf16.vlgmr.msra.gmra.mxu3 %v288_v41  ;;  %v1976_v35 = vld [vmem:[%s2484_s1 + $0x248] sm:$0xff]  ;;  %v1991_v41 = vld [vmem:[%s2484_s1 + $0x2c0] sm:$0xff] }
  0x25   :  { %1178 = vmatpush.bf16.msrb.mxu3 %v1966_v36  ;;  %v1984_v36 = vld [vmem:[%s2484_s1 + $0x288] sm:$0xff]  ;;  %v298_v49 = vld [vmem:[#allocation1 + $0x1b] sm:$0xff] }
  0x26   :  { %1140 = vmatpush.bf16.msrb.mxu0 %v1941_v37  ;;  %v1992_v37 = vld [vmem:[%s2484_s1 + $0x2c8] sm:$0xff] }
  0x27   :  { %1153 = vmatpush.bf16.msrb.mxu1 %v1949_v40  ;;  %v1983_v40 = vld [vmem:[%s2484_s1 + $0x280] sm:$0xff] }
  0x28   :  { %1166 = vmatpush.bf16.msrb.mxu2 %v1957_v43  ;;  %v2014_v43 = vld [vmem:[%s2484_s1 + $0x378] sm:$0xff] }
  0x29   :  { %1179 = vmatpush.bf16.msrb.mxu3 %v1965_v44  ;;  %v2022_v44 = vld [vmem:[%s2484_s1 + $0x3b8] sm:$0xff] }
  0x2a   :  { %1141 = vmatpush.bf16.msrb.mxu0 %v1940_v45  ;;  %v2030_v45 = vld [vmem:[%s2484_s1 + $0x3f8] sm:$0xff] }
  0x2b   :  { %1154 = vmatpush.bf16.msrb.mxu1 %v1948_v46  ;;  %v295_v46 = vld [vmem:[#allocation1] sm:$0xff] }
  0x2c   :  { %1167 = vmatpush.bf16.msrb.mxu2 %v1956_v47  ;;  %v297_v47 = vld [vmem:[#allocation1 + $0x12] sm:$0xff] }
  0x2d   :  { %1180 = vmatpush.bf16.msrb.mxu3 %v1964_v48  ;;  %v296_v48 = vld [vmem:[#allocation1 + $0x9] sm:$0xff] }
  0x2e   :  { %1142 = vmatpush.bf16.msrb.mxu0 %v1939_v54  ;;  %v2004_v54 = vld [vmem:[%s2484_s1 + $0x328] sm:$0xff] }
  0x2f   :  { %1155 = vmatpush.bf16.msrb.mxu1 %v1947_v55  ;;  %v2012_v55 = vld [vmem:[%s2484_s1 + $0x368] sm:$0xff] }
  0x30   :  { %1168 = vmatpush.bf16.msrb.mxu2 %v1955_v56  ;;  %v2020_v56 = vld [vmem:[%s2484_s1 + $0x3a8] sm:$0xff] }
  0x31   :  { %1181 = vmatpush.bf16.msrb.mxu3 %v1963_v57  ;;  %v2028_v57 = vld [vmem:[%s2484_s1 + $0x3e8] sm:$0xff] }
  0x32   :  { %1143 = vmatpush.bf16.msrb.mxu0 %v1938_v58  ;;  %v2003_v58 = vld [vmem:[%s2484_s1 + $0x320] sm:$0xff] }
  0x33   :  { %1156 = vmatpush.bf16.msrb.mxu1 %v1946_v59  ;;  %v2011_v59 = vld [vmem:[%s2484_s1 + $0x360] sm:$0xff] }
  0x34   :  { %1169 = vmatpush.bf16.msrb.mxu2 %v1954_v60  ;;  %v2019_v60 = vld [vmem:[%s2484_s1 + $0x3a0] sm:$0xff] }
  0x35   :  { %1182 = vmatpush.bf16.msrb.mxu3 %v1962_v61  ;;  %v2027_v61 = vld [vmem:[%s2484_s1 + $0x3e0] sm:$0xff] }
  0x36   :  { %1144 = vmatpush.bf16.msrb.mxu0 %v1937_v62  ;;  %v2002_v62 = vld [vmem:[%s2484_s1 + $0x318] sm:$0xff] }
  0x37   :  { %1157 = vmatpush.bf16.msrb.mxu1 %v1945_v63  ;;  %v2010_v63 = vld [vmem:[%s2484_s1 + $0x358] sm:$0xff] }
  0x38   :  { %1170 = vmatpush.bf16.msrb.mxu2 %v1953_v0  ;;  %v2018_v0 = vld [vmem:[%s2484_s1 + $0x398] sm:$0xff] }
  0x39   :  { %1183 = vmatpush.bf16.msrb.mxu3 %v1961_v1  ;;  %v2026_v1 = vld [vmem:[%s2484_s1 + $0x3d8] sm:$0xff] }
  0x3a   :  { %1145 = vmatpush.bf16.msrb.mxu0 %v1936_v2  ;;  %v2001_v2 = vld [vmem:[%s2484_s1 + $0x310] sm:$0xff] }
  0x3b   :  { %1158 = vmatpush.bf16.msrb.mxu1 %v1944_v3  ;;  %v2009_v3 = vld [vmem:[%s2484_s1 + $0x350] sm:$0xff] }
  0x3c   :  { %1171 = vmatpush.bf16.msrb.mxu2 %v1952_v4  ;;  %v2017_v4 = vld [vmem:[%s2484_s1 + $0x390] sm:$0xff] }
  0x3d   :  { %1184 = vmatpush.bf16.msrb.mxu3 %v1960_v5  ;;  %v2025_v5 = vld [vmem:[%s2484_s1 + $0x3d0] sm:$0xff] }
  0x3e   :  { %1146 = vmatpush.bf16.msrb.mxu0 %v1935_v6  ;;  %v2000_v6 = vld [vmem:[%s2484_s1 + $0x308] sm:$0xff] }
  0x3f   :  { %1159 = vmatpush.bf16.msrb.mxu1 %v1943_v7  ;;  %v2008_v7 = vld [vmem:[%s2484_s1 + $0x348] sm:$0xff] }
  0x40   :  { %1172 = vmatpush.bf16.msrb.mxu2 %v1951_v8  ;;  %v2016_v8 = vld [vmem:[%s2484_s1 + $0x388] sm:$0xff] }
  0x41   :  { %1185 = vmatpush.bf16.msrb.mxu3 %v1959_v9  ;;  %1147 = vmatmul.bf16.vlgmr.msrb.gmra.mxu0 %v289_v51  ;;  %v2013_v51 = vld [vmem:[%s2484_s1 + $0x370] sm:$0xff]  ;;  %v2024_v9 = vld [vmem:[%s2484_s1 + $0x3c8] sm:$0xff] }
  0x42   :  { %1191 = vmatpush.bf16.msra.mxu0 %v1974_v10  ;;  %1160 = vmatmul.bf16.vlgmr.msrb.gmra.mxu1 %v290_v53  ;;  %v2029_v53 = vld [vmem:[%s2484_s1 + $0x3f0] sm:$0xff]  ;;  %v1999_v10 = vld [vmem:[%s2484_s1 + $0x300] sm:$0xff] }
  0x43   :  { %1204 = vmatpush.bf16.msra.mxu1 %v1982_v11  ;;  %1173 = vmatmul.bf16.vlgmr.msrb.gmra.mxu2 %v291_v50  ;;  %v2005_v50 = vld [vmem:[%s2484_s1 + $0x330] sm:$0xff]  ;;  %v2007_v11 = vld [vmem:[%s2484_s1 + $0x340] sm:$0xff] }
  0x44   :  { %1217 = vmatpush.bf16.msra.mxu2 %v1990_v12  ;;  %1186 = vmatmul.bf16.vlgmr.msrb.gmra.mxu3 %v292_v52  ;;  %v2021_v52 = vld [vmem:[%s2484_s1 + $0x3b0] sm:$0xff]  ;;  %v2015_v12 = vld [vmem:[%s2484_s1 + $0x380] sm:$0xff] }
  0x45   :  { %1230 = vmatpush.bf16.msra.mxu3 %v1998_v13  ;;  %v2023_v13 = vld [vmem:[%s2484_s1 + $0x3c0] sm:$0xff] }
  0x46   :  { %1192 = vmatpush.bf16.msra.mxu0 %v1973_v14  ;;  %v299_v14 = vld [vmem:[#allocation1 + $0x24] sm:$0xff] }
  0x47   :  { %1205 = vmatpush.bf16.msra.mxu1 %v1981_v15  ;;  %v300_v15 = vld [vmem:[#allocation1 + $0x2d] sm:$0xff] }
  0x48   :  { %1218 = vmatpush.bf16.msra.mxu2 %v1989_v16  ;;  %v301_v16 = vld [vmem:[#allocation1 + $0x36] sm:$0xff] }
  0x49   :  { %1231 = vmatpush.bf16.msra.mxu3 %v1997_v17  ;;  %v302_v17 = vld [vmem:[#allocation1 + $0x3f] sm:$0xff] }
  0x4a   :  { %1193 = vmatpush.bf16.msra.mxu0 %v1972_v18  ;;  %v2035_v18 = vld [vmem:[%s2486_s2] ss:$0 sm:$0xff] }
  0x4b   :  { %1206 = vmatpush.bf16.msra.mxu1 %v1980_v19 }
  0x4c   :  { %1219 = vmatpush.bf16.msra.mxu2 %v1988_v20 }
  0x4d   :  { %1232 = vmatpush.bf16.msra.mxu3 %v1996_v21 }
  0x4e   :  { %1194 = vmatpush.bf16.msra.mxu0 %v1971_v22 }
  0x4f   :  { %1207 = vmatpush.bf16.msra.mxu1 %v1979_v23 }
  0x50   :  { %1220 = vmatpush.bf16.msra.mxu2 %v1987_v24 }
  0x51   :  { %1233 = vmatpush.bf16.msra.mxu3 %v1995_v25 }
  0x52   :  { %1195 = vmatpush.bf16.msra.mxu0 %v1970_v26 }
  0x53   :  { %1208 = vmatpush.bf16.msra.mxu1 %v1978_v27 }
  0x54   :  { %1221 = vmatpush.bf16.msra.mxu2 %v1986_v28 }
  0x55   :  { %1234 = vmatpush.bf16.msra.mxu3 %v1994_v29 }
  0x56   :  { %1196 = vmatpush.bf16.msra.mxu0 %v1969_v30 }
  0x57   :  { %1209 = vmatpush.bf16.msra.mxu1 %v1977_v31 }
  0x58   :  { %1222 = vmatpush.bf16.msra.mxu2 %v1985_v32 }
  0x59   :  { %1235 = vmatpush.bf16.msra.mxu3 %v1993_v33 }
  0x5a   :  { %1197 = vmatpush.bf16.msra.mxu0 %v1968_v34 }
  0x5b   :  { %1210 = vmatpush.bf16.msra.mxu1 %v1976_v35 }
  0x5c   :  { %1223 = vmatpush.bf16.msra.mxu2 %v1984_v36 }
  0x5d   :  { %1236 = vmatpush.bf16.msra.mxu3 %v1992_v37 }
  0x5e   :  { %1198 = vmatpush.bf16.msra.mxu0 %v1967_v38 }
  0x5f   :  { %1211 = vmatpush.bf16.msra.mxu1 %v1975_v39 }
  0x60   :  { %1224 = vmatpush.bf16.msra.mxu2 %v1983_v40  ;;  %v2034_v40 = vld [vmem:[%s2488_s3 + $0x18] sm:$0xff] }
  0x61   :  { %1237 = vmatpush.bf16.msra.mxu3 %v1991_v41  ;;  %1199 = vmatmul.bf16.vlgmr.msra.gmra.mxu0 %v295_v46 }
  0x62   :  { %1243 = vmatpush.bf16.msrb.mxu0 %v2006_v42  ;;  %1212 = vmatmul.bf16.vlgmr.msra.gmra.mxu1 %v296_v48 }
  0x63   :  { %1256 = vmatpush.bf16.msrb.mxu1 %v2014_v43  ;;  %1225 = vmatmul.bf16.vlgmr.msra.gmra.mxu2 %v297_v47  ;;  %v2033_v43 = vld [vmem:[%s2488_s3 + $0x10] sm:$0xff] }
  0x64   :  { %1269 = vmatpush.bf16.msrb.mxu2 %v2022_v44  ;;  %1238 = vmatmul.bf16.vlgmr.msra.gmra.mxu3 %v298_v49  ;;  %v2032_v49 = vld [vmem:[%s2488_s3 + $0x8] sm:$0xff] }
  0x65   :  { %1282 = vmatpush.bf16.msrb.mxu3 %v2030_v45 }
  0x66   :  { %1244 = vmatpush.bf16.msrb.mxu0 %v2005_v50 }
  0x67   :  { %1257 = vmatpush.bf16.msrb.mxu1 %v2013_v51  ;;  %v2031_v51 = vld [vmem:[%s2488_s3] sm:$0xff] }
  0x68   :  { %1270 = vmatpush.bf16.msrb.mxu2 %v2021_v52 }
  0x69   :  { %1283 = vmatpush.bf16.msrb.mxu3 %v2029_v53 }
  0x6a   :  { %1245 = vmatpush.bf16.msrb.mxu0 %v2004_v54 }
  0x6b   :  { %1258 = vmatpush.bf16.msrb.mxu1 %v2012_v55 }
  0x6c   :  { %1271 = vmatpush.bf16.msrb.mxu2 %v2020_v56 }
  0x6d   :  { %1284 = vmatpush.bf16.msrb.mxu3 %v2028_v57 }
  0x6e   :  { %1246 = vmatpush.bf16.msrb.mxu0 %v2003_v58 }
  0x6f   :  { %1259 = vmatpush.bf16.msrb.mxu1 %v2011_v59 }
  0x70   :  { %1272 = vmatpush.bf16.msrb.mxu2 %v2019_v60 }
  0x71   :  { %1285 = vmatpush.bf16.msrb.mxu3 %v2027_v61 }
  0x72   :  { %1247 = vmatpush.bf16.msrb.mxu0 %v2002_v62 }
  0x73   :  { %1260 = vmatpush.bf16.msrb.mxu1 %v2010_v63 }
  0x74   :  { %1273 = vmatpush.bf16.msrb.mxu2 %v2018_v0 }
  0x75   :  { %1286 = vmatpush.bf16.msrb.mxu3 %v2026_v1 }
  0x76   :  { %1248 = vmatpush.bf16.msrb.mxu0 %v2001_v2 }
  0x77   :  { %1261 = vmatpush.bf16.msrb.mxu1 %v2009_v3 }
  0x78   :  { %1274 = vmatpush.bf16.msrb.mxu2 %v2017_v4 }
  0x79   :  { %1287 = vmatpush.bf16.msrb.mxu3 %v2025_v5 }
  0x7a   :  { %1249 = vmatpush.bf16.msrb.mxu0 %v2000_v6 }
  0x7b   :  { %1262 = vmatpush.bf16.msrb.mxu1 %v2008_v7 }
  0x7c   :  { %1275 = vmatpush.bf16.msrb.mxu2 %v2016_v8 }
  0x7d   :  { %1288 = vmatpush.bf16.msrb.mxu3 %v2024_v9  ;;  %v2036_v9 = vld [vmem:[%s2487_s4] ss:$0 sm:$0xff] }
  0x7e   :  { %1250 = vmatpush.bf16.msrb.mxu0 %v1999_v10 }
  0x7f   :  { %1263 = vmatpush.bf16.msrb.mxu1 %v2007_v11 }
  0x80   :  { %1276 = vmatpush.bf16.msrb.mxu2 %v2015_v12 }
  0x81   :  { %1289 = vmatpush.bf16.msrb.mxu3 %v2023_v13  ;;  %1251 = vmatmul.bf16.vlgmr.msrb.gmra.mxu0 %v299_v14 }
  0x82   :  { %1264 = vmatmul.bf16.vlgmr.msrb.gmra.mxu1 %v300_v15  ;;  %1341 = vmatpush.bf16.msra.mxu0 %v2034_v40 }
  0x83   :  { %1277 = vmatmul.bf16.vlgmr.msrb.gmra.mxu2 %v301_v16 }
  0x84   :  { %1290 = vmatmul.bf16.vlgmr.msrb.gmra.mxu3 %v302_v17 }
  0x86   :  { %1342 = vmatpush.bf16.msra.mxu0 %v2033_v43 }
  0x8a   :  { %1343 = vmatpush.bf16.msra.mxu0 %v2032_v49 }
  0x8e   :  { %1344 = vmatpush.bf16.msra.mxu0 %v2031_v51 }
  0x9e   :  { %v1096_v19 = vpop.f32.mrf.mxu0 }
  0x9f   :  { %v1097_v20 = vadd.f32 %v2035_v18, %v1096_v19  ;;  %v1109_v21 = vpop.f32.mrf.mxu1 }
  0xa1   :  { %v1110_v22 = vadd.f32 %v1109_v21, %v1097_v20 }
  0xa6   :  { %v1122_v23 = vpop.f32.mrf.mxu2  ;;  %v1098_v26 = vpop.f32.mrf.mxu0 }
  0xa7   :  { %v1123_v24 = vadd.f32 %v1122_v23, %v1110_v22  ;;  %v1135_v25 = vpop.f32.mrf.mxu3  ;;  %v1111_v28 = vpop.f32.mrf.mxu1 }
  0xa9   :  { %v1136_v27 = vadd.f32 %v1135_v25, %v1123_v24 }
  0xae   :  { %v1124_v29 = vpop.f32.mrf.mxu2 }
  0xaf   :  { %v1137_v30 = vpop.f32.mrf.mxu3 }
  0xbe   :  { %v1148_v31 = vpop.f32.mrf.mxu0 }
  0xbf   :  { %v1161_v32 = vpop.f32.mrf.mxu1  ;;  %v1149_v42 = vadd.f32 %v1148_v31, %v1136_v27 }
  0xc1   :  { %v1162_v47 = vadd.f32 %v1161_v32, %v1149_v42 }
  0xc6   :  { %v1174_v33 = vpop.f32.mrf.mxu2  ;;  %v1150_v35 = vpop.f32.mrf.mxu0 }
  0xc7   :  { %v1187_v34 = vpop.f32.mrf.mxu3  ;;  %v1163_v36 = vpop.f32.mrf.mxu1  ;;  %v1175_v50 = vadd.f32 %v1174_v33, %v1162_v47 }
  0xc9   :  { %v1188_v54 = vadd.f32 %v1187_v34, %v1175_v50 }
  0xce   :  { %v1176_v37 = vpop.f32.mrf.mxu2 }
  0xcf   :  { %v1189_v38 = vpop.f32.mrf.mxu3 }
  0xde   :  { %v1200_v39 = vpop.f32.mrf.mxu0 }
  0xdf   :  { %v1213_v41 = vpop.f32.mrf.mxu1  ;;  %v1201_v55 = vadd.f32 %v1200_v39, %v1188_v54 }
  0xe1   :  { %v1214_v56 = vadd.f32 %v1213_v41, %v1201_v55 }
  0xe6   :  { %v1226_v44 = vpop.f32.mrf.mxu2  ;;  %v1202_v46 = vpop.f32.mrf.mxu0 }
  0xe7   :  { %v1239_v45 = vpop.f32.mrf.mxu3  ;;  %v1215_v48 = vpop.f32.mrf.mxu1  ;;  %v1227_v57 = vadd.f32 %v1226_v44, %v1214_v56 }
  0xe9   :  { %v1240_v58 = vadd.f32 %v1239_v45, %v1227_v57 }
  0xee   :  { %v1228_v52 = vpop.f32.mrf.mxu2 }
  0xef   :  { %v1241_v53 = vpop.f32.mrf.mxu3 }
  0xfe   :  { %v1252_v59 = vpop.f32.mrf.mxu0 }
  0xff   :  { %v1265_v60 = vpop.f32.mrf.mxu1  ;;  %v1253_v61 = vadd.f32 %v1252_v59, %v1240_v58 }
 0x101   :  { %v1266_v62 = vadd.f32 %v1265_v60, %v1253_v61 }
 0x106   :  { %v1278_v63 = vpop.f32.mrf.mxu2  ;;  %v1254_v2 = vpop.f32.mrf.mxu0 }
 0x107   :  { %v1291_v0 = vpop.f32.mrf.mxu3  ;;  %v1279_v1 = vadd.f32 %v1278_v63, %v1266_v62  ;;  %v1267_v3 = vpop.f32.mrf.mxu1 }
 0x109   :  { %v1292_v4 = vadd.f32 %v1291_v0, %v1279_v1 }
 0x10b   :  { %2037 = vtanh.f32 %v1292_v4 }
 0x10e   :  { %v1280_v5 = vpop.f32.mrf.mxu2 }
 0x10f   :  { %v1293_v6 = vpop.f32.mrf.mxu3 }
 0x111   :  { %v2038_v7 = vpop.eup %2037 }
 0x112   :  { %v1296_v8 = vpack.c.bf16 %v2038_v7, %v2038_v7 }
 0x114   :  { %1902 = vmatmul.msk.bf16.vlgmr.msra.gmra.mxu0 %vm1333_vm0, %v1296_v8 }
 0x191   :  { %v1346_v10 = vpop.f32.mrf.mxu0 }
 0x192   :  { %v1347_v11 = vadd.f32 %v2036_v9, %v1346_v10 }
 0x194   :  { %v1350_v12 = vsub.f32 0.0, %v1347_v11 }
 0x196   :  { %v1351_v13 = vmul.f32 1.442695, %v1350_v12 }
 0x198   :  { %2039 = vpow2.f32 %v1351_v13 }
 0x199   :  { %v1348_v14 = vpop.f32.mrf.mxu0 }
 0x19e   :  { %v2040_v15 = vpop.eup %2039 }
 0x19f   :  { %v1353_v16 = vadd.f32 1.0, %v2040_v15 }
 0x1a1   :  { %2041 = vrcp.f32 %v1353_v16  ;;  %v1365_v20 = vand.u32 2147483648, %v1353_v16  ;;  %v1363_v22 = vand.u32 2147483647, %v1353_v16  ;;  %vm1359_vm2 = vweird.f32 %v1353_v16 }
 0x1a3   :  { %v1366_v24 = vor.u32 1.1754944e-38, %v1365_v20  ;;  %vm1364_vm4 = vcmp.eq.f32.partialorder %v1363_v22, 8.507059e+37 }
 0x1a7   :  { %v2042_v17 = vpop.eup %2041 }
 0x1a8   :  { %v1355_v18 = vmul.f32 %v2042_v17, %v1353_v16  ;;  %vm1360_vm1 = vweird.f32 %v2042_v17 }
 0x1a9   :  { %vm1361_vm3 = vmor %vm1359_vm2, %vm1360_vm1 }
 0x1aa   :  { %v1356_v19 = vsub.f32 1.0, %v1355_v18 }
 0x1ac   :  { %v1357_v21 = vmul.f32 %v2042_v17, %v1356_v19 }
 0x1ae   :  { %v1358_v23 = vadd.f32 %v2042_v17, %v1357_v21 }
 0x1b0   :  { %v1362_v25 = vsel %vm1361_vm3, %v2042_v17, %v1358_v23 }
 0x1b1   :  { %v1367_v26 = vsel %vm1364_vm4, %v1366_v24, %v1362_v25 }
 0x1b2   :  { %1369 = vst [vmem:[%s2489_s5] sm:$0x3] %v1367_v26 }

// kernel: racnn_forward.9
= control target key start
LH: loop header
LB: loop body
LE: loop exit
PB: predicated region body
PF: predicated region fallthrough
CT: control target
= control target key end

     0   :  { %s1081_s12 = smov [#allocation3]   ;;  %s1668_s0 = inlined_call_operand.vmem [shape: s32[8], index: 0, kind: input, shape index: {}]   ;;  %s1669_s1 = inlined_call_operand.vmem [shape: f32[2,64,192], index: 1, kind: input, shape index: {}]   ;;  %s1670_s2 = inlined_call_operand.vmem [shape: f32[2,32,96], index: 2, kind: output, shape index: {}]  }
   0x1   :  { %s8_s11 = sshll.u32 %s1668_s0, 4  ;;  %s9_s11 = int_to_ptr.vmem [resolvable:$true] %s8_s11 }
   0x2   :  { %11 = dma.vmem_to_smem %s9_s11, 16, %s1081_s12, [#allocation2] }
   0x3   :  { %1075 = dma.done.wait [#allocation2], 16 }
   0x4   :  { %1076 = vsyncadd [#allocation2], 4294967280 }
   0x5   :  { %14 = sfence }
   0x6   :  { %s1102_s13 = smov 0  }
   0x7 LB: > { %s924_s14 = sadd.s32 4294967295, %s1079_s13   ;;  %p928_p0 = scmp.ge.s32.totalorder %s1079_s13, 1  ;;  %s1079_s13 = sphi %s1102_s13, %s20_s13  }
   0x8   : > { %p96_p1 = scmp.lt.s32.totalorder %s1079_s13, 3 }
   0xa   : > { %p97_p2 = pnand %p928_p0, %p96_p1 }
   0xb   : > { %p116_p3 = scmp.lt.s32.totalorder (!%p97_p2), %s924_s14, 1  ;;  %s1110_s0 = sshll.u32 (!%p97_p2), %s924_s14, 2 }
   0xc   : > { %100 = sbr.rel (%p97_p2) target bundleno = 582 (0x246), region = 24  ;;  %s127_s15 = sld [smem:[#allocation3 + %s1110_s0]] (!%p97_p2) }
   0xd   : > { %s129_s16 = sadd.s32 (!%p97_p2), 1, %s1110_s0  ;;  %s132_s27 = sadd.s32 (!%p97_p2), 2, %s1110_s0 }
   0xe   : > { %s130_s17 = sld [smem:[#allocation3 + %s129_s16]] (!%p97_p2)  ;;  %s135_s28 = sadd.s32 (!%p97_p2), 3, %s1110_s0 }
   0xf   : > { %s1146_s29 = sld [smem:[#allocation3 + %s132_s27]] (!%p97_p2)  ;;  %s1082_s8 = smov (!%p97_p2), 64  }
  0x10   : > { %s1150_s30 = sld [smem:[#allocation3 + %s135_s28]] (!%p97_p2)  ;;  %s1083_s9 = smov (!%p97_p2), 32  }
  0x11   : > { %v138_v0 = vlaneseq  ;;  %s1726_s14 = smov (!%p116_p3, %s924_s14), 1  ;;  %vm625_vm8 = vcmask 523264  }
  0x12   : > { %s958_s18 = sshll.u32 %s1726_s14, 7  ;;  %s128_s22 = scvt.s32.f32 %s127_s15 }
  0x13   : > { %v139_v1 = vand.u32 127, %v138_v0  ;;  %s1120_s21 = scalar_lea.vmem %s1669_s1, %s958_s18  ;;  %v1134_v13 = vshrl.u32 %v138_v0, 7  ;;  %s959_s10 = sshll.u32 %s1726_s14, 5 }
  0x14   : > { %v623_v2 = vld [vmem:[%s1120_s21 + $0x70] sm:$0xff]  ;;  %v621_v3 = vld [vmem:[%s1120_s21 + $0x60] sm:$0xff]  ;;  %s131_s23 = scvt.s32.f32 %s130_s17  ;;  %v1127_v6 = vstv %s128_s22  ;;  %v624_v33 = vld [vmem:[%s1120_s21 + $0x78] sm:$0xff]  ;;  %s125_s0 = scalar_lea.vmem %s1670_s2, %s959_s10 }
  0x15   : > { %v1124_v4 = vcvt.s32.f32 %v139_v1  ;;  %646 = vmatpush.msra.mxu0 %v623_v2  ;;  %960 = vmatpush.msra.mxu1 %v623_v2  ;;  %v619_v5 = vld [vmem:[%s1120_s21 + $0x50] sm:$0xff]  ;;  %v617_v7 = vld [vmem:[%s1120_s21 + $0x40] sm:$0xff]  ;;  %v187_v17 = vadd.s32 16, %v1134_v13  ;;  %v186_v20 = vadd.s32 8, %v1134_v13  ;;  %v1143_v21 = vcvt.s32.f32 %v1134_v13  ;;  %v622_v34 = vld [vmem:[%s1120_s21 + $0x68] sm:$0xff]  ;;  %s134_s3 = scvt.s32.f32 %s1146_s29 }
  0x16   : > { %v162_v9 = vstv %s131_s23  ;;  %s531_s24 = ssub.f32 %s131_s23, %s128_s22  ;;  %v615_v10 = vld [vmem:[%s1120_s21 + $0x30] sm:$0xff]  ;;  %v613_v14 = vld [vmem:[%s1120_s21 + $0x20] sm:$0xff]  ;;  %v188_v36 = vadd.s32 24, %v1134_v13  ;;  %v620_v38 = vld [vmem:[%s1120_s21 + $0x58] sm:$0xff]  ;;  %s137_s4 = scvt.s32.f32 %s1150_s30  ;;  %v192_v46 = vadd.s32 56, %v1134_v13 }
  0x17   : > { %647 = vmatpush.msra.mxu0 %v621_v3  ;;  %961 = vmatpush.msra.mxu1 %v621_v3  ;;  %v142_v8 = vsub.f32 %v1124_v4, %v1127_v6  ;;  %v163_v12 = vsub.f32 %v1124_v4, %v162_v9  ;;  %v611_v18 = vld [vmem:[%s1120_s21 + $0x10] sm:$0xff]  ;;  %v609_v22 = vld [vmem:[%s1120_s21] sm:$0xff]  ;;  %v1148_v24 = vcvt.s32.f32 %v187_v17  ;;  %v1152_v25 = vcvt.s32.f32 %v186_v20  ;;  %v618_v41 = vld [vmem:[%s1120_s21 + $0x48] sm:$0xff] }
  0x18   : > { %s934_s25 = sadd.f32 -1.0, %s531_s24  ;;  %v1176_v42 = vcvt.s32.f32 %v188_v36  ;;  %v616_v45 = vld [vmem:[%s1120_s21 + $0x38] sm:$0xff]  ;;  %v1182_v48 = vstv %s134_s3  ;;  %v1184_v49 = vstv %s137_s4  ;;  %v614_v53 = vld [vmem:[%s1120_s21 + $0x28] sm:$0xff]  ;;  %v1190_v54 = vcvt.s32.f32 %v192_v46 }
  0x19   : > { %648 = vmatpush.msra.mxu0 %v619_v5  ;;  %962 = vmatpush.msra.mxu1 %v619_v5  ;;  %v143_v11 = vmul.f32 -10.0, %v142_v8  ;;  %v164_v16 = vmul.f32 -10.0, %v163_v12  ;;  %s1174_s5 = ssub.f32 %s137_s4, %s134_s3  ;;  %v612_v62 = vld [vmem:[%s1120_s21 + $0x18] sm:$0xff]  ;;  %v364_v3 = vsub.f32 %v1152_v25, %v1184_v49 }
  0x1a   : > { %s533_s26 = smul.f32 0.032258064, %s934_s25  ;;  %v209_v1 = vsub.f32 %v1190_v54, %v1182_v48  ;;  %v370_v2 = vsub.f32 %v1190_v54, %v1184_v49 }
  0x1b   : > { %649 = vmatpush.msra.mxu0 %v617_v7  ;;  %963 = vmatpush.msra.mxu1 %v617_v7  ;;  %v144_v15 = vmul.f32 1.442695, %v143_v11  ;;  %v165_v19 = vmul.f32 1.442695, %v164_v16  ;;  %s935_s6 = sadd.f32 -1.0, %s1174_s5 }
  0x1c   : > { %v534_v23 = vstv %s533_s26  ;;  %v378_v11 = vmul.f32 -10.0, %v370_v2  ;;  %v203_v2 = vsub.f32 %v1152_v25, %v1182_v48 }
  0x1d   : > { %650 = vmatpush.msra.mxu0 %v615_v10  ;;  %964 = vmatpush.msra.mxu1 %v615_v10  ;;  %987 = vpow2.f32 %v144_v15  ;;  %v535_v26 = vmul.f32 %v534_v23, %v1143_v21  ;;  %v537_v29 = vmul.f32 %v534_v23, %v1148_v24  ;;  %v536_v31 = vmul.f32 %v534_v23, %v1152_v25  ;;  %s565_s7 = smul.f32 0.032258064, %s935_s6 }
  0x1e   : > { %989 = vpow2.f32 %v165_v19  ;;  %v538_v52 = vmul.f32 %v534_v23, %v1176_v42  ;;  %v217_v10 = vmul.f32 -10.0, %v209_v1  ;;  %v393_v20 = vmul.f32 1.442695, %v378_v11 }
  0x1f   : > { %651 = vmatpush.msra.mxu0 %v613_v14  ;;  %965 = vmatpush.msra.mxu1 %v613_v14  ;;  %v539_v32 = vadd.f32 %v535_v26, %v1127_v6  ;;  %v541_v37 = vadd.f32 %v537_v29, %v1127_v6  ;;  %v540_v39 = vadd.f32 %v536_v31, %v1127_v6  ;;  %v566_v29 = vstv %s565_s7 }
  0x20   : > { %v542_v61 = vadd.f32 %v538_v52, %v1127_v6  ;;  %v232_v19 = vmul.f32 1.442695, %v217_v10 }
  0x21   : > { %652 = vmatpush.msra.mxu0 %v611_v18  ;;  %966 = vmatpush.msra.mxu1 %v611_v18  ;;  %v543_v40 = vsub.f32 %v539_v32, %v1124_v4  ;;  %v545_v44 = vsub.f32 %v541_v37, %v1124_v4  ;;  %v544_v50 = vsub.f32 %v540_v39, %v1124_v4 }
  0x22   : > { %v546_v7 = vsub.f32 %v542_v61, %v1124_v4  ;;  %v567_v37 = vmul.f32 %v566_v29, %v1124_v4 }
  0x23   : > { %653 = vmatpush.msra.mxu0 %v609_v22  ;;  %967 = vmatpush.msra.mxu1 %v609_v22  ;;  %v988_v27 = vpop.eup %987  ;;  %v547_v51 = vand.u32 2147483647, %v543_v40  ;;  %v549_v60 = vand.u32 2147483647, %v545_v44  ;;  %v548_v23 = vand.u32 2147483647, %v544_v50 }
  0x24   : > { %v1155_v28 = vadd.f32 1.0, %v988_v27  ;;  %v990_v30 = vpop.eup %989  ;;  %v550_v26 = vand.u32 2147483647, %v546_v7  ;;  %v610_v27 = vld [vmem:[%s1120_s21 + $0x8] sm:$0xff]  ;;  %v205_v7 = vsub.f32 %v1176_v42, %v1182_v48 }
  0x25   : > { %v1163_v35 = vadd.f32 1.0, %v990_v30  ;;  %675 = vmatpush.msrb.mxu1 %v624_v33  ;;  %v551_v14 = vsub.f32 1.0, %v547_v51  ;;  %v553_v15 = vsub.f32 1.0, %v549_v60  ;;  %v191_v30 = vadd.s32 48, %v1134_v13 }
  0x26   : > { %991 = vrcp.f32 %v1155_v28  ;;  %vm152_vm0 = vweird.f32 %v1155_v28  ;;  %v156_v57 = vand.u32 2147483647, %v1155_v28  ;;  %v158_v58 = vand.u32 2147483648, %v1155_v28 }
  0x27   : > { %993 = vrcp.f32 %v1163_v35  ;;  %676 = vmatpush.msrb.mxu1 %v622_v34  ;;  %vm173_vm2 = vweird.f32 %v1163_v35  ;;  %v179_v0 = vand.u32 2147483648, %v1163_v35  ;;  %v177_v6 = vand.u32 2147483647, %v1163_v35 }
  0x28   : > { %v159_v9 = vor.u32 1.1754944e-38, %v158_v58  ;;  %vm157_vm5 = vcmp.eq.f32.partialorder %v156_v57, 8.507059e+37  ;;  %995 = vpow2.f32 %v232_v19  ;;  %v555_v32 = vmax.f32 %v551_v14, 0.0 }
  0x29   : > { %677 = vmatpush.msrb.mxu1 %v620_v38  ;;  %v180_v18 = vor.u32 1.1754944e-38, %v179_v0  ;;  %vm178_vm7 = vcmp.eq.f32.partialorder %v177_v6, 8.507059e+37  ;;  %v557_v33 = vmax.f32 %v553_v15, 0.0  ;;  %997 = vpow2.f32 %v393_v20 }
  0x2a   : > { %v552_v38 = vsub.f32 1.0, %v548_v23  ;;  %v554_v39 = vsub.f32 1.0, %v550_v26  ;;  %v1237_v51 = vadd.f32 %v567_v37, %v1182_v48  ;;  %v202_v58 = vsub.f32 %v1143_v21, %v1182_v48 }
  0x2b   : > { %678 = vmatpush.msrb.mxu1 %v618_v41  ;;  %v366_v37 = vsub.f32 %v1176_v42, %v1184_v49 }
  0x2c   : > { %v992_v43 = vpop.eup %991  ;;  %v556_v4 = vmax.f32 %v552_v38, 0.0  ;;  %v558_v52 = vmax.f32 %v554_v39, 0.0  ;;  %v1254_v0 = vmul.f32 -10.0, %v202_v58 }
  0x2d   : > { %v148_v47 = vmul.f32 %v992_v43, %v1155_v28  ;;  %v994_v55 = vpop.eup %993  ;;  %vm153_vm1 = vweird.f32 %v992_v43  ;;  %679 = vmatpush.msrb.mxu1 %v616_v45 }
  0x2e   : > { %v169_v59 = vmul.f32 %v994_v55, %v1163_v35  ;;  %vm1207_vm3 = vmor %vm152_vm0, %vm153_vm1  ;;  %vm174_vm4 = vweird.f32 %v994_v55  ;;  %v1225_v35 = vcvt.s32.f32 %v191_v30  ;;  %v996_v45 = vpop.eup %995 }
  0x2f   : > { %v149_v56 = vsub.f32 1.0, %v148_v47  ;;  %680 = vmatpush.msrb.mxu1 %v614_v53  ;;  %vm1217_vm6 = vmor %vm173_vm2, %vm174_vm4  ;;  %v998_v50 = vpop.eup %997  ;;  %v241_v53 = vadd.f32 1.0, %v996_v45 }
  0x30   : > { %v170_v5 = vsub.f32 1.0, %v169_v59  ;;  %v208_v40 = vsub.f32 %v1225_v35, %v1182_v48  ;;  %v369_v41 = vsub.f32 %v1225_v35, %v1184_v49  ;;  %v363_v59 = vsub.f32 %v1143_v21, %v1184_v49 }
  0x31   : > { %v150_v63 = vmul.f32 %v992_v43, %v149_v56  ;;  %681 = vmatpush.msrb.mxu1 %v612_v62  ;;  %999 = vrcp.f32 %v241_v53  ;;  %v576_v62 = vsub.f32 %v1237_v51, %v1190_v54  ;;  %v204_v54 = vsub.f32 %v1148_v24, %v1182_v48 }
  0x32   : > { %v171_v12 = vmul.f32 %v994_v55, %v170_v5  ;;  %v216_v46 = vmul.f32 -10.0, %v208_v40  ;;  %v377_v47 = vmul.f32 -10.0, %v369_v41  ;;  %v1256_v1 = vmul.f32 -10.0, %v363_v59 }
  0x33   : > { %v151_v8 = vadd.f32 %v992_v43, %v150_v63  ;;  %682 = vmatpush.msrb.mxu1 %v610_v27  ;;  %v190_v63 = vadd.s32 40, %v1134_v13  ;;  %vm352_vm9 = vweird.f32 %v241_v53  ;;  %v356_v11 = vand.u32 2147483647, %v241_v53 }
  0x34   : > { %v172_v22 = vadd.f32 %v994_v55, %v171_v12  ;;  %v230_v56 = vmul.f32 1.442695, %v216_v46  ;;  %v391_v57 = vmul.f32 1.442695, %v377_v47  ;;  %v358_v12 = vand.u32 2147483648, %v241_v53 }
  0x35   : > { %v155_v16 = vsel %vm1207_vm3, %v992_v43, %v151_v8  ;;  %v1262_v5 = vcvt.s32.f32 %v190_v63  ;;  %v584_v8 = vand.u32 2147483647, %v576_v62  ;;  %vm357_vm14 = vcmp.eq.f32.partialorder %v356_v11, 8.507059e+37 }
  0x36   : > { %v160_v28 = vsel %vm157_vm5, %v159_v9, %v155_v16  ;;  %v176_v31 = vsel %vm1217_vm6, %v994_v55, %v172_v22  ;;  %v402_v55 = vadd.f32 1.0, %v998_v50  ;;  %v1298_v46 = vmul.f32 -10.0, %v205_v7 }
  0x37   : > { %v181_v34 = vsel %vm178_vm7, %v180_v18, %v176_v31  ;;  %v1000_v6 = vpop.eup %999  ;;  %v207_v14 = vsub.f32 %v1262_v5, %v1182_v48  ;;  %v592_v30 = vsub.f32 1.0, %v584_v8  ;;  %v575_v31 = vsub.f32 %v1237_v51, %v1225_v35 }
  0x38   : > { %v183_v36 = vsub.f32 %v160_v28, %v181_v34  ;;  %1001 = vrcp.f32 %v402_v55  ;;  %v348_v10 = vmul.f32 %v1000_v6, %v241_v53  ;;  %vm513_vm10 = vweird.f32 %v402_v55 }
  0x39   : > { %1003 = vpow2.f32 %v230_v56  ;;  %v517_v17 = vand.u32 2147483647, %v402_v55  ;;  %v519_v18 = vand.u32 2147483648, %v402_v55  ;;  %vm353_vm11 = vweird.f32 %v1000_v6 }
  0x3a   : > { %v1232_v43 = vmul.f32 %v555_v32, %v183_v36  ;;  %v1234_v44 = vmul.f32 %v557_v33, %v183_v36  ;;  %v1247_v60 = vmul.f32 %v556_v4, %v183_v36  ;;  %v1249_v61 = vmul.f32 %v558_v52, %v183_v36  ;;  %vm1283_vm13 = vmor %vm352_vm9, %vm353_vm11 }
  0x3b   : > { %1005 = vpow2.f32 %v391_v57  ;;  %v349_v20 = vsub.f32 1.0, %v348_v10  ;;  %v215_v27 = vmul.f32 -10.0, %v207_v14  ;;  %v368_v28 = vsub.f32 %v1262_v5, %v1184_v49 }
  0x3c   : > { %936 = vmatmul.msk.f32.vlgmr.msra.gmra.mxu0 %vm625_vm8, %v1232_v43  ;;  %938 = vmatmul.msk.f32.vlgmr.msra.gmra.mxu1 %vm625_vm8, %v1234_v44  ;;  %v365_v32 = vsub.f32 %v1148_v24, %v1184_v49  ;;  %v359_v34 = vor.u32 1.1754944e-38, %v358_v12  ;;  %v520_v39 = vor.u32 1.1754944e-38, %v519_v18  ;;  %vm518_vm0 = vcmp.eq.f32.partialorder %v517_v17, 8.507059e+37 }
  0x3d   : > { %v350_v29 = vmul.f32 %v1000_v6, %v349_v20  ;;  %v228_v41 = vmul.f32 1.442695, %v215_v27  ;;  %v376_v45 = vmul.f32 -10.0, %v368_v28  ;;  %v600_v50 = vmax.f32 %v592_v30, 0.0 }
  0x3e   : > { %v1002_v9 = vpop.eup %1001  ;;  %v583_v4 = vand.u32 2147483647, %v575_v31  ;;  %v574_v12 = vsub.f32 %v1237_v51, %v1262_v5 }
  0x3f   : > { %v1004_v15 = vpop.eup %1003  ;;  %v509_v16 = vmul.f32 %v1002_v9, %v402_v55  ;;  %vm514_vm12 = vweird.f32 %v1002_v9  ;;  %v351_v38 = vadd.f32 %v1000_v6, %v350_v29  ;;  %v389_v55 = vmul.f32 1.442695, %v376_v45 }
  0x40   : > { %v240_v22 = vadd.f32 1.0, %v1004_v15  ;;  %vm1292_vm15 = vmor %vm513_vm10, %vm514_vm12  ;;  %v582_v33 = vand.u32 2147483647, %v574_v12 }
  0x41   : > { %v1006_v19 = vpop.eup %1005  ;;  %v510_v23 = vsub.f32 1.0, %v509_v16  ;;  %v355_v47 = vsel %vm1283_vm13, %v1000_v6, %v351_v38 }
  0x42   : > { %v1274_v26 = vadd.f32 1.0, %v1006_v19  ;;  %1007 = vrcp.f32 %v240_v22  ;;  %v360_v52 = vsel %vm357_vm14, %v359_v34, %v355_v47  ;;  %vm337_vm1 = vweird.f32 %v240_v22 }
  0x43   : > { %v511_v36 = vmul.f32 %v1002_v9, %v510_v23  ;;  %v341_v58 = vand.u32 2147483647, %v240_v22  ;;  %v343_v7 = vand.u32 2147483648, %v240_v22  ;;  %v591_v19 = vsub.f32 1.0, %v583_v4 }
  0x44   : > { %937 = vmatmul.msk.f32.gmra.mxu0 %vm625_vm8, %v1247_v60  ;;  %939 = vmatmul.msk.f32.gmra.mxu1 %vm625_vm8, %v1249_v61  ;;  %1009 = vrcp.f32 %v1274_v26  ;;  %vm498_vm2 = vweird.f32 %v1274_v26  ;;  %v504_v8 = vand.u32 2147483648, %v1274_v26  ;;  %v502_v14 = vand.u32 2147483647, %v1274_v26 }
  0x45   : > { %v512_v40 = vadd.f32 %v1002_v9, %v511_v36  ;;  %1011 = vpow2.f32 %v228_v41  ;;  %vm1315_vm5 = vcmp.eq.f32.partialorder %v341_v58, 8.507059e+37  ;;  %v344_v23 = vor.u32 1.1754944e-38, %v343_v7 }
  0x46   : > { %1013 = vpow2.f32 %v389_v55  ;;  %v374_v36 = vmul.f32 -10.0, %v366_v37  ;;  %vm503_vm9 = vcmp.eq.f32.partialorder %v502_v14, 8.507059e+37  ;;  %v212_v55 = vmul.f32 -10.0, %v204_v54 }
  0x47   : > { %v516_v53 = vsel %vm1292_vm15, %v1002_v9, %v512_v40  ;;  %v572_v54 = vsub.f32 %v1237_v51, %v1176_v42 }
  0x48   : > { %v1008_v56 = vpop.eup %1007  ;;  %v521_v57 = vsel %vm518_vm0, %v520_v39, %v516_v53  ;;  %v599_v39 = vmax.f32 %v591_v19, 0.0  ;;  %v1357_v53 = vmul.f32 -10.0, %v364_v3  ;;  %v385_v58 = vmul.f32 1.442695, %v374_v36 }
  0x49   : > { %v530_v62 = vsub.f32 %v360_v52, %v521_v57  ;;  %v333_v63 = vmul.f32 %v1008_v56, %v240_v22  ;;  %vm338_vm3 = vweird.f32 %v1008_v56  ;;  %v505_v22 = vor.u32 1.1754944e-38, %v504_v8 }
  0x4a   : > { %v1010_v59 = vpop.eup %1009  ;;  %vm1323_vm6 = vmor %vm337_vm1, %vm338_vm3  ;;  %v590_v52 = vsub.f32 1.0, %v582_v33  ;;  %v373_v3 = vmul.f32 -10.0, %v365_v32  ;;  %v222_v32 = vmul.f32 1.442695, %v212_v55 }
  0x4b   : > { %v494_v6 = vmul.f32 %v1010_v59, %v1274_v26  ;;  %v1308_v10 = vmul.f32 %v600_v50, %v530_v62  ;;  %v334_v11 = vsub.f32 1.0, %v333_v63  ;;  %vm499_vm4 = vweird.f32 %v1010_v59  ;;  %v1012_v16 = vpop.eup %1011 }
  0x4c   : > { %940 = vmatmul.msk.f32.vlgmr.msrb.gmra.mxu1 %vm625_vm8, %v1232_v43  ;;  %v189_v43 = vadd.s32 32, %v1134_v13  ;;  %v1327_v28 = vadd.f32 1.0, %v1012_v16  ;;  %v1014_v30 = vpop.eup %1013  ;;  %vm1334_vm7 = vmor %vm498_vm2, %vm499_vm4  ;;  %v1351_v50 = vmul.f32 -10.0, %v203_v2  ;;  %v224_v2 = vmul.f32 1.442695, %v1298_v46 }
  0x4d   : > { %v495_v13 = vsub.f32 1.0, %v494_v6  ;;  %716 = vmatpush.msra.mxu2 %v1308_v10  ;;  %v335_v17 = vmul.f32 %v1008_v56, %v334_v11  ;;  %802 = vmatpush.msrb.mxu0 %v1308_v10  ;;  %v1341_v40 = vadd.f32 1.0, %v1014_v30  ;;  %v1375_v46 = vmax.f32 %v590_v52, 0.0 }
  0x4e   : > { %v197_v9 = vcvt.s32.f32 %v189_v43  ;;  %761 = vmatpush.msra.mxu3 %v1308_v10  ;;  %1015 = vrcp.f32 %v1327_v28  ;;  %v326_v57 = vand.u32 2147483647, %v1327_v28  ;;  %vm322_vm10 = vweird.f32 %v1327_v28 }
  0x4f   : > { %v496_v27 = vmul.f32 %v1010_v59, %v495_v13  ;;  %v336_v31 = vadd.f32 %v1008_v56, %v335_v17  ;;  %1017 = vrcp.f32 %v1341_v40  ;;  %v487_v6 = vand.u32 2147483647, %v1341_v40 }
  0x50   : > { %v206_v15 = vsub.f32 %v197_v9, %v1182_v48  ;;  %v367_v20 = vsub.f32 %v197_v9, %v1184_v49  ;;  %v573_v37 = vsub.f32 %v1237_v51, %v197_v9  ;;  %v580_v49 = vand.u32 2147483647, %v572_v54 }
  0x51   : > { %v497_v38 = vadd.f32 %v1010_v59, %v496_v27  ;;  %v340_v35 = vsel %vm1323_vm6, %v1008_v56, %v336_v31  ;;  %vm1380_vm12 = vcmp.eq.f32.partialorder %v326_v57, 8.507059e+37  ;;  %v489_v11 = vand.u32 2147483648, %v1341_v40 }
  0x52   : > { %v214_v29 = vmul.f32 -10.0, %v206_v15  ;;  %v375_v34 = vmul.f32 -10.0, %v367_v20  ;;  %v345_v26 = vsel %vm1315_vm5, %v344_v23, %v340_v35  ;;  %v581_v48 = vand.u32 2147483647, %v573_v37 }
  0x53   : > { %v501_v45 = vsel %vm1334_vm7, %v1010_v59, %v497_v38  ;;  %v588_v16 = vsub.f32 1.0, %v580_v49  ;;  %v383_v17 = vmul.f32 1.442695, %v373_v3  ;;  %vm483_vm14 = vweird.f32 %v1341_v40 }
  0x54   : > { %941 = vmatmul.msk.f32.gmra.mxu1 %vm625_vm8, %v1247_v60  ;;  %v226_v41 = vmul.f32 1.442695, %v214_v29  ;;  %v387_v47 = vmul.f32 1.442695, %v375_v34  ;;  %v506_v4 = vsel %vm503_vm9, %v505_v22, %v501_v45  ;;  %v1016_v43 = vpop.eup %1015  ;;  %v589_v12 = vsub.f32 1.0, %v581_v48 }
  0x55   : > { %v529_v56 = vsub.f32 %v345_v26, %v506_v4  ;;  %v318_v62 = vmul.f32 %v1016_v43, %v1327_v28  ;;  %v1018_v63 = vpop.eup %1017  ;;  %vm323_vm11 = vweird.f32 %v1016_v43  ;;  %vm1399_vm0 = vcmp.eq.f32.partialorder %v487_v6, 8.507059e+37 }
  0x56   : > { %1019 = vpow2.f32 %v226_v41  ;;  %v479_v9 = vmul.f32 %v1018_v63, %v1341_v40  ;;  %vm1392_vm13 = vmor %vm322_vm10, %vm323_vm11  ;;  %vm484_vm15 = vweird.f32 %v1018_v63  ;;  %v490_v31 = vor.u32 1.1754944e-38, %v489_v11 }
  0x57   : > { %1021 = vpow2.f32 %v387_v47  ;;  %v1369_v59 = vmul.f32 %v599_v39, %v529_v56  ;;  %v319_v7 = vsub.f32 1.0, %v318_v62  ;;  %v1407_v60 = vmax.f32 %v589_v12, 0.0  ;;  %vm1413_vm1 = vmor %vm483_vm14, %vm484_vm15 }
  0x58   : > { %1023 = vpow2.f32 %v224_v2  ;;  %v480_v19 = vsub.f32 1.0, %v479_v9  ;;  %v1418_v36 = vmax.f32 %v588_v16, 0.0  ;;  %v571_v41 = vsub.f32 %v1237_v51, %v1148_v24 }
  0x59   : > { %717 = vmatpush.msra.mxu2 %v1369_v59  ;;  %1025 = vpow2.f32 %v385_v58  ;;  %803 = vmatpush.msrb.mxu0 %v1369_v59  ;;  %v320_v14 = vmul.f32 %v1016_v43, %v319_v7 }
  0x5a   : > { %762 = vmatpush.msra.mxu3 %v1369_v59  ;;  %1027 = vpow2.f32 %v222_v32  ;;  %v481_v30 = vmul.f32 %v1018_v63, %v480_v19 }
  0x5b   : > { %v321_v23 = vadd.f32 %v1016_v43, %v320_v14 }
  0x5c   : > { %942 = vmatmul.msk.f32.gmra.mxu1 %vm625_vm8, %v1234_v44  ;;  %v328_v44 = vand.u32 2147483648, %v1327_v28  ;;  %v1020_v8 = vpop.eup %1019  ;;  %v482_v38 = vadd.f32 %v1018_v63, %v481_v30 }
  0x5d   : > { %v1022_v13 = vpop.eup %1021  ;;  %v1388_v15 = vadd.f32 1.0, %v1020_v8  ;;  %v325_v22 = vsel %vm1392_vm13, %v1016_v43, %v321_v23 }
  0x5e   : > { %v1397_v20 = vadd.f32 1.0, %v1022_v13  ;;  %v1024_v5 = vpop.eup %1023  ;;  %v329_v27 = vor.u32 1.1754944e-38, %v328_v44  ;;  %v486_v47 = vsel %vm1413_vm1, %v1018_v63, %v482_v38 }
  0x5f   : > { %1029 = vrcp.f32 %v1388_v15  ;;  %v1026_v28 = vpop.eup %1025  ;;  %v311_v34 = vand.u32 2147483647, %v1388_v15  ;;  %v313_v35 = vand.u32 2147483648, %v1388_v15  ;;  %v1421_v39 = vadd.f32 1.0, %v1024_v5 }
  0x60   : > { %1031 = vrcp.f32 %v1397_v20  ;;  %v330_v40 = vsel %vm1380_vm12, %v329_v27, %v325_v22  ;;  %vm307_vm2 = vweird.f32 %v1388_v15  ;;  %v472_v26 = vand.u32 2147483647, %v1397_v20 }
  0x61   : > { %1033 = vpow2.f32 %v383_v17  ;;  %v1429_v45 = vadd.f32 1.0, %v1026_v28  ;;  %vm468_vm3 = vweird.f32 %v1397_v20  ;;  %v491_v52 = vsel %vm1399_vm0, %v490_v31, %v486_v47 }
  0x62   : > { %1035 = vrcp.f32 %v1421_v39  ;;  %vm1439_vm4 = vcmp.eq.f32.partialorder %v311_v34, 8.507059e+37  ;;  %v474_v56 = vand.u32 2147483648, %v1397_v20  ;;  %v528_v2 = vsub.f32 %v330_v40, %v491_v52 }
  0x63   : > { %1037 = vrcp.f32 %v1429_v45  ;;  %v314_v43 = vor.u32 1.1754944e-38, %v313_v35  ;;  %v296_v3 = vand.u32 2147483647, %v1421_v39  ;;  %vm1448_vm6 = vcmp.eq.f32.partialorder %v472_v26, 8.507059e+37 }
  0x64   : > { %943 = vmatmul.msk.f32.gmra.mxu1 %vm625_vm8, %v1249_v61  ;;  %v1028_v61 = vpop.eup %1027  ;;  %v298_v44 = vand.u32 2147483648, %v1421_v39  ;;  %v1454_v49 = vmul.f32 %v1375_v46, %v528_v2  ;;  %v457_v63 = vand.u32 2147483647, %v1429_v45  ;;  %v475_v42 = vor.u32 1.1754944e-38, %v474_v56 }
  0x65   : > { %v1435_v37 = vadd.f32 1.0, %v1028_v61  ;;  %v1030_v4 = vpop.eup %1029  ;;  %vm292_vm9 = vweird.f32 %v1421_v39  ;;  %vm1460_vm10 = vcmp.eq.f32.partialorder %v296_v3, 8.507059e+37  ;;  %vm453_vm11 = vweird.f32 %v1429_v45 }
  0x66   : > { %v1032_v57 = vpop.eup %1031  ;;  %v303_v58 = vmul.f32 %v1030_v4, %v1388_v15  ;;  %vm308_vm5 = vweird.f32 %v1030_v4  ;;  %718 = vmatpush.msra.mxu2 %v1454_v49  ;;  %804 = vmatpush.msrb.mxu0 %v1454_v49  ;;  %v299_v16 = vor.u32 1.1754944e-38, %v298_v44  ;;  %v459_v17 = vand.u32 2147483648, %v1429_v45 }
  0x67   : > { %v1034_v48 = vpop.eup %1033  ;;  %v464_v54 = vmul.f32 %v1032_v57, %v1397_v20  ;;  %1039 = vrcp.f32 %v1435_v37  ;;  %vm469_vm7 = vweird.f32 %v1032_v57  ;;  %vm1471_vm12 = vmor %vm307_vm2, %vm308_vm5  ;;  %763 = vmatpush.msra.mxu3 %v1454_v49  ;;  %vm1486_vm14 = vcmp.eq.f32.partialorder %v457_v63, 8.507059e+37 }
  0x68   : > { %v304_v32 = vsub.f32 1.0, %v303_v58  ;;  %v1036_v6 = vpop.eup %1035  ;;  %v1465_v46 = vadd.f32 1.0, %v1034_v48  ;;  %vm1481_vm13 = vmor %vm468_vm3, %vm469_vm7  ;;  %vm277_vm15 = vweird.f32 %v1435_v37  ;;  %v281_v30 = vand.u32 2147483647, %v1435_v37 }
  0x69   : > { %v465_v7 = vsub.f32 1.0, %v464_v54  ;;  %v1038_v11 = vpop.eup %1037  ;;  %v288_v14 = vmul.f32 %v1036_v6, %v1421_v39  ;;  %vm293_vm0 = vweird.f32 %v1036_v6  ;;  %v460_v40 = vor.u32 1.1754944e-38, %v459_v17 }
  0x6a   : > { %v305_v8 = vmul.f32 %v1030_v4, %v304_v32  ;;  %v449_v15 = vmul.f32 %v1038_v11, %v1429_v45  ;;  %1041 = vrcp.f32 %v1465_v46  ;;  %vm454_vm1 = vweird.f32 %v1038_v11  ;;  %vm1507_vm2 = vmor %vm292_vm9, %vm293_vm0 }
  0x6b   : > { %v466_v13 = vmul.f32 %v1032_v57, %v465_v7  ;;  %v289_v27 = vsub.f32 1.0, %v288_v14  ;;  %v283_v26 = vand.u32 2147483648, %v1435_v37  ;;  %vm1514_vm3 = vmor %vm453_vm11, %vm454_vm1  ;;  %v220_v56 = vmul.f32 1.442695, %v1351_v50 }
  0x6c   : > { %v306_v18 = vadd.f32 %v1030_v4, %v305_v8  ;;  %v450_v28 = vsub.f32 1.0, %v449_v15  ;;  %v442_v3 = vand.u32 2147483647, %v1465_v46  ;;  %v444_v32 = vand.u32 2147483648, %v1465_v46 }
  0x6d   : > { %v467_v23 = vadd.f32 %v1032_v57, %v466_v13  ;;  %v1492_v29 = vpop.eup %1039  ;;  %v290_v33 = vmul.f32 %v1036_v6, %v289_v27  ;;  %1043 = vpow2.f32 %v220_v56  ;;  %vm1552_vm9 = vcmp.eq.f32.partialorder %v281_v30, 8.507059e+37 }
  0x6e   : > { %v310_v20 = vsel %vm1471_vm12, %v1030_v4, %v306_v18  ;;  %v273_v34 = vmul.f32 %v1492_v29, %v1435_v37  ;;  %v451_v35 = vmul.f32 %v1038_v11, %v450_v28  ;;  %vm278_vm5 = vweird.f32 %v1492_v29 }
  0x6f   : > { %v315_v31 = vsel %vm1439_vm4, %v314_v43, %v310_v20  ;;  %v471_v22 = vsel %vm1481_vm13, %v1032_v57, %v467_v23  ;;  %v291_v4 = vadd.f32 %v1036_v6, %v290_v33  ;;  %vm438_vm4 = vweird.f32 %v1465_v46 }
  0x70   : > { %v476_v61 = vsel %vm1448_vm6, %v475_v42, %v471_v22  ;;  %v274_v55 = vsub.f32 1.0, %v273_v34  ;;  %v452_v39 = vadd.f32 %v1038_v11, %v451_v35  ;;  %v381_v57 = vmul.f32 1.442695, %v1357_v53  ;;  %v1042_v2 = vpop.eup %1041  ;;  %vm1545_vm6 = vmor %vm277_vm15, %vm278_vm5 }
  0x71   : > { %v527_v47 = vsub.f32 %v315_v31, %v476_v61  ;;  %v295_v45 = vsel %vm1507_vm2, %v1036_v6, %v291_v4  ;;  %v434_v50 = vmul.f32 %v1042_v2, %v1465_v46  ;;  %v579_v53 = vand.u32 2147483647, %v571_v41 }
  0x72   : > { %v275_v43 = vmul.f32 %v1492_v29, %v274_v55  ;;  %v300_v48 = vsel %vm1460_vm10, %v299_v16, %v295_v45  ;;  %v456_v54 = vsel %vm1514_vm3, %v1038_v11, %v452_v39  ;;  %vm439_vm7 = vweird.f32 %v1042_v2 }
  0x73   : > { %v1523_v58 = vmul.f32 %v1407_v60, %v527_v47  ;;  %v461_v60 = vsel %vm1486_vm14, %v460_v40, %v456_v54  ;;  %v435_v41 = vsub.f32 1.0, %v434_v50  ;;  %1045 = vpow2.f32 %v381_v57  ;;  %vm1566_vm10 = vmor %vm438_vm4, %vm439_vm7 }
  0x74   : > { %v276_v62 = vadd.f32 %v1492_v29, %v275_v43  ;;  %v526_v24 = vsub.f32 %v300_v48, %v461_v60  ;;  %v284_v37 = vor.u32 1.1754944e-38, %v283_v26  ;;  %v218_v7 = vmul.f32 1.442695, %v1254_v0 }
  0x75   : > { %719 = vmatpush.msra.mxu2 %v1523_v58  ;;  %805 = vmatpush.msrb.mxu0 %v1523_v58  ;;  %v379_v42 = vmul.f32 1.442695, %v1256_v1  ;;  %v436_v9 = vmul.f32 %v1042_v2, %v435_v41  ;;  %v587_v11 = vsub.f32 1.0, %v579_v53  ;;  %v445_v13 = vor.u32 1.1754944e-38, %v444_v32  ;;  %v1044_v1 = vpop.eup %1043 }
  0x76   : > { %764 = vmatpush.msra.mxu3 %v1523_v58  ;;  %v1559_v6 = vmul.f32 %v1418_v36, %v526_v24  ;;  %v280_v8 = vsel %vm1545_vm6, %v1492_v29, %v276_v62  ;;  %1047 = vpow2.f32 %v218_v7  ;;  %vm443_vm11 = vcmp.eq.f32.partialorder %v442_v3, 8.507059e+37 }
  0x77   : > { %v437_v0 = vadd.f32 %v1042_v2, %v436_v9  ;;  %1049 = vpow2.f32 %v379_v42  ;;  %v285_v36 = vsel %vm1552_vm9, %v284_v37, %v280_v8  ;;  %v570_v46 = vsub.f32 %v1237_v51, %v1152_v25 }
  0x78   : > { %720 = vmatpush.msra.mxu2 %v1559_v6  ;;  %806 = vmatpush.msrb.mxu0 %v1559_v6  ;;  %v595_v17 = vmax.f32 %v587_v11, 0.0  ;;  %v235_v18 = vadd.f32 1.0, %v1044_v1  ;;  %v569_v50 = vsub.f32 %v1237_v51, %v1143_v21 }
  0x79   : > { %765 = vmatpush.msra.mxu3 %v1559_v6  ;;  %v1046_v14 = vpop.eup %1045  ;;  %v441_v16 = vsel %vm1566_vm10, %v1042_v2, %v437_v0  ;;  %v578_v27 = vand.u32 2147483647, %v570_v46 }
  0x7a   : > { %v446_v19 = vsel %vm443_vm11, %v445_v13, %v441_v16  ;;  %v396_v15 = vadd.f32 1.0, %v1046_v14  ;;  %1051 = vrcp.f32 %v235_v18  ;;  %v266_v22 = vand.u32 2147483647, %v235_v18 }
  0x7b   : > { %v525_v5 = vsub.f32 %v285_v36, %v446_v19  ;;  %v586_v30 = vsub.f32 1.0, %v578_v27  ;;  %v268_v61 = vand.u32 2147483648, %v235_v18  ;;  %vm262_vm12 = vweird.f32 %v235_v18 }
  0x7c   : > { %v1048_v23 = vpop.eup %1047  ;;  %1053 = vrcp.f32 %v396_v15  ;;  %v427_v38 = vand.u32 2147483647, %v396_v15  ;;  %v429_v40 = vand.u32 2147483648, %v396_v15  ;;  %vm1587_vm14 = vcmp.eq.f32.partialorder %v266_v22, 8.507059e+37 }
  0x7d   : > { %v1050_v29 = vpop.eup %1049  ;;  %v1579_v20 = vmul.f32 %v595_v17, %v525_v5  ;;  %v234_v28 = vadd.f32 1.0, %v1048_v23  ;;  %v594_v47 = vmax.f32 %v586_v30, 0.0  ;;  %vm423_vm15 = vweird.f32 %v396_v15 }
  0x7e   : > { %v1581_v25 = vadd.f32 1.0, %v1050_v29  ;;  %v269_v57 = vor.u32 1.1754944e-38, %v268_v61  ;;  %vm1591_vm1 = vcmp.eq.f32.partialorder %v427_v38, 8.507059e+37  ;;  %v430_v48 = vor.u32 1.1754944e-38, %v429_v40 }
  0x7f   : > { %721 = vmatpush.msra.mxu2 %v1579_v20  ;;  %1055 = vrcp.f32 %v234_v28  ;;  %807 = vmatpush.msrb.mxu0 %v1579_v20  ;;  %v253_v44 = vand.u32 2147483648, %v234_v28  ;;  %vm247_vm4 = vweird.f32 %v234_v28  ;;  %v251_v41 = vand.u32 2147483647, %v234_v28 }
  0x80   : > { %1057 = vrcp.f32 %v1581_v25  ;;  %766 = vmatpush.msra.mxu3 %v1579_v20  ;;  %v1052_v31 = vpop.eup %1051  ;;  %v414_v32 = vand.u32 2147483648, %v1581_v25  ;;  %vm408_vm9 = vweird.f32 %v1581_v25  ;;  %v412_v0 = vand.u32 2147483647, %v1581_v25 }
  0x81   : > { %v258_v34 = vmul.f32 %v1052_v31, %v235_v18  ;;  %vm263_vm13 = vweird.f32 %v1052_v31  ;;  %v254_v7 = vor.u32 1.1754944e-38, %v253_v44  ;;  %vm252_vm7 = vcmp.eq.f32.partialorder %v251_v41, 8.507059e+37 }
  0x82   : > { %v1054_v33 = vpop.eup %1053  ;;  %vm1595_vm2 = vmor %vm262_vm12, %vm263_vm13  ;;  %v415_v1 = vor.u32 1.1754944e-38, %v414_v32  ;;  %v577_v36 = vand.u32 2147483647, %v569_v50  ;;  %vm413_vm12 = vcmp.eq.f32.partialorder %v412_v0, 8.507059e+37  ;;  %vm855_vm13 = vcmask 261120  }
  0x83   : > { %v419_v35 = vmul.f32 %v1054_v33, %v396_v15  ;;  %v259_v26 = vsub.f32 1.0, %v258_v34  ;;  %vm424_vm0 = vweird.f32 %v1054_v33 }
  0x84   : > { %vm1602_vm3 = vmor %vm423_vm15, %vm424_vm0  ;;  %v585_v18 = vsub.f32 1.0, %v577_v36 }
  0x85   : > { %v1056_v4 = vpop.eup %1055  ;;  %v420_v55 = vsub.f32 1.0, %v419_v35  ;;  %v260_v56 = vmul.f32 %v1052_v31, %v259_v26 }
  0x86   : > { %v1058_v39 = vpop.eup %1057  ;;  %v243_v45 = vmul.f32 %v1056_v4, %v234_v28  ;;  %vm248_vm5 = vweird.f32 %v1056_v4  ;;  %v593_v5 = vmax.f32 %v585_v18, 0.0 }
  0x87   : > { %v421_v3 = vmul.f32 %v1054_v33, %v420_v55  ;;  %v404_v54 = vmul.f32 %v1058_v39, %v1581_v25  ;;  %v261_v53 = vadd.f32 %v1052_v31, %v260_v56  ;;  %vm1613_vm6 = vmor %vm247_vm4, %vm248_vm5  ;;  %vm409_vm10 = vweird.f32 %v1058_v39 }
  0x88   : > { %v244_v62 = vsub.f32 1.0, %v243_v45  ;;  %vm410_vm11 = vmor %vm408_vm9, %vm409_vm10 }
  0x89   : > { %v422_v24 = vadd.f32 %v1054_v33, %v421_v3  ;;  %v265_v63 = vsel %vm1595_vm2, %v1052_v31, %v261_v53  ;;  %v405_v42 = vsub.f32 1.0, %v404_v54 }
  0x8a   : > { %v245_v37 = vmul.f32 %v1056_v4, %v244_v62  ;;  %v270_v21 = vsel %vm1587_vm14, %v269_v57, %v265_v63  ;;  %vm864_vm14 = vcmask 785408  }
  0x8b   : > { %v426_v51 = vsel %vm1602_vm3, %v1054_v33, %v422_v24  ;;  %v406_v12 = vmul.f32 %v1058_v39, %v405_v42 }
  0x8c   : > { %v431_v9 = vsel %vm1591_vm1, %v430_v48, %v426_v51  ;;  %v246_v11 = vadd.f32 %v1056_v4, %v245_v37 }
  0x8d   : > { %v524_v13 = vsub.f32 %v270_v21, %v431_v9  ;;  %v407_v14 = vadd.f32 %v1058_v39, %v406_v12 }
  0x8e   : > { %v250_v46 = vsel %vm1613_vm6, %v1056_v4, %v246_v11 }
  0x8f   : > { %v602_v16 = vmul.f32 %v594_v47, %v524_v13  ;;  %v255_v17 = vsel %vm252_vm7, %v254_v7, %v250_v46  ;;  %v411_v19 = vsel %vm410_vm11, %v1058_v39, %v407_v14 }
  0x90   : > { %v416_v15 = vsel %vm413_vm12, %v415_v1, %v411_v19 }
  0x91   : > { %722 = vmatpush.msra.mxu2 %v602_v16  ;;  %808 = vmatpush.msrb.mxu0 %v602_v16  ;;  %v523_v23 = vsub.f32 %v255_v17, %v416_v15 }
  0x92   : > { %767 = vmatpush.msra.mxu3 %v602_v16 }
  0x93   : > { %v601_v27 = vmul.f32 %v593_v5, %v523_v23 }
  0x95   : > { %723 = vmatpush.msra.mxu2 %v601_v27  ;;  %809 = vmatpush.msrb.mxu0 %v601_v27 }
  0x96   : > { %768 = vmatpush.msra.mxu3 %v601_v27 }
  0x97   : > { %968 = vmatpush.msrb.mxu2 %v1308_v10 }
  0x99   : > { %969 = vmatpush.msrb.mxu2 %v1369_v59 }
  0x9b   : > { %970 = vmatpush.msrb.mxu2 %v1454_v49 }
  0x9d   : > { %971 = vmatpush.msrb.mxu2 %v1523_v58 }
  0x9f   : > { %972 = vmatpush.msrb.mxu2 %v1559_v6 }
  0xa1   : > { %973 = vmatpush.msrb.mxu2 %v1579_v20 }
  0xa3   : > { %974 = vmatpush.msrb.mxu2 %v602_v16 }
  0xa5   : > { %975 = vmatpush.msrb.mxu2 %v601_v27 }
  0xb9   : > { %v655_v29 = vpop.f32.mrf.mxu0  ;;  %v661_v28 = vpop.f32.mrf.mxu1 }
  0xba   : > { %737 = vrot.lane.b32.xlu0 %v655_v29, %s1082_s8  ;;  %944 = vmatmul.msk.f32.vlgmr.msra.gmra.mxu2 %vm625_vm8, %v655_v29 }
  0xbb   : > { %741 = vrot.lane.b32.xlu1 %v661_v28, %s1082_s8 }
  0xc1   : > { %v658_v10 = vpop.f32.mrf.mxu0  ;;  %v664_v59 = vpop.f32.mrf.mxu1 }
  0xc2   : > { %739 = vrot.lane.b32.xlu0 %v658_v10, %s1082_s8  ;;  %945 = vmatmul.msk.f32.gmra.mxu2 %vm625_vm8, %v658_v10 }
  0xc3   : > { %743 = vrot.lane.b32.xlu1 %v664_v59, %s1082_s8 }
  0xc9   : > { %v684_v49 = vpop.f32.mrf.mxu1 }
  0xca   : > { %946 = vmatmul.msk.f32.gmra.mxu2 %vm625_vm8, %v661_v28  ;;  %952 = vmatmul.msk.f32.vlgmr.msrb.gmra.mxu0 %vm625_vm8, %v684_v49 }
  0xd1   : > { %v687_v58 = vpop.f32.mrf.mxu1 }
  0xd2   : > { %947 = vmatmul.msk.f32.gmra.mxu2 %vm625_vm8, %v664_v59  ;;  %953 = vmatmul.msk.f32.gmra.mxu0 %vm625_vm8, %v687_v58 }
  0xd9   : > { %v690_v20 = vpop.f32.mrf.mxu1 }
  0xda   : > { %954 = vmatmul.msk.f32.gmra.mxu0 %vm625_vm8, %v690_v20 }
  0xe1   : > { %v693_v30 = vpop.f32.mrf.mxu1 }
  0xe2   : > { %955 = vmatmul.msk.f32.vlgmr.msrb.gmra.mxu2 %vm625_vm8, %v693_v30 }
 0x12c   : > { %v738_v6 = vpop.permute.xlu0 %737 }
 0x12d   : > { %948 = vmatmul.msk.f32.vlgmr.msra.gmra.mxu3 %vm625_vm8, %v738_v6  ;;  %v742_v31 = vpop.permute.xlu1 %741 }
 0x134   : > { %v740_v25 = vpop.permute.xlu0 %739 }
 0x135   : > { %949 = vmatmul.msk.f32.gmra.mxu3 %vm625_vm8, %v740_v25  ;;  %v744_v22 = vpop.permute.xlu1 %743 }
 0x13d   : > { %950 = vmatmul.msk.f32.gmra.mxu3 %vm625_vm8, %v742_v31  ;;  %v725_v34 = vpop.f32.mrf.mxu2 }
 0x145   : > { %951 = vmatmul.msk.f32.gmra.mxu3 %vm625_vm8, %v744_v22  ;;  %v728_v61 = vpop.f32.mrf.mxu2 }
 0x147   : > { %v811_v33 = vpop.f32.mrf.mxu0 }
 0x148   : > { %843 = vrot.lane.b32.xlu2 %v811_v33, %s1082_s8 }
 0x14d   : > { %v731_v38 = vpop.f32.mrf.mxu2 }
 0x14f   : > { %v814_v52 = vpop.f32.mrf.mxu0 }
 0x155   : > { %v734_v40 = vpop.f32.mrf.mxu2 }
 0x157   : > { %v817_v39 = vpop.f32.mrf.mxu0 }
 0x165   : > { %v820_v47 = vpop.f32.mrf.mxu2 }
 0x1a2   : > { %v844_v56 = vpop.permute.xlu2 %843 }
 0x1b0   : > { %v770_v35 = vpop.f32.mrf.mxu3 }
 0x1b1   : > { %827 = vrot.lane.b32.xlu2 %v770_v35, %s1083_s9 }
 0x1b8   : > { %v773_v26 = vpop.f32.mrf.mxu3 }
 0x1b9   : > { %829 = vrot.lane.b32.xlu2 %v773_v26, %s1083_s9 }
 0x1c0   : > { %v776_v4 = vpop.f32.mrf.mxu3 }
 0x1c1   : > { %831 = vrot.lane.b32.xlu0 %v776_v4, %s1083_s9  ;;  %849 = vrot.lane.b32.xlu2 %v820_v47, %s1082_s8 }
 0x1c8   : > { %v779_v55 = vpop.f32.mrf.mxu3 }
 0x1c9   : > { %833 = vrot.lane.b32.xlu1 %v779_v55, %s1083_s9  ;;  %845 = vrot.lane.b32.xlu0 %v814_v52, %s1082_s8 }
 0x1d1   : > { %847 = vrot.lane.b32.xlu1 %v817_v39, %s1082_s8 }
 0x20b   : > { %v828_v57 = vpop.permute.xlu2 %827 }
 0x20c   : > { %v856_v2 = vsel %vm855_vm13, %v725_v34, %v828_v57 }
 0x20d   : > { %v860_v45 = vsel %vm625_vm8, %v856_v2, %v844_v56 }
 0x20e   : > { %865 = vst.msk [vmem:[%s125_s0] sm:$0xff] %vm864_vm14, %v860_v45 }
 0x213   : > { %v830_v43 = vpop.permute.xlu2 %829 }
 0x214   : > { %v857_v54 = vsel %vm855_vm13, %v728_v61, %v830_v43 }
 0x21b   : > { %v850_v48 = vpop.permute.xlu2 %849 }
 0x233   : > { %v832_v3 = vpop.permute.xlu0 %831 }
 0x234   : > { %v858_v32 = vsel %vm855_vm13, %v731_v38, %v832_v3 }
 0x23b   : > { %v834_v50 = vpop.permute.xlu1 %833  ;;  %v846_v53 = vpop.permute.xlu0 %845 }
 0x23c   : > { %v859_v60 = vsel %vm855_vm13, %v734_v40, %v834_v50  ;;  %v861_v62 = vsel %vm625_vm8, %v857_v54, %v846_v53 }
 0x23d   : > { %866 = vst.msk [vmem:[%s125_s0 + $0x8] sm:$0xff] %vm864_vm14, %v861_v62  ;;  %v863_v44 = vsel %vm625_vm8, %v859_v60, %v850_v48 }
 0x23e   : > { %868 = vst.msk [vmem:[%s125_s0 + $0x18] sm:$0xff] %vm864_vm14, %v863_v44 }
 0x243   : > { %v848_v24 = vpop.permute.xlu1 %847 }
 0x244   : > { %v862_v41 = vsel %vm625_vm8, %v858_v32, %v848_v24 }
 0x245   : > { %867 = vst.msk [vmem:[%s125_s0 + $0x10] sm:$0xff] %vm864_vm14, %v862_v41 }
 0x246 PF: > { %s20_s13 = sadd.s32 1, %s1079_s13  }
 0x247   : > { %p17_p4 = scmp.ge.s32.totalorder %s20_s13, 4  }
 0x249   :  { %19 = sbr.rel (!%p17_p4) target bundleno = 7 (0x7), region = 54 }

// kernel: racnn_forward.10
= control target key start
LH: loop header
LB: loop body
LE: loop exit
PB: predicated region body
PF: predicated region fallthrough
CT: control target
= control target key end

     0   :  { %s559_s0 = inlined_call_operand.vmem [shape: bf16[32,192], index: 0, kind: input, shape index: {}]   ;;  %s560_s1 = inlined_call_operand.vmem [shape: bf16[192,32], index: 1, kind: input, shape index: {}]   ;;  %s561_s2 = inlined_call_operand.vmem [shape: f32[1,32], index: 2, kind: input, shape index: {}]   ;;  %s562_s3 = inlined_call_operand.vmem [shape: bf16[32,128], index: 3, kind: input, shape index: {}]   ;;  %s563_s4 = inlined_call_operand.vmem [shape: f32[1,128], index: 4, kind: input, shape index: {}]   ;;  %s564_s5 = inlined_call_operand.vmem [shape: f32[32,32], index: 5, kind: output, shape index: {0}]   ;;  %s565_s6 = inlined_call_operand.hbm [shape: f32[2,128], index: 6, kind: output, shape index: {1}]  }
   0x1   :  { %v377_v0 = vld [vmem:[%s560_s1 + $0x38] sm:$0xff]  ;;  %v376_v2 = vld [vmem:[%s560_s1 + $0x30] sm:$0xff]  ;;  %v375_v4 = vld [vmem:[%s560_s1 + $0x28] sm:$0xff] }
   0x2   :  { %v381_v1 = vld [vmem:[%s560_s1 + $0x58] sm:$0xff]  ;;  %153 = vmatpush.bf16.msra.mxu0 %v377_v0  ;;  %384 = vmatpush.bf16.msra.mxu3 %v377_v0  ;;  %v380_v3 = vld [vmem:[%s560_s1 + $0x50] sm:$0xff]  ;;  %v379_v5 = vld [vmem:[%s560_s1 + $0x48] sm:$0xff] }
   0x3   :  { %176 = vmatpush.bf16.msra.mxu1 %v381_v1 }
   0x6   :  { %154 = vmatpush.bf16.msra.mxu0 %v376_v2  ;;  %385 = vmatpush.bf16.msra.mxu3 %v376_v2 }
   0x7   :  { %177 = vmatpush.bf16.msra.mxu1 %v380_v3 }
   0x8   :  { %12 = vsyncpa [#allocation3], 0  ;;  %v374_v6 = vld [vmem:[%s560_s1 + $0x20] sm:$0xff]  ;;  %v295_v9 = vld [vmem:[%s559_s0 + $0x8] sm:$0xf0]  ;;  %vm146_vm0 = vcmask 523264  }
   0x9   :  { %v378_v7 = vld [vmem:[%s560_s1 + $0x40] sm:$0xff]  ;;  %v373_v11 = vld [vmem:[%s560_s1 + $0x18] sm:$0xff]  ;;  %v372_v12 = vld [vmem:[%s560_s1 + $0x10] sm:$0xff]  ;;  %vm199_vm1 = vcmask 261120   ;;  %v424_v41 = vmov 16.0   ;;  %vm231_vm3 = vcmask 1040384  }
   0xa   :  { %155 = vmatpush.bf16.msra.mxu0 %v375_v4  ;;  %386 = vmatpush.bf16.msra.mxu3 %v375_v4  ;;  %v366_v8 = vld [vmem:[%s559_s0 + $0x4] sm:$0xf]  ;;  %v371_v13 = vld [vmem:[%s560_s1 + $0x8] sm:$0xff]  ;;  %v293_v15 = vld [vmem:[%s559_s0] sm:$0xf]  ;;  %396 = vrcp.f32 %v424_v41  ;;  %s425_s24 = smov [#allocation2]  }
   0xb   :  { %178 = vmatpush.bf16.msra.mxu1 %v379_v5  ;;  %v298_v10 = vor.u32 %v366_v8, %v295_v9  ;;  %v370_v14 = vld [vmem:[%s560_s1] sm:$0xff]  ;;  %v367_v16 = vld [vmem:[%s559_s0 + $0x4] sm:$0xf0]  ;;  %v301_v17 = vld [vmem:[%s559_s0 + $0x10] sm:$0xf]  ;;  %s278_s25 = sshll.u32 %s425_s24, 4  ;;  %s279_s25 = int_to_ptr.vmem [resolvable:$true] %s278_s25 }
   0xc   :  { %v369_v18 = vld [vmem:[%s559_s0 + $0x14] sm:$0xf0]  ;;  %v368_v19 = vld [vmem:[%s559_s0 + $0x14] sm:$0xf]  ;;  %v303_v20 = vld [vmem:[%s559_s0 + $0x18] sm:$0xf0]  ;;  %v294_v21 = vor.u32 %v367_v16, %v293_v15 }
   0xd   :  { %v302_v22 = vor.u32 %v369_v18, %v301_v17  ;;  %v306_v23 = vor.u32 %v368_v19, %v303_v20  ;;  %v394_v26 = vld [vmem:[%s561_s2] ss:$0 sm:$0xff]  ;;  %v383_v30 = vld [vmem:[%s562_s3 + $0x8] sm:$0xff]  ;;  %s280_s28 = sshll.u32 %s565_s6, 4  ;;  %s281_s28 = int_to_ptr.hbm [resolvable:$true] %s280_s28 }
   0xe   :  { %156 = vmatpush.bf16.msra.mxu0 %v374_v6  ;;  %387 = vmatpush.bf16.msra.mxu3 %v374_v6  ;;  %v382_v32 = vld [vmem:[%s562_s3] sm:$0xff] }
   0xf   :  { %179 = vmatpush.bf16.msra.mxu1 %v378_v7  ;;  %263 = vmatpush.bf16.msra.mxu2 %v383_v30  ;;  %v395_v16 = vld [vmem:[%s563_s4] ss:$0 sm:$0xff] }
  0x10   :  { %v397_v48 = vpop.eup %396 }
  0x11   :  { %v214_v56 = vmul.f32 16.0, %v397_v48  ;;  %vm218_vm2 = vweird.f32 %v397_v48 }
  0x12   :  { %355 = vmatmul.msk.bf16.vlgmr.msra.gmra.mxu1 %vm146_vm0, %v298_v10  ;;  %157 = vmatpush.bf16.msra.mxu0 %v373_v11 }
  0x13   :  { %388 = vmatpush.bf16.msra.mxu3 %v373_v11  ;;  %264 = vmatpush.bf16.msra.mxu2 %v382_v32  ;;  %v215_v62 = vsub.f32 1.0, %v214_v56 }
  0x15   :  { %v216_v2 = vmul.f32 %v397_v48, %v215_v62 }
  0x16   :  { %158 = vmatpush.bf16.msra.mxu0 %v372_v12 }
  0x17   :  { %389 = vmatpush.bf16.msra.mxu3 %v372_v12  ;;  %v217_v6 = vadd.f32 %v397_v48, %v216_v2 }
  0x19   :  { %v219_v10 = vsel %vm218_vm2, %v397_v48, %v217_v6 }
  0x1a   :  { %159 = vmatpush.bf16.msra.mxu0 %v371_v13 }
  0x1b   :  { %390 = vmatpush.bf16.msra.mxu3 %v371_v13 }
  0x1e   :  { %160 = vmatpush.bf16.msra.mxu0 %v370_v14 }
  0x1f   :  { %391 = vmatpush.bf16.msra.mxu3 %v370_v14 }
  0x21   :  { %161 = vmatmul.bf16.vlgmr.msra.gmra.mxu0 %v294_v21 }
  0x22   :  { %166 = vmatmul.bf16.vlgmr.msra.gmra.mxu3 %v302_v22  ;;  %356 = vmatmul.msk.bf16.gmra.mxu1 %vm146_vm0, %v306_v23 }
  0x8f   :  { %v181_v24 = vpop.f32.mrf.mxu1 }
  0x97   :  { %v183_v25 = vpop.f32.mrf.mxu1 }
  0x9e   :  { %v162_v27 = vpop.f32.mrf.mxu0 }
  0x9f   :  { %v163_v28 = vadd.f32 %v394_v26, %v162_v27  ;;  %v186_v34 = vpop.f32.mrf.mxu1 }
  0xa1   :  { %v182_v29 = vadd.f32 %v181_v24, %v163_v28 }
  0xa3   :  { %v191_v31 = vmax.f32 %v182_v29, 0.0 }
  0xa5   :  { %v195_v33 = vmin.f32 %v191_v31, 6.0  ;;  %v167_v35 = vpop.f32.mrf.mxu3 }
  0xa6   :  { %v168_v36 = vadd.f32 %v394_v26, %v167_v35  ;;  %v164_v37 = vpop.f32.mrf.mxu0 }
  0xa7   :  { %200 = vst.msk [vmem:[%s564_s5] sm:$0xff] %vm199_vm1, %v195_v33  ;;  %v165_v38 = vadd.f32 %v394_v26, %v164_v37  ;;  %v204_v49 = vsel %vm199_vm1, %v195_v33, 0.0  ;;  %v188_v51 = vpop.f32.mrf.mxu1 }
  0xa8   :  { %v187_v39 = vadd.f32 %v186_v34, %v168_v36 }
  0xa9   :  { %v184_v40 = vadd.f32 %v183_v25, %v165_v38 }
  0xaa   :  { %v193_v42 = vmax.f32 %v187_v39, 0.0 }
  0xab   :  { %v192_v43 = vmax.f32 %v184_v40, 0.0 }
  0xac   :  { %v197_v44 = vmin.f32 %v193_v42, 6.0 }
  0xad   :  { %v196_v45 = vmin.f32 %v192_v43, 6.0  ;;  %v169_v46 = vpop.f32.mrf.mxu3 }
  0xae   :  { %202 = vst.msk [vmem:[%s564_s5 + $0x10] sm:$0xff] %vm199_vm1, %v197_v44  ;;  %v170_v47 = vadd.f32 %v394_v26, %v169_v46  ;;  %v221_v59 = vsel %vm199_vm1, %v197_v44, 0.0 }
  0xaf   :  { %201 = vst.msk [vmem:[%s564_s5 + $0x8] sm:$0xff] %vm199_vm1, %v196_v45  ;;  %v205_v50 = vsel %vm199_vm1, %v196_v45, 0.0 }
  0xb0   :  { %v206_v52 = vadd.f32 %v205_v50, %v204_v49  ;;  %v189_v53 = vadd.f32 %v188_v51, %v170_v47 }
  0xb2   :  { %v207_v54 = vrot.slane %v206_v52, 4  ;;  %v194_v55 = vmax.f32 %v189_v53, 0.0 }
  0xb4   :  { %v208_v57 = vadd.f32 %v207_v54, %v206_v52  ;;  %v198_v58 = vmin.f32 %v194_v55, 6.0 }
  0xb6   :  { %v209_v60 = vrot.slane %v208_v57, 2  ;;  %203 = vst.msk [vmem:[%s564_s5 + $0x18] sm:$0xff] %vm199_vm1, %v198_v58  ;;  %v222_v61 = vsel %vm199_vm1, %v198_v58, 0.0 }
  0xb7   :  { %v223_v63 = vadd.f32 %v222_v61, %v221_v59 }
  0xb8   :  { %v210_v0 = vadd.f32 %v209_v60, %v208_v57 }
  0xb9   :  { %v224_v1 = vrot.slane %v223_v63, 4 }
  0xba   :  { %v211_v4 = vrot.slane %v210_v0, 1 }
  0xbb   :  { %v225_v3 = vadd.f32 %v224_v1, %v223_v63 }
  0xbc   :  { %v212_v9 = vadd.f32 %v211_v4, %v210_v0 }
  0xbd   :  { %v226_v5 = vrot.slane %v225_v3, 2 }
  0xbe   :  { %v220_v12 = vmul.f32 %v219_v10, %v212_v9 }
  0xbf   :  { %v227_v7 = vadd.f32 %v226_v5, %v225_v3 }
  0xc1   :  { %v228_v8 = vrot.slane %v227_v7, 1 }
  0xc3   :  { %v229_v11 = vadd.f32 %v228_v8, %v227_v7 }
  0xc5   :  { %v230_v13 = vmul.f32 %v229_v11, %v219_v10 }
  0xc7   :  { %v232_v14 = vsel %vm231_vm3, %v220_v12, %v230_v13 }
  0xc8   :  { %v233_v15 = vpack.c.bf16 %v232_v14, %v232_v14 }
  0xca   :  { %365 = vmatmul.msk.bf16.vlgmr.msra.gmra.mxu2 %vm199_vm1, %v233_v15 }
 0x14d   :  { %v266_v17 = vpop.f32.mrf.mxu2 }
 0x14e   :  { %v267_v18 = vadd.f32 %v395_v16, %v266_v17 }
 0x150   :  { %270 = vst [vmem:[#allocation2] sm:$0x3] %v267_v18 }
 0x151   :  { %283 = dma.vmem_to_hbm [thread:$0]  %s279_s25, 32, %s281_s28, [#allocation3]  }
 0x155   :  { %v268_v19 = vpop.f32.mrf.mxu2 }
 0x156   :  { %422 = dma.done.wait [#allocation3], 32  }
 0x157   :  { %423 = vsyncadd [#allocation3], 4294967264 }
 0x158   :  { %290 = vsyncpa [#allocation3], 1 }

// kernel: racnn_forward.11
= control target key start
LH: loop header
LB: loop body
LE: loop exit
PB: predicated region body
PF: predicated region fallthrough
CT: control target
= control target key end

     0   :  { %vm382_vm0 = vcmask 523264   ;;  %s762_s1 = inlined_call_operand.vmem [shape: bf16[512,64], index: 1, kind: input, shape index: {}]   ;;  %s763_s0 = inlined_call_operand.vmem [shape: bf16[2,512], index: 0, kind: input, shape index: {}]   ;;  %s764_s2 = inlined_call_operand.vmem [shape: f32[1,64], index: 2, kind: input, shape index: {}]   ;;  %s765_s4 = inlined_call_operand.vmem [shape: f32[1,128], index: 4, kind: input, shape index: {}]   ;;  %s766_s3 = inlined_call_operand.vmem [shape: bf16[64,128], index: 3, kind: input, shape index: {}]   ;;  %s767_s5 = inlined_call_operand.vmem [shape: f32[2,128], index: 5, kind: output, shape index: {}]  }
   0x1   :  { %v575_v0 = vld [vmem:[%s762_s1 + $0x38] sm:$0xff]  ;;  %v574_v4 = vld [vmem:[%s762_s1 + $0x30] sm:$0xff]  ;;  %v573_v8 = vld [vmem:[%s762_s1 + $0x28] sm:$0xff] }
   0x2   :  { %v583_v1 = vld [vmem:[%s762_s1 + $0x78] sm:$0xff]  ;;  %292 = vmatpush.bf16.msra.mxu0 %v575_v0  ;;  %v582_v5 = vld [vmem:[%s762_s1 + $0x70] sm:$0xff]  ;;  %v581_v9 = vld [vmem:[%s762_s1 + $0x68] sm:$0xff] }
   0x3   :  { %v591_v2 = vld [vmem:[%s762_s1 + $0xb8] sm:$0xff]  ;;  %305 = vmatpush.bf16.msra.mxu1 %v583_v1  ;;  %v590_v6 = vld [vmem:[%s762_s1 + $0xb0] sm:$0xff]  ;;  %v589_v10 = vld [vmem:[%s762_s1 + $0xa8] sm:$0xff] }
   0x4   :  { %v599_v3 = vld [vmem:[%s762_s1 + $0xf8] sm:$0xff]  ;;  %318 = vmatpush.bf16.msra.mxu2 %v591_v2  ;;  %v598_v7 = vld [vmem:[%s762_s1 + $0xf0] sm:$0xff]  ;;  %v597_v11 = vld [vmem:[%s762_s1 + $0xe8] sm:$0xff] }
   0x5   :  { %331 = vmatpush.bf16.msra.mxu3 %v599_v3  ;;  %v572_v12 = vld [vmem:[%s762_s1 + $0x20] sm:$0xff]  ;;  %v571_v17 = vld [vmem:[%s762_s1 + $0x18] sm:$0xff]  ;;  %v570_v21 = vld [vmem:[%s762_s1 + $0x10] sm:$0xff] }
   0x6   :  { %293 = vmatpush.bf16.msra.mxu0 %v574_v4  ;;  %v580_v13 = vld [vmem:[%s762_s1 + $0x60] sm:$0xff]  ;;  %v579_v18 = vld [vmem:[%s762_s1 + $0x58] sm:$0xff]  ;;  %v578_v22 = vld [vmem:[%s762_s1 + $0x50] sm:$0xff] }
   0x7   :  { %306 = vmatpush.bf16.msra.mxu1 %v582_v5  ;;  %v21_v14 = vld [vmem:[%s763_s0] sm:$0xf]  ;;  %v587_v19 = vld [vmem:[%s762_s1 + $0x98] sm:$0xff]  ;;  %v586_v23 = vld [vmem:[%s762_s1 + $0x90] sm:$0xff] }
   0x8   :  { %319 = vmatpush.bf16.msra.mxu2 %v590_v6  ;;  %v588_v15 = vld [vmem:[%s762_s1 + $0xa0] sm:$0xff]  ;;  %91 = vst [vmem:[#allocation1] ss:$9 sm:$0xff] %v21_v14  ;;  %v595_v20 = vld [vmem:[%s762_s1 + $0xd8] sm:$0xff]  ;;  %v594_v24 = vld [vmem:[%s762_s1 + $0xd0] sm:$0xff] }
   0x9   :  { %332 = vmatpush.bf16.msra.mxu3 %v598_v7  ;;  %v596_v16 = vld [vmem:[%s762_s1 + $0xe0] sm:$0xff]  ;;  %v569_v25 = vld [vmem:[%s762_s1 + $0x8] sm:$0xff]  ;;  %v603_v37 = vld [vmem:[%s766_s3 + $0x18] sm:$0xff] }
   0xa   :  { %294 = vmatpush.bf16.msra.mxu0 %v573_v8  ;;  %v577_v26 = vld [vmem:[%s762_s1 + $0x48] sm:$0xff]  ;;  %v568_v29 = vld [vmem:[%s762_s1] sm:$0xff]  ;;  %v602_v38 = vld [vmem:[%s766_s3 + $0x10] sm:$0xff] }
   0xb   :  { %307 = vmatpush.bf16.msra.mxu1 %v581_v9  ;;  %v585_v27 = vld [vmem:[%s762_s1 + $0x88] sm:$0xff]  ;;  %v576_v30 = vld [vmem:[%s762_s1 + $0x40] sm:$0xff] }
   0xc   :  { %320 = vmatpush.bf16.msra.mxu2 %v589_v10  ;;  %v593_v28 = vld [vmem:[%s762_s1 + $0xc8] sm:$0xff]  ;;  %v584_v31 = vld [vmem:[%s762_s1 + $0x80] sm:$0xff] }
   0xd   :  { %333 = vmatpush.bf16.msra.mxu3 %v597_v11  ;;  %v592_v32 = vld [vmem:[%s762_s1 + $0xc0] sm:$0xff]  ;;  %v601_v39 = vld [vmem:[%s766_s3 + $0x8] sm:$0xff] }
   0xe   :  { %295 = vmatpush.bf16.msra.mxu0 %v572_v12  ;;  %v600_v40 = vld [vmem:[%s766_s3] sm:$0xff] }
   0xf   :  { %308 = vmatpush.bf16.msra.mxu1 %v580_v13  ;;  %v92_v33 = vld [vmem:[#allocation1] sm:$0xff]  ;;  %v93_v34 = vld [vmem:[#allocation1 + $0x9] sm:$0xff]  ;;  %v94_v35 = vld [vmem:[#allocation1 + $0x12] sm:$0xff] }
  0x10   :  { %321 = vmatpush.bf16.msra.mxu2 %v588_v15  ;;  %v95_v36 = vld [vmem:[#allocation1 + $0x1b] sm:$0xff] }
  0x11   :  { %334 = vmatpush.bf16.msra.mxu3 %v596_v16  ;;  %v604_v41 = vld [vmem:[%s764_s2] ss:$0 sm:$0xff] }
  0x12   :  { %296 = vmatpush.bf16.msra.mxu0 %v571_v17  ;;  %v605_v56 = vld [vmem:[%s765_s4] ss:$0 sm:$0xff] }
  0x13   :  { %309 = vmatpush.bf16.msra.mxu1 %v579_v18 }
  0x14   :  { %322 = vmatpush.bf16.msra.mxu2 %v587_v19 }
  0x15   :  { %335 = vmatpush.bf16.msra.mxu3 %v595_v20 }
  0x16   :  { %297 = vmatpush.bf16.msra.mxu0 %v570_v21 }
  0x17   :  { %310 = vmatpush.bf16.msra.mxu1 %v578_v22 }
  0x18   :  { %323 = vmatpush.bf16.msra.mxu2 %v586_v23 }
  0x19   :  { %336 = vmatpush.bf16.msra.mxu3 %v594_v24 }
  0x1a   :  { %298 = vmatpush.bf16.msra.mxu0 %v569_v25 }
  0x1b   :  { %311 = vmatpush.bf16.msra.mxu1 %v577_v26 }
  0x1c   :  { %324 = vmatpush.bf16.msra.mxu2 %v585_v27 }
  0x1d   :  { %337 = vmatpush.bf16.msra.mxu3 %v593_v28 }
  0x1e   :  { %299 = vmatpush.bf16.msra.mxu0 %v568_v29 }
  0x1f   :  { %312 = vmatpush.bf16.msra.mxu1 %v576_v30 }
  0x20   :  { %325 = vmatpush.bf16.msra.mxu2 %v584_v31 }
  0x21   :  { %338 = vmatpush.bf16.msra.mxu3 %v592_v32  ;;  %300 = vmatmul.bf16.vlgmr.msra.gmra.mxu0 %v92_v33 }
  0x22   :  { %313 = vmatmul.bf16.vlgmr.msra.gmra.mxu1 %v93_v34  ;;  %390 = vmatpush.bf16.msrb.mxu0 %v603_v37 }
  0x23   :  { %326 = vmatmul.bf16.vlgmr.msra.gmra.mxu2 %v94_v35 }
  0x24   :  { %339 = vmatmul.bf16.vlgmr.msra.gmra.mxu3 %v95_v36 }
  0x26   :  { %391 = vmatpush.bf16.msrb.mxu0 %v602_v38 }
  0x2a   :  { %392 = vmatpush.bf16.msrb.mxu0 %v601_v39 }
  0x2e   :  { %393 = vmatpush.bf16.msrb.mxu0 %v600_v40 }
  0x9e   :  { %v301_v42 = vpop.f32.mrf.mxu0 }
  0x9f   :  { %v314_v43 = vpop.f32.mrf.mxu1  ;;  %v302_v44 = vadd.f32 %v604_v41, %v301_v42 }
  0xa1   :  { %v315_v45 = vadd.f32 %v314_v43, %v302_v44 }
  0xa6   :  { %v327_v46 = vpop.f32.mrf.mxu2  ;;  %v303_v49 = vpop.f32.mrf.mxu0 }
  0xa7   :  { %v340_v47 = vpop.f32.mrf.mxu3  ;;  %v328_v48 = vadd.f32 %v327_v46, %v315_v45  ;;  %v316_v50 = vpop.f32.mrf.mxu1 }
  0xa9   :  { %v341_v51 = vadd.f32 %v340_v47, %v328_v48 }
  0xab   :  { %606 = vtanh.f32 %v341_v51 }
  0xae   :  { %v329_v52 = vpop.f32.mrf.mxu2 }
  0xaf   :  { %v342_v53 = vpop.f32.mrf.mxu3 }
  0xb1   :  { %v607_v54 = vpop.eup %606 }
  0xb2   :  { %v345_v55 = vpack.c.bf16 %v607_v54, %v607_v54 }
  0xb4   :  { %567 = vmatmul.msk.bf16.vlgmr.msrb.gmra.mxu0 %vm382_vm0, %v345_v55 }
 0x131   :  { %v395_v57 = vpop.f32.mrf.mxu0 }
 0x132   :  { %v396_v58 = vadd.f32 %v605_v56, %v395_v57 }
 0x134   :  { %v399_v59 = vsub.f32 0.0, %v396_v58 }
 0x136   :  { %v400_v60 = vmul.f32 1.442695, %v399_v59 }
 0x138   :  { %608 = vpow2.f32 %v400_v60 }
 0x139   :  { %v397_v61 = vpop.f32.mrf.mxu0 }
 0x13e   :  { %v609_v62 = vpop.eup %608 }
 0x13f   :  { %v402_v63 = vadd.f32 1.0, %v609_v62 }
 0x141   :  { %610 = vrcp.f32 %v402_v63  ;;  %v414_v3 = vand.u32 2147483648, %v402_v63  ;;  %v412_v5 = vand.u32 2147483647, %v402_v63  ;;  %vm408_vm2 = vweird.f32 %v402_v63 }
 0x143   :  { %v415_v7 = vor.u32 1.1754944e-38, %v414_v3  ;;  %vm413_vm4 = vcmp.eq.f32.partialorder %v412_v5, 8.507059e+37 }
 0x147   :  { %v611_v0 = vpop.eup %610 }
 0x148   :  { %v404_v1 = vmul.f32 %v611_v0, %v402_v63  ;;  %vm409_vm1 = vweird.f32 %v611_v0 }
 0x149   :  { %vm410_vm3 = vmor %vm408_vm2, %vm409_vm1 }
 0x14a   :  { %v405_v2 = vsub.f32 1.0, %v404_v1 }
 0x14c   :  { %v406_v4 = vmul.f32 %v611_v0, %v405_v2 }
 0x14e   :  { %v407_v6 = vadd.f32 %v611_v0, %v406_v4 }
 0x150   :  { %v411_v8 = vsel %vm410_vm3, %v611_v0, %v407_v6 }
 0x151   :  { %v416_v9 = vsel %vm413_vm4, %v415_v7, %v411_v8 }
 0x152   :  { %418 = vst [vmem:[%s767_s5] sm:$0x3] %v416_v9 }

// kernel: racnn_forward.12
= control target key start
LH: loop header
LB: loop body
LE: loop exit
PB: predicated region body
PF: predicated region fallthrough
CT: control target
= control target key end

     0   :  { %s801_s12 = smov [#allocation3]   ;;  %s1057_s0 = inlined_call_operand.vmem [shape: s32[8], index: 0, kind: input, shape index: {}]   ;;  %s1058_s1 = inlined_call_operand.vmem [shape: f32[2,32,96], index: 1, kind: input, shape index: {}]   ;;  %s1059_s2 = inlined_call_operand.vmem [shape: f32[2,32,96], index: 2, kind: output, shape index: {}]  }
   0x1   :  { %s8_s11 = sshll.u32 %s1057_s0, 4  ;;  %s9_s11 = int_to_ptr.vmem [resolvable:$true] %s8_s11 }
   0x2   :  { %11 = dma.vmem_to_smem %s9_s11, 16, %s801_s12, [#allocation2] }
   0x3   :  { %795 = dma.done.wait [#allocation2], 16 }
   0x4   :  { %796 = vsyncadd [#allocation2], 4294967280 }
   0x5   :  { %14 = sfence }
   0x6   :  { %s823_s13 = smov 0  }
   0x7 LB: > { %s695_s14 = sadd.s32 4294967295, %s799_s13   ;;  %p699_p0 = scmp.ge.s32.totalorder %s799_s13, 1  ;;  %s799_s13 = sphi %s823_s13, %s20_s13  }
   0x8   : > { %p96_p1 = scmp.lt.s32.totalorder %s799_s13, 3 }
   0xa   : > { %p97_p2 = pnand %p699_p0, %p96_p1 }
   0xb   : > { %p116_p3 = scmp.lt.s32.totalorder (!%p97_p2), %s695_s14, 1  ;;  %s831_s0 = sshll.u32 (!%p97_p2), %s695_s14, 2 }
   0xc   : > { %100 = sbr.rel (%p97_p2) target bundleno = 582 (0x246), region = 24  ;;  %s127_s15 = sld [smem:[#allocation3 + %s831_s0]] (!%p97_p2) }
   0xd   : > { %s129_s16 = sadd.s32 (!%p97_p2), 1, %s831_s0  ;;  %s132_s27 = sadd.s32 (!%p97_p2), 2, %s831_s0 }
   0xe   : > { %s130_s17 = sld [smem:[#allocation3 + %s129_s16]] (!%p97_p2)  ;;  %s135_s28 = sadd.s32 (!%p97_p2), 3, %s831_s0 }
   0xf   : > { %s854_s29 = sld [smem:[#allocation3 + %s132_s27]] (!%p97_p2)  ;;  %s802_s8 = smov (!%p97_p2), 96  }
  0x10   : > { %s856_s30 = sld [smem:[#allocation3 + %s135_s28]] (!%p97_p2)  ;;  %s803_s9 = smov (!%p97_p2), 64  }
  0x11   : > { %v138_v0 = vlaneseq  ;;  %s1079_s14 = smov (!%p116_p3, %s695_s14), 1  ;;  %vm421_vm8 = vcmask 261120   ;;  %s804_s10 = smov 32  }
  0x12   : > { %s725_s18 = sshll.u32 %s1079_s14, 5  ;;  %s128_s22 = scvt.s32.f32 %s127_s15 }
  0x13   : > { %v139_v1 = vand.u32 127, %v138_v0  ;;  %s120_s21 = scalar_lea.vmem %s1058_s1, %s725_s18  ;;  %v185_v14 = vshrl.u32 %v138_v0, 7  ;;  %s125_s0 = scalar_lea.vmem %s1059_s2, %s725_s18 }
  0x14   : > { %v420_v2 = vld [vmem:[%s120_s21 + $0x18] sm:$0xff]  ;;  %v419_v3 = vld [vmem:[%s120_s21 + $0x10] sm:$0xff]  ;;  %v418_v5 = vld [vmem:[%s120_s21 + $0x8] sm:$0xff]  ;;  %s131_s23 = scvt.s32.f32 %s130_s17  ;;  %v845_v6 = vstv %s128_s22 }
  0x15   : > { %v843_v4 = vcvt.s32.f32 %v139_v1  ;;  %446 = vmatpush.msra.mxu0 %v420_v2  ;;  %v417_v7 = vld [vmem:[%s120_s21] sm:$0xff]  ;;  %v852_v16 = vcvt.s32.f32 %v185_v14  ;;  %v186_v18 = vadd.s32 8, %v185_v14  ;;  %v187_v26 = vadd.s32 16, %v185_v14  ;;  %s134_s3 = scvt.s32.f32 %s854_s29 }
  0x16   : > { %v162_v9 = vstv %s131_s23  ;;  %s359_s24 = ssub.f32 %s131_s23, %s128_s22  ;;  %s137_s4 = scvt.s32.f32 %s856_s30  ;;  %v188_v33 = vadd.s32 24, %v185_v14 }
  0x17   : > { %447 = vmatpush.msra.mxu0 %v419_v3  ;;  %v142_v8 = vsub.f32 %v843_v4, %v845_v6  ;;  %v163_v11 = vsub.f32 %v843_v4, %v162_v9  ;;  %v859_v23 = vcvt.s32.f32 %v186_v18  ;;  %v866_v30 = vcvt.s32.f32 %v187_v26 }
  0x18   : > { %s705_s25 = sadd.f32 -1.0, %s359_s24  ;;  %v878_v44 = vcvt.s32.f32 %v188_v33  ;;  %v894_v59 = vstv %s134_s3  ;;  %v898_v60 = vstv %s137_s4 }
  0x19   : > { %448 = vmatpush.msra.mxu0 %v418_v5  ;;  %v143_v10 = vmul.f32 -10.0, %v142_v8  ;;  %v164_v13 = vmul.f32 -10.0, %v163_v11  ;;  %s872_s5 = ssub.f32 %s137_s4, %s134_s3  ;;  %v276_v33 = vsub.f32 %v859_v23, %v898_v60 }
  0x1a   : > { %s361_s26 = smul.f32 0.032258064, %s705_s25  ;;  %v197_v62 = vsub.f32 %v878_v44, %v894_v59  ;;  %v278_v63 = vsub.f32 %v878_v44, %v898_v60 }
  0x1b   : > { %449 = vmatpush.msra.mxu0 %v417_v7  ;;  %v144_v12 = vmul.f32 1.442695, %v143_v10  ;;  %v165_v15 = vmul.f32 1.442695, %v164_v13  ;;  %s706_s6 = sadd.f32 -1.0, %s872_s5 }
  0x1c   : > { %v362_v17 = vstv %s361_s26  ;;  %v201_v8 = vmul.f32 -10.0, %v197_v62  ;;  %v282_v9 = vmul.f32 -10.0, %v278_v63 }
  0x1d   : > { %739 = vpow2.f32 %v144_v12  ;;  %v363_v21 = vmul.f32 %v362_v17, %v852_v16  ;;  %v364_v27 = vmul.f32 %v362_v17, %v859_v23  ;;  %v365_v40 = vmul.f32 %v362_v17, %v866_v30  ;;  %s393_s7 = smul.f32 0.032258064, %s706_s6 }
  0x1e   : > { %741 = vpow2.f32 %v165_v15  ;;  %v366_v57 = vmul.f32 %v362_v17, %v878_v44  ;;  %v208_v13 = vmul.f32 1.442695, %v201_v8  ;;  %v289_v14 = vmul.f32 1.442695, %v282_v9 }
  0x1f   : > { %v367_v25 = vadd.f32 %v363_v21, %v845_v6  ;;  %v368_v32 = vadd.f32 %v364_v27, %v845_v6  ;;  %v369_v52 = vadd.f32 %v365_v40, %v845_v6  ;;  %v394_v3 = vstv %s393_s7 }
  0x20   : > { %v370_v7 = vadd.f32 %v366_v57, %v845_v6  ;;  %v395_v12 = vmul.f32 %v394_v3, %v843_v4  ;;  %v277_v6 = vsub.f32 %v866_v30, %v898_v60  ;;  %v280_v40 = vmul.f32 -10.0, %v276_v33 }
  0x21   : > { %v371_v29 = vsub.f32 %v367_v25, %v843_v4  ;;  %v372_v43 = vsub.f32 %v368_v32, %v843_v4  ;;  %v373_v2 = vsub.f32 %v369_v52, %v843_v4 }
  0x22   : > { %v374_v18 = vsub.f32 %v370_v7, %v843_v4  ;;  %v916_v21 = vadd.f32 %v395_v12, %v894_v59 }
  0x23   : > { %v740_v19 = vpop.eup %739  ;;  %v375_v39 = vand.u32 2147483647, %v371_v29  ;;  %v376_v56 = vand.u32 2147483647, %v372_v43  ;;  %v377_v17 = vand.u32 2147483647, %v373_v2 }
  0x24   : > { %v146_v20 = vadd.f32 1.0, %v740_v19  ;;  %v742_v22 = vpop.eup %741  ;;  %v196_v19 = vsub.f32 %v866_v30, %v894_v59  ;;  %v378_v26 = vand.u32 2147483647, %v374_v18  ;;  %v400_v29 = vsub.f32 %v916_v21, %v878_v44 }
  0x25   : > { %v167_v24 = vadd.f32 1.0, %v742_v22  ;;  %v379_v51 = vsub.f32 1.0, %v375_v39  ;;  %v380_v11 = vsub.f32 1.0, %v376_v56  ;;  %v381_v25 = vsub.f32 1.0, %v377_v17 }
  0x26   : > { %743 = vrcp.f32 %v146_v20  ;;  %vm152_vm0 = vweird.f32 %v146_v20  ;;  %v158_v36 = vand.u32 2147483648, %v146_v20  ;;  %v156_v37 = vand.u32 2147483647, %v146_v20 }
  0x27   : > { %745 = vrcp.f32 %v167_v24  ;;  %v179_v42 = vand.u32 2147483648, %v167_v24  ;;  %vm173_vm3 = vweird.f32 %v167_v24  ;;  %v177_v47 = vand.u32 2147483647, %v167_v24 }
  0x28   : > { %v159_v49 = vor.u32 1.1754944e-38, %v158_v36  ;;  %vm157_vm5 = vcmp.eq.f32.partialorder %v156_v37, 8.507059e+37  ;;  %v383_v1 = vmax.f32 %v379_v51, 0.0  ;;  %747 = vpow2.f32 %v208_v13 }
  0x29   : > { %v180_v55 = vor.u32 1.1754944e-38, %v179_v42  ;;  %vm178_vm7 = vcmp.eq.f32.partialorder %v177_v47, 8.507059e+37  ;;  %749 = vpow2.f32 %v289_v14  ;;  %v200_v22 = vmul.f32 -10.0, %v196_v19 }
  0x2a   : > { %v385_v37 = vmax.f32 %v381_v25, 0.0  ;;  %v285_v43 = vmul.f32 1.442695, %v280_v40 }
  0x2b   : > { %v206_v27 = vmul.f32 1.442695, %v200_v22 }
  0x2c   : > { %v744_v28 = vpop.eup %743 }
  0x2d   : > { %v148_v31 = vmul.f32 %v744_v28, %v146_v20  ;;  %v746_v34 = vpop.eup %745  ;;  %vm153_vm1 = vweird.f32 %v744_v28  ;;  %v384_v20 = vmax.f32 %v380_v11, 0.0  ;;  %751 = vpow2.f32 %v206_v27 }
  0x2e   : > { %v169_v38 = vmul.f32 %v746_v34, %v167_v24  ;;  %vm880_vm2 = vmor %vm152_vm0, %vm153_vm1  ;;  %vm174_vm4 = vweird.f32 %v746_v34  ;;  %v281_v24 = vmul.f32 -10.0, %v277_v6  ;;  %v748_v32 = vpop.eup %747 }
  0x2f   : > { %v149_v35 = vsub.f32 1.0, %v148_v31  ;;  %vm887_vm6 = vmor %vm173_vm3, %vm174_vm4  ;;  %v195_v31 = vsub.f32 %v859_v23, %v894_v59 }
  0x30   : > { %v170_v46 = vsub.f32 1.0, %v169_v38  ;;  %v287_v4 = vmul.f32 1.442695, %v281_v24  ;;  %v382_v38 = vsub.f32 1.0, %v378_v26 }
  0x31   : > { %v150_v41 = vmul.f32 %v744_v28, %v149_v35  ;;  %v213_v35 = vadd.f32 1.0, %v748_v32  ;;  %v199_v36 = vmul.f32 -10.0, %v195_v31 }
  0x32   : > { %v171_v50 = vmul.f32 %v746_v34, %v170_v46  ;;  %753 = vpow2.f32 %v287_v4  ;;  %v386_v46 = vmax.f32 %v382_v38, 0.0 }
  0x33   : > { %v151_v48 = vadd.f32 %v744_v28, %v150_v41  ;;  %755 = vrcp.f32 %v213_v35  ;;  %v404_v41 = vand.u32 2147483647, %v400_v29  ;;  %v204_v42 = vmul.f32 1.442695, %v199_v36 }
  0x34   : > { %v172_v58 = vadd.f32 %v746_v34, %v171_v50  ;;  %v399_v50 = vsub.f32 %v916_v21, %v866_v30  ;;  %v268_v51 = vand.u32 2147483647, %v213_v35  ;;  %v270_v54 = vand.u32 2147483648, %v213_v35 }
  0x35   : > { %v155_v53 = vsel %vm880_vm2, %v744_v28, %v151_v48  ;;  %v408_v48 = vsub.f32 1.0, %v404_v41  ;;  %vm264_vm9 = vweird.f32 %v213_v35 }
  0x36   : > { %v160_v61 = vsel %vm157_vm5, %v159_v49, %v155_v53  ;;  %v176_v0 = vsel %vm887_vm6, %v746_v34, %v172_v58  ;;  %v750_v34 = vpop.eup %749  ;;  %v403_v63 = vand.u32 2147483647, %v399_v50  ;;  %vm934_vm11 = vcmp.eq.f32.partialorder %v268_v51, 8.507059e+37 }
  0x37   : > { %v181_v5 = vsel %vm178_vm7, %v180_v55, %v176_v0  ;;  %v294_v39 = vadd.f32 1.0, %v750_v34  ;;  %v752_v44 = vpop.eup %751  ;;  %v412_v62 = vmax.f32 %v408_v48, 0.0  ;;  %v271_v3 = vor.u32 1.1754944e-38, %v270_v54 }
  0x38   : > { %v183_v10 = vsub.f32 %v160_v61, %v181_v5  ;;  %v754_v47 = vpop.eup %753  ;;  %v925_v49 = vadd.f32 1.0, %v752_v44  ;;  %v398_v44 = vsub.f32 %v916_v21, %v859_v23 }
  0x39   : > { %757 = vrcp.f32 %v294_v39  ;;  %v929_v52 = vadd.f32 1.0, %v754_v47  ;;  %v756_v53 = vpop.eup %755  ;;  %v349_v55 = vand.u32 2147483647, %v294_v39  ;;  %v351_v61 = vand.u32 2147483648, %v294_v39 }
  0x3a   : > { %v387_v15 = vmul.f32 %v383_v1, %v183_v10  ;;  %v388_v28 = vmul.f32 %v384_v20, %v183_v10  ;;  %v389_v45 = vmul.f32 %v385_v37, %v183_v10  ;;  %759 = vpow2.f32 %v204_v42 }
  0x3b   : > { %761 = vpow2.f32 %v285_v43  ;;  %v390_v57 = vmul.f32 %v386_v46, %v183_v10  ;;  %v260_v58 = vmul.f32 %v756_v53, %v213_v35  ;;  %vm265_vm10 = vweird.f32 %v756_v53 }
  0x3c   : > { %707 = vmatmul.msk.f32.vlgmr.msra.gmra.mxu0 %vm421_vm8, %v387_v15  ;;  %763 = vrcp.f32 %v925_v49  ;;  %vm345_vm12 = vweird.f32 %v294_v39  ;;  %vm938_vm14 = vcmp.eq.f32.partialorder %v349_v55, 8.507059e+37  ;;  %v352_v10 = vor.u32 1.1754944e-38, %v351_v61  ;;  %vm946_vm0 = vmor %vm264_vm9, %vm265_vm10 }
  0x3d   : > { %765 = vrcp.f32 %v929_v52  ;;  %v261_v0 = vsub.f32 1.0, %v260_v58  ;;  %vm249_vm15 = vweird.f32 %v925_v49  ;;  %v253_v15 = vand.u32 2147483647, %v925_v49 }
  0x3e   : > { %v255_v17 = vand.u32 2147483648, %v925_v49  ;;  %vm330_vm2 = vweird.f32 %v929_v52  ;;  %v334_v26 = vand.u32 2147483647, %v929_v52  ;;  %v336_v27 = vand.u32 2147483648, %v929_v52 }
  0x3f   : > { %v758_v56 = vpop.eup %757  ;;  %v262_v9 = vmul.f32 %v756_v53, %v261_v0  ;;  %v407_v35 = vsub.f32 1.0, %v403_v63  ;;  %vm254_vm6 = vcmp.eq.f32.partialorder %v253_v15, 8.507059e+37  ;;  %v397_v37 = vsub.f32 %v916_v21, %v852_v16 }
  0x40   : > { %v341_v30 = vmul.f32 %v758_v56, %v294_v39  ;;  %v760_v2 = vpop.eup %759  ;;  %vm346_vm13 = vweird.f32 %v758_v56  ;;  %v256_v38 = vor.u32 1.1754944e-38, %v255_v17  ;;  %v337_v43 = vor.u32 1.1754944e-38, %v336_v27 }
  0x41   : > { %v762_v8 = vpop.eup %761  ;;  %v943_v11 = vadd.f32 1.0, %v760_v2  ;;  %v263_v6 = vadd.f32 %v756_v53, %v262_v9  ;;  %vm956_vm1 = vmor %vm345_vm12, %vm346_vm13  ;;  %vm335_vm9 = vcmp.eq.f32.partialorder %v334_v26, 8.507059e+37 }
  0x42   : > { %v342_v5 = vsub.f32 1.0, %v341_v30  ;;  %v764_v12 = vpop.eup %763  ;;  %v952_v18 = vadd.f32 1.0, %v762_v8 }
  0x43   : > { %v766_v19 = vpop.eup %765  ;;  %v245_v22 = vmul.f32 %v764_v12, %v925_v49  ;;  %767 = vrcp.f32 %v943_v11  ;;  %v267_v4 = vsel %vm946_vm0, %v756_v53, %v263_v6  ;;  %vm250_vm3 = vweird.f32 %v764_v12 }
  0x44   : > { %708 = vmatmul.msk.f32.gmra.mxu0 %vm421_vm8, %v388_v28  ;;  %v343_v14 = vmul.f32 %v758_v56, %v342_v5  ;;  %v326_v25 = vmul.f32 %v766_v19, %v929_v52  ;;  %vm331_vm4 = vweird.f32 %v766_v19  ;;  %v272_v29 = vsel %vm934_vm11, %v271_v3, %v267_v4  ;;  %vm978_vm5 = vmor %vm249_vm15, %vm250_vm3 }
  0x45   : > { %v246_v28 = vsub.f32 1.0, %v245_v22  ;;  %769 = vrcp.f32 %v952_v18  ;;  %vm985_vm7 = vmor %vm330_vm2, %vm331_vm4  ;;  %v411_v49 = vmax.f32 %v407_v35, 0.0  ;;  %vm234_vm10 = vweird.f32 %v943_v11 }
  0x46   : > { %v344_v24 = vadd.f32 %v758_v56, %v343_v14  ;;  %v327_v32 = vsub.f32 1.0, %v326_v25  ;;  %v240_v50 = vand.u32 2147483648, %v943_v11  ;;  %v238_v55 = vand.u32 2147483647, %v943_v11 }
  0x47   : > { %v247_v34 = vmul.f32 %v764_v12, %v246_v28  ;;  %v321_v30 = vand.u32 2147483648, %v952_v18  ;;  %vm315_vm13 = vweird.f32 %v952_v18  ;;  %v319_v0 = vand.u32 2147483647, %v952_v18 }
  0x48   : > { %v348_v31 = vsel %vm956_vm1, %v758_v56, %v344_v24  ;;  %v328_v39 = vmul.f32 %v766_v19, %v327_v32  ;;  %v241_v3 = vor.u32 1.1754944e-38, %v240_v50  ;;  %vm239_vm15 = vcmp.eq.f32.partialorder %v238_v55, 8.507059e+37 }
  0x49   : > { %v353_v33 = vsel %vm938_vm14, %v352_v10, %v348_v31  ;;  %v768_v40 = vpop.eup %767  ;;  %v248_v41 = vadd.f32 %v764_v12, %v247_v34  ;;  %v322_v9 = vor.u32 1.1754944e-38, %v321_v30  ;;  %vm320_vm1 = vcmp.eq.f32.partialorder %v319_v0, 8.507059e+37 }
  0x4a   : > { %v358_v36 = vsub.f32 %v272_v29, %v353_v33  ;;  %v329_v46 = vadd.f32 %v766_v19, %v328_v39  ;;  %v230_v47 = vmul.f32 %v768_v40, %v943_v11  ;;  %vm235_vm11 = vweird.f32 %v768_v40 }
  0x4b   : > { %v252_v48 = vsel %vm978_vm5, %v764_v12, %v248_v41  ;;  %v770_v51 = vpop.eup %769  ;;  %vm1003_vm12 = vmor %vm234_vm10, %vm235_vm11  ;;  %vm630_vm11 = vcmask 523264  }
  0x4c   : > { %709 = vmatmul.msk.f32.gmra.mxu0 %vm421_vm8, %v389_v45  ;;  %v416_v45 = vmul.f32 %v412_v62, %v358_v36  ;;  %v257_v52 = vsel %vm254_vm6, %v256_v38, %v252_v48  ;;  %v333_v53 = vsel %vm985_vm7, %v766_v19, %v329_v46  ;;  %v231_v23 = vsub.f32 1.0, %v230_v47 }
  0x4d   : > { %v338_v54 = vsel %vm335_vm9, %v337_v43, %v333_v53  ;;  %v311_v56 = vmul.f32 %v770_v51, %v952_v18  ;;  %vm316_vm14 = vweird.f32 %v770_v51  ;;  %v194_v18 = vsub.f32 %v852_v16, %v894_v59 }
  0x4e   : > { %487 = vmatpush.msra.mxu1 %v416_v45  ;;  %532 = vmatpush.msra.mxu2 %v416_v45  ;;  %v357_v58 = vsub.f32 %v257_v52, %v338_v54  ;;  %v232_v61 = vmul.f32 %v768_v40, %v231_v23  ;;  %vm317_vm0 = vmor %vm315_vm13, %vm316_vm14  ;;  %v275_v19 = vsub.f32 %v852_v16, %v898_v60  ;;  %v401_v47 = vand.u32 2147483647, %v397_v37 }
  0x4f   : > { %577 = vmatpush.msra.mxu3 %v416_v45  ;;  %v312_v63 = vsub.f32 1.0, %v311_v56  ;;  %v198_v6 = vmul.f32 -10.0, %v194_v18 }
  0x50   : > { %v415_v1 = vmul.f32 %v411_v49, %v357_v58  ;;  %v233_v2 = vadd.f32 %v768_v40, %v232_v61  ;;  %v279_v20 = vmul.f32 -10.0, %v275_v19  ;;  %v405_v16 = vsub.f32 1.0, %v401_v47 }
  0x51   : > { %v313_v5 = vmul.f32 %v770_v51, %v312_v63  ;;  %v202_v22 = vmul.f32 1.442695, %v198_v6 }
  0x52   : > { %488 = vmatpush.msra.mxu1 %v415_v1  ;;  %v237_v8 = vsel %vm1003_vm12, %v768_v40, %v233_v2  ;;  %533 = vmatpush.msra.mxu2 %v415_v1  ;;  %v283_v24 = vmul.f32 1.442695, %v279_v20  ;;  %v409_v49 = vmax.f32 %v405_v16, 0.0  ;;  %vm635_vm12 = vcmask 785408  }
  0x53   : > { %v314_v10 = vadd.f32 %v770_v51, %v313_v5  ;;  %578 = vmatpush.msra.mxu3 %v415_v1  ;;  %v242_v11 = vsel %vm239_vm15, %v241_v3, %v237_v8  ;;  %771 = vpow2.f32 %v202_v22 }
  0x54   : > { %710 = vmatmul.msk.f32.gmra.mxu0 %vm421_vm8, %v390_v57  ;;  %v402_v57 = vand.u32 2147483647, %v398_v44  ;;  %773 = vpow2.f32 %v283_v24 }
  0x55   : > { %v318_v12 = vsel %vm317_vm0, %v770_v51, %v314_v10 }
  0x56   : > { %v406_v7 = vsub.f32 1.0, %v402_v57  ;;  %v323_v14 = vsel %vm320_vm1, %v322_v9, %v318_v12 }
  0x57   : > { %v356_v15 = vsub.f32 %v242_v11, %v323_v14 }
  0x58   : > { %v410_v13 = vmax.f32 %v406_v7, 0.0 }
  0x59   : > { %v772_v25 = vpop.eup %771 }
  0x5a   : > { %v414_v17 = vmul.f32 %v410_v13, %v356_v15  ;;  %v774_v26 = vpop.eup %773  ;;  %v210_v27 = vadd.f32 1.0, %v772_v25 }
  0x5b   : > { %v291_v4 = vadd.f32 1.0, %v774_v26 }
  0x5c   : > { %489 = vmatpush.msra.mxu1 %v414_v17  ;;  %534 = vmatpush.msra.mxu2 %v414_v17  ;;  %775 = vrcp.f32 %v210_v27  ;;  %v225_v60 = vand.u32 2147483648, %v210_v27  ;;  %vm219_vm2 = vweird.f32 %v210_v27  ;;  %v223_v39 = vand.u32 2147483647, %v210_v27 }
  0x5d   : > { %579 = vmatpush.msra.mxu3 %v414_v17  ;;  %777 = vrcp.f32 %v291_v4  ;;  %v306_v36 = vand.u32 2147483648, %v291_v4  ;;  %vm300_vm5 = vweird.f32 %v291_v4  ;;  %v304_v43 = vand.u32 2147483647, %v291_v4 }
  0x5e   : > { %v226_v40 = vor.u32 1.1754944e-38, %v225_v60  ;;  %vm224_vm7 = vcmp.eq.f32.partialorder %v223_v39, 8.507059e+37 }
  0x5f   : > { %v307_v44 = vor.u32 1.1754944e-38, %v306_v36  ;;  %vm305_vm10 = vcmp.eq.f32.partialorder %v304_v43, 8.507059e+37 }
  0x62   : > { %v776_v28 = vpop.eup %775 }
  0x63   : > { %v778_v29 = vpop.eup %777  ;;  %v215_v31 = vmul.f32 %v776_v28, %v210_v27  ;;  %vm220_vm3 = vweird.f32 %v776_v28 }
  0x64   : > { %v296_v32 = vmul.f32 %v778_v29, %v291_v4  ;;  %vm221_vm4 = vmor %vm219_vm2, %vm220_vm3  ;;  %vm301_vm6 = vweird.f32 %v778_v29 }
  0x65   : > { %v216_v59 = vsub.f32 1.0, %v215_v31  ;;  %vm302_vm9 = vmor %vm300_vm5, %vm301_vm6 }
  0x66   : > { %v297_v33 = vsub.f32 1.0, %v296_v32 }
  0x67   : > { %v217_v34 = vmul.f32 %v776_v28, %v216_v59 }
  0x68   : > { %v298_v35 = vmul.f32 %v778_v29, %v297_v33 }
  0x69   : > { %v218_v38 = vadd.f32 %v776_v28, %v217_v34 }
  0x6a   : > { %v299_v41 = vadd.f32 %v778_v29, %v298_v35 }
  0x6b   : > { %v222_v42 = vsel %vm221_vm4, %v776_v28, %v218_v38 }
  0x6c   : > { %v227_v45 = vsel %vm224_vm7, %v226_v40, %v222_v42  ;;  %v303_v46 = vsel %vm302_vm9, %v778_v29, %v299_v41 }
  0x6d   : > { %v308_v48 = vsel %vm305_vm10, %v307_v44, %v303_v46 }
  0x6e   : > { %v355_v21 = vsub.f32 %v227_v45, %v308_v48 }
  0x70   : > { %v413_v50 = vmul.f32 %v409_v49, %v355_v21 }
  0x72   : > { %490 = vmatpush.msra.mxu1 %v413_v50  ;;  %535 = vmatpush.msra.mxu2 %v413_v50 }
  0x73   : > { %580 = vmatpush.msra.mxu3 %v413_v50 }
  0xb9   : > { %v451_v51 = vpop.f32.mrf.mxu0 }
  0xba   : > { %504 = vrot.lane.b32.xlu0 %v451_v51, %s802_s8  ;;  %711 = vmatmul.msk.f32.vlgmr.msra.gmra.mxu1 %vm421_vm8, %v451_v51 }
  0xc1   : > { %v454_v52 = vpop.f32.mrf.mxu0 }
  0xc2   : > { %549 = vrot.lane.b32.xlu0 %v451_v51, %s803_s9  ;;  %506 = vrot.lane.b32.xlu1 %v454_v52, %s802_s8 }
  0xc3   : > { %712 = vmatmul.msk.f32.gmra.mxu1 %vm421_vm8, %v454_v52 }
  0xc9   : > { %v457_v53 = vpop.f32.mrf.mxu0 }
  0xca   : > { %551 = vrot.lane.b32.xlu1 %v454_v52, %s803_s9  ;;  %508 = vrot.lane.b32.xlu2 %v457_v53, %s802_s8 }
  0xcb   : > { %713 = vmatmul.msk.f32.gmra.mxu1 %vm421_vm8, %v457_v53 }
  0xd1   : > { %v460_v23 = vpop.f32.mrf.mxu0 }
  0xd2   : > { %553 = vrot.lane.b32.xlu2 %v457_v53, %s803_s9  ;;  %510 = vrot.lane.b32.xlu0 %v460_v23, %s802_s8 }
  0xd3   : > { %555 = vrot.lane.b32.xlu1 %v460_v23, %s803_s9  ;;  %714 = vmatmul.msk.f32.gmra.mxu1 %vm421_vm8, %v460_v23 }
 0x124   : > { %v509_v57 = vpop.permute.xlu2 %508 }
 0x12c   : > { %v505_v54 = vpop.permute.xlu0 %504  ;;  %v554_v61 = vpop.permute.xlu2 %553 }
 0x12d   : > { %715 = vmatmul.msk.f32.vlgmr.msra.gmra.mxu2 %vm421_vm8, %v505_v54 }
 0x134   : > { %v550_v55 = vpop.permute.xlu0 %549  ;;  %v507_v56 = vpop.permute.xlu1 %506 }
 0x135   : > { %716 = vmatmul.msk.f32.gmra.mxu2 %vm421_vm8, %v507_v56  ;;  %719 = vmatmul.msk.f32.vlgmr.msra.gmra.mxu3 %vm421_vm8, %v550_v55 }
 0x137   : > { %v492_v9 = vpop.f32.mrf.mxu1 }
 0x13c   : > { %v552_v58 = vpop.permute.xlu1 %551 }
 0x13d   : > { %717 = vmatmul.msk.f32.gmra.mxu2 %vm421_vm8, %v509_v57  ;;  %720 = vmatmul.msk.f32.gmra.mxu3 %vm421_vm8, %v552_v58 }
 0x140   : > { %v495_v12 = vpop.f32.mrf.mxu1 }
 0x144   : > { %v511_v30 = vpop.permute.xlu0 %510 }
 0x145   : > { %718 = vmatmul.msk.f32.gmra.mxu2 %vm421_vm8, %v511_v30  ;;  %721 = vmatmul.msk.f32.gmra.mxu3 %vm421_vm8, %v554_v61  ;;  %v556_v62 = vpop.permute.xlu1 %555 }
 0x148   : > { %v498_v17 = vpop.f32.mrf.mxu1 }
 0x14d   : > { %722 = vmatmul.msk.f32.gmra.mxu3 %vm421_vm8, %v556_v62 }
 0x150   : > { %v501_v27 = vpop.f32.mrf.mxu1 }
 0x1b0   : > { %v537_v63 = vpop.f32.mrf.mxu2 }
 0x1b1   : > { %598 = vrot.lane.b32.xlu2 %v537_v63, %s804_s10 }
 0x1b8   : > { %v540_v0 = vpop.f32.mrf.mxu2  ;;  %v582_v1 = vpop.f32.mrf.mxu3 }
 0x1b9   : > { %614 = vrot.lane.b32.xlu0 %v582_v1, %s803_s9 }
 0x1c0   : > { %v543_v2 = vpop.f32.mrf.mxu2  ;;  %v585_v3 = vpop.f32.mrf.mxu3 }
 0x1c1   : > { %602 = vrot.lane.b32.xlu1 %v543_v2, %s804_s10  ;;  %600 = vrot.lane.b32.xlu0 %v540_v0, %s804_s10 }
 0x1c8   : > { %v546_v5 = vpop.f32.mrf.mxu2  ;;  %v588_v7 = vpop.f32.mrf.mxu3 }
 0x1c9   : > { %616 = vrot.lane.b32.xlu1 %v585_v3, %s803_s9  ;;  %604 = vrot.lane.b32.xlu2 %v546_v5, %s804_s10 }
 0x1d0   : > { %v591_v8 = vpop.f32.mrf.mxu3 }
 0x1d1   : > { %620 = vrot.lane.b32.xlu0 %v591_v8, %s803_s9  ;;  %618 = vrot.lane.b32.xlu2 %v588_v7, %s803_s9 }
 0x20b   : > { %v599_v10 = vpop.permute.xlu2 %598 }
 0x20c   : > { %v626_v13 = vsel %vm421_vm8, %v492_v9, %v599_v10 }
 0x223   : > { %v605_v11 = vpop.permute.xlu2 %604 }
 0x224   : > { %v629_v4 = vsel %vm421_vm8, %v501_v27, %v605_v11 }
 0x22b   : > { %v615_v14 = vpop.permute.xlu0 %614  ;;  %v619_v19 = vpop.permute.xlu2 %618 }
 0x22c   : > { %v631_v15 = vsel %vm630_vm11, %v626_v13, %v615_v14 }
 0x22d   : > { %636 = vst.msk [vmem:[%s125_s0] sm:$0xff] %vm635_vm12, %v631_v15 }
 0x233   : > { %v603_v18 = vpop.permute.xlu1 %602  ;;  %v601_v22 = vpop.permute.xlu0 %600 }
 0x234   : > { %v628_v6 = vsel %vm421_vm8, %v498_v17, %v603_v18  ;;  %v627_v24 = vsel %vm421_vm8, %v495_v12, %v601_v22 }
 0x235   : > { %v633_v20 = vsel %vm630_vm11, %v628_v6, %v619_v19 }
 0x236   : > { %638 = vst.msk [vmem:[%s125_s0 + $0x10] sm:$0xff] %vm635_vm12, %v633_v20 }
 0x23b   : > { %v617_v25 = vpop.permute.xlu1 %616 }
 0x23c   : > { %v632_v26 = vsel %vm630_vm11, %v627_v24, %v617_v25 }
 0x23d   : > { %637 = vst.msk [vmem:[%s125_s0 + $0x8] sm:$0xff] %vm635_vm12, %v632_v26 }
 0x243   : > { %v621_v28 = vpop.permute.xlu0 %620 }
 0x244   : > { %v634_v29 = vsel %vm630_vm11, %v629_v4, %v621_v28 }
 0x245   : > { %639 = vst.msk [vmem:[%s125_s0 + $0x18] sm:$0xff] %vm635_vm12, %v634_v29 }
 0x246 PF: > { %s20_s13 = sadd.s32 1, %s799_s13  }
 0x247   : > { %p17_p4 = scmp.ge.s32.totalorder %s20_s13, 4  }
 0x249   :  { %19 = sbr.rel (!%p17_p4) target bundleno = 7 (0x7), region = 54 }

// kernel: racnn_forward.13
= control target key start
LH: loop header
LB: loop body
LE: loop exit
PB: predicated region body
PF: predicated region fallthrough
CT: control target
= control target key end

     0   :  { %12 = vsyncpa [#allocation3], 0  ;;  %s597_s0 = inlined_call_operand.vmem [shape: bf16[32,192], index: 0, kind: input, shape index: {}]   ;;  %s598_s1 = inlined_call_operand.vmem [shape: bf16[192,32], index: 1, kind: input, shape index: {}]   ;;  %s599_s2 = inlined_call_operand.vmem [shape: f32[1,32], index: 2, kind: input, shape index: {}]   ;;  %s600_s3 = inlined_call_operand.vmem [shape: bf16[32,128], index: 3, kind: input, shape index: {}]   ;;  %s601_s4 = inlined_call_operand.vmem [shape: f32[1,128], index: 4, kind: input, shape index: {}]   ;;  %s602_s5 = inlined_call_operand.hbm [shape: f32[32,32], index: 5, kind: output, shape index: {0}]   ;;  %s603_s6 = inlined_call_operand.hbm [shape: f32[2,128], index: 6, kind: output, shape index: {1}]  }
   0x1   :  { %v392_v0 = vld [vmem:[%s598_s1 + $0x38] sm:$0xff]  ;;  %v391_v2 = vld [vmem:[%s598_s1 + $0x30] sm:$0xff]  ;;  %v390_v4 = vld [vmem:[%s598_s1 + $0x28] sm:$0xff] }
   0x2   :  { %v396_v1 = vld [vmem:[%s598_s1 + $0x58] sm:$0xff]  ;;  %154 = vmatpush.bf16.msra.mxu0 %v392_v0  ;;  %399 = vmatpush.bf16.msra.mxu3 %v392_v0  ;;  %v395_v3 = vld [vmem:[%s598_s1 + $0x50] sm:$0xff]  ;;  %v394_v5 = vld [vmem:[%s598_s1 + $0x48] sm:$0xff] }
   0x3   :  { %177 = vmatpush.bf16.msra.mxu1 %v396_v1 }
   0x6   :  { %155 = vmatpush.bf16.msra.mxu0 %v391_v2  ;;  %400 = vmatpush.bf16.msra.mxu3 %v391_v2 }
   0x7   :  { %178 = vmatpush.bf16.msra.mxu1 %v395_v3 }
   0x8   :  { %13 = vsyncpa [#allocation5], 0  ;;  %v389_v6 = vld [vmem:[%s598_s1 + $0x20] sm:$0xff]  ;;  %v310_v9 = vld [vmem:[%s597_s0 + $0x8] sm:$0xf0]  ;;  %vm147_vm0 = vcmask 523264  }
   0x9   :  { %v393_v7 = vld [vmem:[%s598_s1 + $0x40] sm:$0xff]  ;;  %v388_v11 = vld [vmem:[%s598_s1 + $0x18] sm:$0xff]  ;;  %v387_v12 = vld [vmem:[%s598_s1 + $0x10] sm:$0xff]  ;;  %vm200_vm1 = vcmask 261120   ;;  %v468_v41 = vmov 16.0   ;;  %vm232_vm3 = vcmask 1040384  }
   0xa   :  { %156 = vmatpush.bf16.msra.mxu0 %v390_v4  ;;  %401 = vmatpush.bf16.msra.mxu3 %v390_v4  ;;  %v381_v8 = vld [vmem:[%s597_s0 + $0x4] sm:$0xf]  ;;  %v386_v13 = vld [vmem:[%s598_s1 + $0x8] sm:$0xff]  ;;  %v308_v15 = vld [vmem:[%s597_s0] sm:$0xf]  ;;  %414 = vrcp.f32 %v468_v41  ;;  %s278_s19 = sshll.u32 %s602_s5, 4  ;;  %s279_s19 = int_to_ptr.hbm [resolvable:$true] %s278_s19 }
   0xb   :  { %179 = vmatpush.bf16.msra.mxu1 %v394_v5  ;;  %v313_v10 = vor.u32 %v381_v8, %v310_v9  ;;  %v385_v14 = vld [vmem:[%s598_s1] sm:$0xff]  ;;  %v382_v16 = vld [vmem:[%s597_s0 + $0x4] sm:$0xf0]  ;;  %v316_v17 = vld [vmem:[%s597_s0 + $0x10] sm:$0xf]  ;;  %s470_s20 = smov 128  }
   0xc   :  { %v384_v18 = vld [vmem:[%s597_s0 + $0x14] sm:$0xf0]  ;;  %v383_v19 = vld [vmem:[%s597_s0 + $0x14] sm:$0xf]  ;;  %v318_v20 = vld [vmem:[%s597_s0 + $0x18] sm:$0xf0]  ;;  %v309_v21 = vor.u32 %v382_v16, %v308_v15 }
   0xd   :  { %v317_v22 = vor.u32 %v384_v18, %v316_v17  ;;  %v321_v23 = vor.u32 %v383_v19, %v318_v20  ;;  %v412_v26 = vld [vmem:[%s599_s2] ss:$0 sm:$0xff]  ;;  %v398_v30 = vld [vmem:[%s600_s3 + $0x8] sm:$0xff]  ;;  %s469_s2 = smov [#allocation2]   ;;  %s471_s21 = smov 8  }
   0xe   :  { %157 = vmatpush.bf16.msra.mxu0 %v389_v6  ;;  %402 = vmatpush.bf16.msra.mxu3 %v389_v6  ;;  %v397_v32 = vld [vmem:[%s600_s3] sm:$0xff]  ;;  %s276_s3 = sshll.u32 %s469_s2, 4  ;;  %s472_s24 = smov [#allocation4]   ;;  %s277_s3 = int_to_ptr.vmem [resolvable:$true] %s276_s3 }
   0xf   :  { %180 = vmatpush.bf16.msra.mxu1 %v393_v7  ;;  %264 = vmatpush.bf16.msra.mxu2 %v398_v30  ;;  %v413_v16 = vld [vmem:[%s601_s4] ss:$0 sm:$0xff]  ;;  %s290_s25 = sshll.u32 %s472_s24, 4  ;;  %s292_s28 = sshll.u32 %s603_s6, 4  ;;  %s291_s25 = int_to_ptr.vmem [resolvable:$true] %s290_s25  ;;  %s293_s28 = int_to_ptr.hbm [resolvable:$true] %s292_s28 }
  0x10   :  { %v415_v48 = vpop.eup %414 }
  0x11   :  { %v215_v56 = vmul.f32 16.0, %v415_v48  ;;  %vm219_vm2 = vweird.f32 %v415_v48 }
  0x12   :  { %370 = vmatmul.msk.bf16.vlgmr.msra.gmra.mxu1 %vm147_vm0, %v313_v10  ;;  %158 = vmatpush.bf16.msra.mxu0 %v388_v11 }
  0x13   :  { %403 = vmatpush.bf16.msra.mxu3 %v388_v11  ;;  %265 = vmatpush.bf16.msra.mxu2 %v397_v32  ;;  %v216_v62 = vsub.f32 1.0, %v215_v56 }
  0x15   :  { %v217_v2 = vmul.f32 %v415_v48, %v216_v62 }
  0x16   :  { %159 = vmatpush.bf16.msra.mxu0 %v387_v12 }
  0x17   :  { %404 = vmatpush.bf16.msra.mxu3 %v387_v12  ;;  %v218_v6 = vadd.f32 %v415_v48, %v217_v2 }
  0x19   :  { %v220_v10 = vsel %vm219_vm2, %v415_v48, %v218_v6 }
  0x1a   :  { %160 = vmatpush.bf16.msra.mxu0 %v386_v13 }
  0x1b   :  { %405 = vmatpush.bf16.msra.mxu3 %v386_v13 }
  0x1e   :  { %161 = vmatpush.bf16.msra.mxu0 %v385_v14 }
  0x1f   :  { %406 = vmatpush.bf16.msra.mxu3 %v385_v14 }
  0x21   :  { %162 = vmatmul.bf16.vlgmr.msra.gmra.mxu0 %v309_v21 }
  0x22   :  { %167 = vmatmul.bf16.vlgmr.msra.gmra.mxu3 %v317_v22  ;;  %371 = vmatmul.msk.bf16.gmra.mxu1 %vm147_vm0, %v321_v23 }
  0x8f   :  { %v182_v24 = vpop.f32.mrf.mxu1 }
  0x97   :  { %v184_v25 = vpop.f32.mrf.mxu1 }
  0x9e   :  { %v163_v27 = vpop.f32.mrf.mxu0 }
  0x9f   :  { %v164_v28 = vadd.f32 %v412_v26, %v163_v27  ;;  %v187_v34 = vpop.f32.mrf.mxu1 }
  0xa1   :  { %v183_v29 = vadd.f32 %v182_v24, %v164_v28 }
  0xa3   :  { %v192_v31 = vmax.f32 %v183_v29, 0.0 }
  0xa5   :  { %v196_v33 = vmin.f32 %v192_v31, 6.0  ;;  %v168_v35 = vpop.f32.mrf.mxu3 }
  0xa6   :  { %v169_v36 = vadd.f32 %v412_v26, %v168_v35  ;;  %v165_v37 = vpop.f32.mrf.mxu0 }
  0xa7   :  { %201 = vst.msk [vmem:[#allocation2] sm:$0xff] %vm200_vm1, %v196_v33  ;;  %v166_v38 = vadd.f32 %v412_v26, %v165_v37  ;;  %v205_v49 = vsel %vm200_vm1, %v196_v33, 0.0  ;;  %v189_v51 = vpop.f32.mrf.mxu1 }
  0xa8   :  { %v188_v39 = vadd.f32 %v187_v34, %v169_v36 }
  0xa9   :  { %v185_v40 = vadd.f32 %v184_v25, %v166_v38 }
  0xaa   :  { %v194_v42 = vmax.f32 %v188_v39, 0.0 }
  0xab   :  { %v193_v43 = vmax.f32 %v185_v40, 0.0 }
  0xac   :  { %v198_v44 = vmin.f32 %v194_v42, 6.0 }
  0xad   :  { %v197_v45 = vmin.f32 %v193_v43, 6.0  ;;  %v170_v46 = vpop.f32.mrf.mxu3 }
  0xae   :  { %203 = vst.msk [vmem:[#allocation2 + $0x10] sm:$0xff] %vm200_vm1, %v198_v44  ;;  %v171_v47 = vadd.f32 %v412_v26, %v170_v46  ;;  %v222_v59 = vsel %vm200_vm1, %v198_v44, 0.0 }
  0xaf   :  { %202 = vst.msk [vmem:[#allocation2 + $0x8] sm:$0xff] %vm200_vm1, %v197_v45  ;;  %v206_v50 = vsel %vm200_vm1, %v197_v45, 0.0 }
  0xb0   :  { %v207_v52 = vadd.f32 %v206_v50, %v205_v49  ;;  %v190_v53 = vadd.f32 %v189_v51, %v171_v47 }
  0xb2   :  { %v208_v54 = vrot.slane %v207_v52, 4  ;;  %v195_v55 = vmax.f32 %v190_v53, 0.0 }
  0xb4   :  { %v209_v57 = vadd.f32 %v208_v54, %v207_v52  ;;  %v199_v58 = vmin.f32 %v195_v55, 6.0 }
  0xb6   :  { %v210_v60 = vrot.slane %v209_v57, 2  ;;  %204 = vst.msk [vmem:[#allocation2 + $0x18] sm:$0xff] %vm200_vm1, %v199_v58  ;;  %v223_v61 = vsel %vm200_vm1, %v199_v58, 0.0 }
  0xb7   :  { %v224_v63 = vadd.f32 %v223_v61, %v222_v59  ;;  %284 = dma.vmem_to_hbm [thread:$0]  %s277_s3, 512, %s279_s19, [#allocation3], %s470_s20, %s470_s20, %s471_s21  }
  0xb8   :  { %v211_v0 = vadd.f32 %v210_v60, %v209_v57 }
  0xb9   :  { %v225_v1 = vrot.slane %v224_v63, 4 }
  0xba   :  { %v212_v4 = vrot.slane %v211_v0, 1 }
  0xbb   :  { %v226_v3 = vadd.f32 %v225_v1, %v224_v63 }
  0xbc   :  { %v213_v9 = vadd.f32 %v212_v4, %v211_v0 }
  0xbd   :  { %v227_v5 = vrot.slane %v226_v3, 2 }
  0xbe   :  { %v221_v12 = vmul.f32 %v220_v10, %v213_v9 }
  0xbf   :  { %v228_v7 = vadd.f32 %v227_v5, %v226_v3 }
  0xc1   :  { %v229_v8 = vrot.slane %v228_v7, 1 }
  0xc3   :  { %v230_v11 = vadd.f32 %v229_v8, %v228_v7 }
  0xc5   :  { %v231_v13 = vmul.f32 %v230_v11, %v220_v10 }
  0xc7   :  { %v233_v14 = vsel %vm232_vm3, %v221_v12, %v231_v13 }
  0xc8   :  { %v234_v15 = vpack.c.bf16 %v233_v14, %v233_v14 }
  0xca   :  { %380 = vmatmul.msk.bf16.vlgmr.msra.gmra.mxu2 %vm200_vm1, %v234_v15 }
 0x14d   :  { %v267_v17 = vpop.f32.mrf.mxu2 }
 0x14e   :  { %v268_v18 = vadd.f32 %v413_v16, %v267_v17 }
 0x150   :  { %271 = vst [vmem:[#allocation4] sm:$0x3] %v268_v18 }
 0x151   :  { %295 = dma.vmem_to_hbm [thread:$0]  %s291_s25, 32, %s293_s28, [#allocation5]  }
 0x155   :  { %v269_v19 = vpop.f32.mrf.mxu2 }
 0x156   :  { %464 = dma.done.wait [#allocation3], 512  }
 0x157   :  { %465 = vsyncadd [#allocation3], 4294966784 }
 0x158   :  { %466 = dma.done.wait [#allocation5], 32  }
 0x159   :  { %467 = vsyncadd [#allocation5], 4294967264 }
 0x15a   :  { %304 = vsyncpa [#allocation3], 1 }
 0x15b   :  { %305 = vsyncpa [#allocation5], 1 }

</bundles_post_ra>
